<compile_context>
chip_gen: v7x
topology: tpu7x:2x2x1
jax: 0.10.0
libtpu: 0.0.40
codegen_flags: <defaults>
</compile_context>

<pallas_src>
from functools import partial

import jax
import jax.numpy as jnp
from jax.experimental import pallas as pl
from jax.experimental.pallas import tpu as pltpu


# ---------------------------------------------------------------------------
# Kernel
# ---------------------------------------------------------------------------
def _attention1_kernel(qr_ref, qi_ref, kvr_ref, kvi_ref,
                       uqr_ref, uqi_ref, ukr_ref, uki_ref, uvr_ref, uvi_ref,
                       kmask_ref, qmask_ref,
                       outr_ref, outi_ref):
    """One batch element: complex unitary projections + real-part attention."""

    def mm(a, b):        # a @ b        (MXU, f32 accumulate)
        return jax.lax.dot_general(
            a, b, (((1,), (0,)), ((), ())), preferred_element_type=jnp.float32)

    def mm_t(a, b):      # a @ b^T      (transposed contraction, no .T copy)
        return jax.lax.dot_general(
            a, b, (((1,), (1,)), ((), ())), preferred_element_type=jnp.float32)

    def linear_c(ur, ui, xr, xi):
        # P = U @ X   (complex)
        pr = mm(ur, xr) - mm(ui, xi)
        pi = mm(ur, xi) + mm(ui, xr)
        # out = P @ U^H,  U^H = (ur^T, -ui^T)
        o_r = mm_t(pr, ur) + mm_t(pi, ui)
        o_i = mm_t(pi, ur) - mm_t(pr, ui)
        return o_r, o_i

    qr = qr_ref[0]
    qi = qi_ref[0]
    kvr = kvr_ref[0]
    kvi = kvi_ref[0]

    q_r, q_i = linear_c(uqr_ref[...], uqi_ref[...], qr, qi)
    k_r, k_i = linear_c(ukr_ref[...], uki_ref[...], kvr, kvi)
    v_r, v_i = linear_c(uvr_ref[...], uvi_ref[...], kvr, kvi)

    # cal_score: Re(Q K^T) + 2 Im(Q) Im(K)^T  ==  Qr Kr^T + Qi Ki^T
    scores = mm_t(q_r, k_r) + mm_t(q_i, k_i)

    # additive key mask (torch: (1 - K_mask) * -100000, broadcast over rows)
    kmask = kmask_ref[0]                       # (1, E)
    scores = scores + (1.0 - kmask) * (-100000.0)

    # softmax along the last (key) dim
    m = jnp.max(scores, axis=-1, keepdims=True)
    e = jnp.exp(scores - m)
    probs = e / jnp.sum(e, axis=-1, keepdims=True)
    # nn.Dropout(attention_probs): identity at inference.
    # TODO(synk): train-mode dropout randomness not implemented.

    ctx_r = mm(probs, v_r)
    ctx_i = mm(probs, v_i)

    qmask = qmask_ref[0]                       # (E, 1)
    outr_ref[0] = ctx_r * qmask
    outi_ref[0] = ctx_i * qmask


# ---------------------------------------------------------------------------
# Wrapper
# ---------------------------------------------------------------------------
def attention1_forward(Q, KV, unitary_q, unitary_k, unitary_v,
                       K_mask=None, Q_mask=None):
    """Q, KV: complex64 (B, E, E).  unitary_*: float32 (E, E, 2).

    Returns complex64 (B, E, E), matching Attention_1.forward.
    """
    B, S, E = KV.shape
    assert S == E, "Attention_1 / linear_c require square (seq == embed) inputs"
    assert Q.shape == KV.shape

    qr = jnp.real(Q).astype(jnp.float32)
    qi = jnp.imag(Q).astype(jnp.float32)
    kvr = jnp.real(KV).astype(jnp.float32)
    kvi = jnp.imag(KV).astype(jnp.float32)

    uqr = unitary_q[:, :, 0].astype(jnp.float32)
    uqi = unitary_q[:, :, 1].astype(jnp.float32)
    ukr = unitary_k[:, :, 0].astype(jnp.float32)
    uki = unitary_k[:, :, 1].astype(jnp.float32)
    uvr = unitary_v[:, :, 0].astype(jnp.float32)
    uvi = unitary_v[:, :, 1].astype(jnp.float32)

    if K_mask is None:
        K_mask = jnp.ones((B, E), jnp.float32)
    if Q_mask is None:
        Q_mask = jnp.ones((B, E), jnp.float32)
    kmask3 = K_mask.astype(jnp.float32).reshape(B, 1, E)   # (B, 1, E)
    qmask3 = Q_mask.astype(jnp.float32).reshape(B, E, 1)   # (B, E, 1)

    batch_spec = pl.BlockSpec((1, E, E), lambda b: (b, 0, 0))
    weight_spec = pl.BlockSpec((E, E), lambda b: (0, 0))

    out_r, out_i = pl.pallas_call(
        _attention1_kernel,
        grid=(B,),
        in_specs=[
            batch_spec, batch_spec, batch_spec, batch_spec,          # qr qi kvr kvi
            weight_spec, weight_spec,                                # Uq
            weight_spec, weight_spec,                                # Uk
            weight_spec, weight_spec,                                # Uv
            pl.BlockSpec((1, 1, E), lambda b: (b, 0, 0)),            # K_mask
            pl.BlockSpec((1, E, 1), lambda b: (b, 0, 0)),            # Q_mask
        ],
        out_specs=(batch_spec, batch_spec),
        out_shape=(jax.ShapeDtypeStruct((B, E, E), jnp.float32),
                   jax.ShapeDtypeStruct((B, E, E), jnp.float32)),
        compiler_params=pltpu.CompilerParams(
            dimension_semantics=("parallel",),
            vmem_limit_bytes=32 * 1024 * 1024,
        ),
    )(qr, qi, kvr, kvi, uqr, uqi, ukr, uki, uvr, uvi, kmask3, qmask3)

    return jax.lax.complex(out_r, out_i)


# ---------------------------------------------------------------------------
# Pure-JAX reference mirroring the torch forward (complex arithmetic)
# ---------------------------------------------------------------------------
def _reference_attention1(Q, KV, unitary_q, unitary_k, unitary_v, K_mask, Q_mask):
    hp = jax.lax.Precision.HIGHEST

    def linear_c(unitary, x):
        U = jax.lax.complex(unitary[:, :, 0], unitary[:, :, 1])
        U_H = jnp.conj(U).T
        p = jnp.matmul(U, x, precision=hp)
        return jnp.matmul(p, U_H, precision=hp)

    q = linear_c(unitary_q, Q)
    k = linear_c(unitary_k, KV)
    v = linear_c(unitary_v, KV)

    result = jnp.real(jnp.matmul(q, jnp.swapaxes(k, -1, -2), precision=hp))
    result_bu = jnp.matmul(jnp.imag(q), jnp.swapaxes(jnp.imag(k), -1, -2),
                           precision=hp)
    scores = result + 2.0 * result_bu
    if K_mask is not None:
        scores = scores + ((1.0 - K_mask) * -100000.0)[:, None, :]
    probs = jax.nn.softmax(scores, axis=-1)
    cr = jnp.matmul(probs, jnp.real(v), precision=hp)
    ci = jnp.matmul(probs, jnp.imag(v), precision=hp)
    if Q_mask is not None:
        cr = cr * Q_mask[:, :, None]
        ci = ci * Q_mask[:, :, None]
    return jax.lax.complex(cr, ci)


# ---------------------------------------------------------------------------
# Demo / self-check
# ---------------------------------------------------------------------------
if __name__ == "__main__":
    B = 2          # batch
    E = 128        # KV_size == Q_size; inputs are square (E, E) complex matrices

    key = jax.random.PRNGKey(0)
    k1, k2, k3, k4, k5, k6, k7 = jax.random.split(key, 7)

    def init_unitary(k):
        # torch init: stack([eye(E), zeros(E, E)], dim=-1); add a small learned-
        # looking perturbation so the complex path is genuinely exercised.
        base = jnp.stack([jnp.eye(E, dtype=jnp.float32),
                          jnp.zeros((E, E), jnp.float32)], axis=-1)
        return base + 0.05 * jax.random.normal(k, (E, E, 2), dtype=jnp.float32)

    unitary_q = init_unitary(k1)
    unitary_k = init_unitary(k2)
    unitary_v = init_unitary(k3)

    scale = 0.25
    Q = jax.lax.complex(scale * jax.random.normal(k4, (B, E, E), jnp.float32),
                        scale * jax.random.normal(k5, (B, E, E), jnp.float32))
    KV = jax.lax.complex(scale * jax.random.normal(k6, (B, E, E), jnp.float32),
                         scale * jax.random.normal(k7, (B, E, E), jnp.float32))

    # Masks: last 16 key positions masked out; last 8 query rows zeroed.
    K_mask = jnp.concatenate([jnp.ones((B, E - 16), jnp.float32),
                              jnp.zeros((B, 16), jnp.float32)], axis=1)
    Q_mask = jnp.concatenate([jnp.ones((B, E - 8), jnp.float32),
                              jnp.zeros((B, 8), jnp.float32)], axis=1)

    out = attention1_forward(Q, KV, unitary_q, unitary_k, unitary_v,
                             K_mask, Q_mask)
    out = jax.block_until_ready(out)

    ref = _reference_attention1(Q, KV, unitary_q, unitary_k, unitary_v,
                                K_mask, Q_mask)

    assert out.shape == (B, E, E), out.shape
    err_r = float(jnp.max(jnp.abs(jnp.real(out) - jnp.real(ref))))
    err_i = float(jnp.max(jnp.abs(jnp.imag(out) - jnp.imag(ref))))
    assert jnp.allclose(jnp.real(out), jnp.real(ref), rtol=2e-2, atol=1e-3), err_r
    assert jnp.allclose(jnp.imag(out), jnp.imag(ref), rtol=2e-2, atol=1e-3), err_i

    print("KERNEL_OK")
</pallas_src>

<mosaic_0001>
module attributes {stable_mosaic.version = 11 : i64} {
  func.func @_attention1_kernel(%arg0: i32, %arg1: memref<1x128x128xf32, #tpu.memory_space<vmem>>, %arg2: memref<1x128x128xf32, #tpu.memory_space<vmem>>, %arg3: memref<1x128x128xf32, #tpu.memory_space<vmem>>, %arg4: memref<1x128x128xf32, #tpu.memory_space<vmem>>, %arg5: memref<128x128xf32, #tpu.memory_space<vmem>>, %arg6: memref<128x128xf32, #tpu.memory_space<vmem>>, %arg7: memref<128x128xf32, #tpu.memory_space<vmem>>, %arg8: memref<128x128xf32, #tpu.memory_space<vmem>>, %arg9: memref<128x128xf32, #tpu.memory_space<vmem>>, %arg10: memref<128x128xf32, #tpu.memory_space<vmem>>, %arg11: memref<1x1x128xf32, #tpu.memory_space<vmem>>, %arg12: memref<1x128x1xf32, #tpu.memory_space<vmem>>, %arg13: memref<1x128x128xf32, #tpu.memory_space<vmem>>, %arg14: memref<1x128x128xf32, #tpu.memory_space<vmem>>) attributes {dimension_semantics = [#tpu.dimension_semantics<parallel>], iteration_bounds = array<i64: 2>, scalar_prefetch = 0 : i64, scratch_operands = 0 : i64, tpu.core_type = #tpu.core_type<tc>, window_params = [{transform_indices = @transform_0, window_bounds = array<i64: 1, 128, 128>}, {transform_indices = @transform_1, window_bounds = array<i64: 1, 128, 128>}, {transform_indices = @transform_2, window_bounds = array<i64: 1, 128, 128>}, {transform_indices = @transform_3, window_bounds = array<i64: 1, 128, 128>}, {pipeline_mode = #tpu.pipeline_mode<synchronous>, transform_indices = @transform_4, window_bounds = array<i64: 128, 128>}, {pipeline_mode = #tpu.pipeline_mode<synchronous>, transform_indices = @transform_5, window_bounds = array<i64: 128, 128>}, {pipeline_mode = #tpu.pipeline_mode<synchronous>, transform_indices = @transform_6, window_bounds = array<i64: 128, 128>}, {pipeline_mode = #tpu.pipeline_mode<synchronous>, transform_indices = @transform_7, window_bounds = array<i64: 128, 128>}, {pipeline_mode = #tpu.pipeline_mode<synchronous>, transform_indices = @transform_8, window_bounds = array<i64: 128, 128>}, {pipeline_mode = #tpu.pipeline_mode<synchronous>, transform_indices = @transform_9, window_bounds = array<i64: 128, 128>}, {transform_indices = @transform_10, window_bounds = array<i64: 1, 1, 128>}, {transform_indices = @transform_11, window_bounds = array<i64: 1, 128, 1>}, {transform_indices = @transform_12, window_bounds = array<i64: 1, 128, 128>}, {transform_indices = @transform_13, window_bounds = array<i64: 1, 128, 128>}]} {
    %c0 = arith.constant 0 : index
    %c0_0 = arith.constant 0 : index
    %c0_1 = arith.constant 0 : index
    %0 = vector.load %arg1[%c0, %c0_0, %c0_1] : memref<1x128x128xf32, #tpu.memory_space<vmem>>, vector<1x128x128xf32>
    %1 = vector.shape_cast %0 : vector<1x128x128xf32> to vector<128x128xf32>
    %c0_2 = arith.constant 0 : index
    %c0_3 = arith.constant 0 : index
    %c0_4 = arith.constant 0 : index
    %2 = vector.load %arg2[%c0_2, %c0_3, %c0_4] : memref<1x128x128xf32, #tpu.memory_space<vmem>>, vector<1x128x128xf32>
    %3 = vector.shape_cast %2 : vector<1x128x128xf32> to vector<128x128xf32>
    %c0_5 = arith.constant 0 : index
    %c0_6 = arith.constant 0 : index
    %c0_7 = arith.constant 0 : index
    %4 = vector.load %arg3[%c0_5, %c0_6, %c0_7] : memref<1x128x128xf32, #tpu.memory_space<vmem>>, vector<1x128x128xf32>
    %5 = vector.shape_cast %4 : vector<1x128x128xf32> to vector<128x128xf32>
    %c0_8 = arith.constant 0 : index
    %c0_9 = arith.constant 0 : index
    %c0_10 = arith.constant 0 : index
    %6 = vector.load %arg4[%c0_8, %c0_9, %c0_10] : memref<1x128x128xf32, #tpu.memory_space<vmem>>, vector<1x128x128xf32>
    %7 = vector.shape_cast %6 : vector<1x128x128xf32> to vector<128x128xf32>
    %c0_11 = arith.constant 0 : index
    %c0_12 = arith.constant 0 : index
    %8 = vector.load %arg5[%c0_11, %c0_12] : memref<128x128xf32, #tpu.memory_space<vmem>>, vector<128x128xf32>
    %c0_13 = arith.constant 0 : index
    %c0_14 = arith.constant 0 : index
    %9 = vector.load %arg6[%c0_13, %c0_14] : memref<128x128xf32, #tpu.memory_space<vmem>>, vector<128x128xf32>
    %cst = arith.constant dense<0.000000e+00> : vector<128x128xf32>
    %10 = tpu.matmul %8, %1, %cst {dimension_numbers = #tpu.dot_dimension_numbers<[1], [0], [0], [1], [0, 0, 1, 1], [], []>} : vector<128x128xf32>, vector<128x128xf32>, vector<128x128xf32> -> vector<128x128xf32>
    %cst_15 = arith.constant dense<0.000000e+00> : vector<128x128xf32>
    %11 = tpu.matmul %9, %3, %cst_15 {dimension_numbers = #tpu.dot_dimension_numbers<[1], [0], [0], [1], [0, 0, 1, 1], [], []>} : vector<128x128xf32>, vector<128x128xf32>, vector<128x128xf32> -> vector<128x128xf32>
    %12 = arith.subf %10, %11 : vector<128x128xf32>
    %cst_16 = arith.constant dense<0.000000e+00> : vector<128x128xf32>
    %13 = tpu.matmul %8, %3, %cst_16 {dimension_numbers = #tpu.dot_dimension_numbers<[1], [0], [0], [1], [0, 0, 1, 1], [], []>} : vector<128x128xf32>, vector<128x128xf32>, vector<128x128xf32> -> vector<128x128xf32>
    %cst_17 = arith.constant dense<0.000000e+00> : vector<128x128xf32>
    %14 = tpu.matmul %9, %1, %cst_17 {dimension_numbers = #tpu.dot_dimension_numbers<[1], [0], [0], [1], [0, 0, 1, 1], [], []>} : vector<128x128xf32>, vector<128x128xf32>, vector<128x128xf32> -> vector<128x128xf32>
    %15 = arith.addf %13, %14 : vector<128x128xf32>
    %cst_18 = arith.constant dense<0.000000e+00> : vector<128x128xf32>
    %16 = tpu.matmul %12, %8, %cst_18 {dimension_numbers = #tpu.dot_dimension_numbers<[1], [1], [0], [0], [0, 0, 1, 0], [], []>} : vector<128x128xf32>, vector<128x128xf32>, vector<128x128xf32> -> vector<128x128xf32>
    %cst_19 = arith.constant dense<0.000000e+00> : vector<128x128xf32>
    %17 = tpu.matmul %15, %9, %cst_19 {dimension_numbers = #tpu.dot_dimension_numbers<[1], [1], [0], [0], [0, 0, 1, 0], [], []>} : vector<128x128xf32>, vector<128x128xf32>, vector<128x128xf32> -> vector<128x128xf32>
    %18 = arith.addf %16, %17 : vector<128x128xf32>
    %cst_20 = arith.constant dense<0.000000e+00> : vector<128x128xf32>
    %19 = tpu.matmul %15, %8, %cst_20 {dimension_numbers = #tpu.dot_dimension_numbers<[1], [1], [0], [0], [0, 0, 1, 0], [], []>} : vector<128x128xf32>, vector<128x128xf32>, vector<128x128xf32> -> vector<128x128xf32>
    %cst_21 = arith.constant dense<0.000000e+00> : vector<128x128xf32>
    %20 = tpu.matmul %12, %9, %cst_21 {dimension_numbers = #tpu.dot_dimension_numbers<[1], [1], [0], [0], [0, 0, 1, 0], [], []>} : vector<128x128xf32>, vector<128x128xf32>, vector<128x128xf32> -> vector<128x128xf32>
    %21 = arith.subf %19, %20 : vector<128x128xf32>
    %c0_22 = arith.constant 0 : index
    %c0_23 = arith.constant 0 : index
    %22 = vector.load %arg7[%c0_22, %c0_23] : memref<128x128xf32, #tpu.memory_space<vmem>>, vector<128x128xf32>
    %c0_24 = arith.constant 0 : index
    %c0_25 = arith.constant 0 : index
    %23 = vector.load %arg8[%c0_24, %c0_25] : memref<128x128xf32, #tpu.memory_space<vmem>>, vector<128x128xf32>
    %cst_26 = arith.constant dense<0.000000e+00> : vector<128x128xf32>
    %24 = tpu.matmul %22, %5, %cst_26 {dimension_numbers = #tpu.dot_dimension_numbers<[1], [0], [0], [1], [0, 0, 1, 1], [], []>} : vector<128x128xf32>, vector<128x128xf32>, vector<128x128xf32> -> vector<128x128xf32>
    %cst_27 = arith.constant dense<0.000000e+00> : vector<128x128xf32>
    %25 = tpu.matmul %23, %7, %cst_27 {dimension_numbers = #tpu.dot_dimension_numbers<[1], [0], [0], [1], [0, 0, 1, 1], [], []>} : vector<128x128xf32>, vector<128x128xf32>, vector<128x128xf32> -> vector<128x128xf32>
    %26 = arith.subf %24, %25 : vector<128x128xf32>
    %cst_28 = arith.constant dense<0.000000e+00> : vector<128x128xf32>
    %27 = tpu.matmul %22, %7, %cst_28 {dimension_numbers = #tpu.dot_dimension_numbers<[1], [0], [0], [1], [0, 0, 1, 1], [], []>} : vector<128x128xf32>, vector<128x128xf32>, vector<128x128xf32> -> vector<128x128xf32>
    %cst_29 = arith.constant dense<0.000000e+00> : vector<128x128xf32>
    %28 = tpu.matmul %23, %5, %cst_29 {dimension_numbers = #tpu.dot_dimension_numbers<[1], [0], [0], [1], [0, 0, 1, 1], [], []>} : vector<128x128xf32>, vector<128x128xf32>, vector<128x128xf32> -> vector<128x128xf32>
    %29 = arith.addf %27, %28 : vector<128x128xf32>
    %cst_30 = arith.constant dense<0.000000e+00> : vector<128x128xf32>
    %30 = tpu.matmul %26, %22, %cst_30 {dimension_numbers = #tpu.dot_dimension_numbers<[1], [1], [0], [0], [0, 0, 1, 0], [], []>} : vector<128x128xf32>, vector<128x128xf32>, vector<128x128xf32> -> vector<128x128xf32>
    %cst_31 = arith.constant dense<0.000000e+00> : vector<128x128xf32>
    %31 = tpu.matmul %29, %23, %cst_31 {dimension_numbers = #tpu.dot_dimension_numbers<[1], [1], [0], [0], [0, 0, 1, 0], [], []>} : vector<128x128xf32>, vector<128x128xf32>, vector<128x128xf32> -> vector<128x128xf32>
    %32 = arith.addf %30, %31 : vector<128x128xf32>
    %cst_32 = arith.constant dense<0.000000e+00> : vector<128x128xf32>
    %33 = tpu.matmul %29, %22, %cst_32 {dimension_numbers = #tpu.dot_dimension_numbers<[1], [1], [0], [0], [0, 0, 1, 0], [], []>} : vector<128x128xf32>, vector<128x128xf32>, vector<128x128xf32> -> vector<128x128xf32>
    %cst_33 = arith.constant dense<0.000000e+00> : vector<128x128xf32>
    %34 = tpu.matmul %26, %23, %cst_33 {dimension_numbers = #tpu.dot_dimension_numbers<[1], [1], [0], [0], [0, 0, 1, 0], [], []>} : vector<128x128xf32>, vector<128x128xf32>, vector<128x128xf32> -> vector<128x128xf32>
    %35 = arith.subf %33, %34 : vector<128x128xf32>
    %c0_34 = arith.constant 0 : index
    %c0_35 = arith.constant 0 : index
    %36 = vector.load %arg9[%c0_34, %c0_35] : memref<128x128xf32, #tpu.memory_space<vmem>>, vector<128x128xf32>
    %c0_36 = arith.constant 0 : index
    %c0_37 = arith.constant 0 : index
    %37 = vector.load %arg10[%c0_36, %c0_37] : memref<128x128xf32, #tpu.memory_space<vmem>>, vector<128x128xf32>
    %cst_38 = arith.constant dense<0.000000e+00> : vector<128x128xf32>
    %38 = tpu.matmul %36, %5, %cst_38 {dimension_numbers = #tpu.dot_dimension_numbers<[1], [0], [0], [1], [0, 0, 1, 1], [], []>} : vector<128x128xf32>, vector<128x128xf32>, vector<128x128xf32> -> vector<128x128xf32>
    %cst_39 = arith.constant dense<0.000000e+00> : vector<128x128xf32>
    %39 = tpu.matmul %37, %7, %cst_39 {dimension_numbers = #tpu.dot_dimension_numbers<[1], [0], [0], [1], [0, 0, 1, 1], [], []>} : vector<128x128xf32>, vector<128x128xf32>, vector<128x128xf32> -> vector<128x128xf32>
    %40 = arith.subf %38, %39 : vector<128x128xf32>
    %cst_40 = arith.constant dense<0.000000e+00> : vector<128x128xf32>
    %41 = tpu.matmul %36, %7, %cst_40 {dimension_numbers = #tpu.dot_dimension_numbers<[1], [0], [0], [1], [0, 0, 1, 1], [], []>} : vector<128x128xf32>, vector<128x128xf32>, vector<128x128xf32> -> vector<128x128xf32>
    %cst_41 = arith.constant dense<0.000000e+00> : vector<128x128xf32>
    %42 = tpu.matmul %37, %5, %cst_41 {dimension_numbers = #tpu.dot_dimension_numbers<[1], [0], [0], [1], [0, 0, 1, 1], [], []>} : vector<128x128xf32>, vector<128x128xf32>, vector<128x128xf32> -> vector<128x128xf32>
    %43 = arith.addf %41, %42 : vector<128x128xf32>
    %cst_42 = arith.constant dense<0.000000e+00> : vector<128x128xf32>
    %44 = tpu.matmul %40, %36, %cst_42 {dimension_numbers = #tpu.dot_dimension_numbers<[1], [1], [0], [0], [0, 0, 1, 0], [], []>} : vector<128x128xf32>, vector<128x128xf32>, vector<128x128xf32> -> vector<128x128xf32>
    %cst_43 = arith.constant dense<0.000000e+00> : vector<128x128xf32>
    %45 = tpu.matmul %43, %37, %cst_43 {dimension_numbers = #tpu.dot_dimension_numbers<[1], [1], [0], [0], [0, 0, 1, 0], [], []>} : vector<128x128xf32>, vector<128x128xf32>, vector<128x128xf32> -> vector<128x128xf32>
    %46 = arith.addf %44, %45 : vector<128x128xf32>
    %cst_44 = arith.constant dense<0.000000e+00> : vector<128x128xf32>
    %47 = tpu.matmul %43, %36, %cst_44 {dimension_numbers = #tpu.dot_dimension_numbers<[1], [1], [0], [0], [0, 0, 1, 0], [], []>} : vector<128x128xf32>, vector<128x128xf32>, vector<128x128xf32> -> vector<128x128xf32>
    %cst_45 = arith.constant dense<0.000000e+00> : vector<128x128xf32>
    %48 = tpu.matmul %40, %37, %cst_45 {dimension_numbers = #tpu.dot_dimension_numbers<[1], [1], [0], [0], [0, 0, 1, 0], [], []>} : vector<128x128xf32>, vector<128x128xf32>, vector<128x128xf32> -> vector<128x128xf32>
    %49 = arith.subf %47, %48 : vector<128x128xf32>
    %cst_46 = arith.constant dense<0.000000e+00> : vector<128x128xf32>
    %50 = tpu.matmul %18, %32, %cst_46 {dimension_numbers = #tpu.dot_dimension_numbers<[1], [1], [0], [0], [0, 0, 1, 0], [], []>} : vector<128x128xf32>, vector<128x128xf32>, vector<128x128xf32> -> vector<128x128xf32>
    %cst_47 = arith.constant dense<0.000000e+00> : vector<128x128xf32>
    %51 = tpu.matmul %21, %35, %cst_47 {dimension_numbers = #tpu.dot_dimension_numbers<[1], [1], [0], [0], [0, 0, 1, 0], [], []>} : vector<128x128xf32>, vector<128x128xf32>, vector<128x128xf32> -> vector<128x128xf32>
    %52 = arith.addf %50, %51 : vector<128x128xf32>
    %c0_48 = arith.constant 0 : index
    %c0_49 = arith.constant 0 : index
    %c0_50 = arith.constant 0 : index
    %53 = vector.load %arg11[%c0_48, %c0_49, %c0_50] : memref<1x1x128xf32, #tpu.memory_space<vmem>>, vector<1x1x128xf32>
    %54 = vector.shape_cast %53 : vector<1x1x128xf32> to vector<1x128xf32>
    %cst_51 = arith.constant 1.000000e+00 : f32
    %55 = vector.broadcast %cst_51 : f32 to vector<1x128xf32>
    %56 = arith.subf %55, %54 : vector<1x128xf32>
    %cst_52 = arith.constant -1.000000e+05 : f32
    %57 = vector.broadcast %cst_52 : f32 to vector<1x128xf32>
    %58 = arith.mulf %56, %57 : vector<1x128xf32>
    %59 = vector.broadcast %58 : vector<1x128xf32> to vector<128x128xf32>
    %60 = arith.addf %52, %59 : vector<128x128xf32>
    %cst_53 = arith.constant dense<0xFF800000> : vector<128xf32>
    %61 = vector.multi_reduction <maximumf>, %60, %cst_53 [1] : vector<128x128xf32> to vector<128xf32>
    %62 = vector.shape_cast %61 : vector<128xf32> to vector<128x1xf32>
    %63 = vector.broadcast %62 : vector<128x1xf32> to vector<128x128xf32>
    %64 = arith.subf %60, %63 : vector<128x128xf32>
    %65 = math.exp %64 : vector<128x128xf32>
    %cst_54 = arith.constant dense<0.000000e+00> : vector<128xf32>
    %66 = vector.multi_reduction <add>, %65, %cst_54 [1] : vector<128x128xf32> to vector<128xf32>
    %67 = vector.shape_cast %66 : vector<128xf32> to vector<128x1xf32>
    %68 = vector.broadcast %67 : vector<128x1xf32> to vector<128x128xf32>
    %69 = arith.divf %65, %68 : vector<128x128xf32>
    %cst_55 = arith.constant dense<0.000000e+00> : vector<128x128xf32>
    %70 = tpu.matmul %69, %46, %cst_55 {dimension_numbers = #tpu.dot_dimension_numbers<[1], [0], [0], [1], [0, 0, 1, 1], [], []>} : vector<128x128xf32>, vector<128x128xf32>, vector<128x128xf32> -> vector<128x128xf32>
    %cst_56 = arith.constant dense<0.000000e+00> : vector<128x128xf32>
    %71 = tpu.matmul %69, %49, %cst_56 {dimension_numbers = #tpu.dot_dimension_numbers<[1], [0], [0], [1], [0, 0, 1, 1], [], []>} : vector<128x128xf32>, vector<128x128xf32>, vector<128x128xf32> -> vector<128x128xf32>
    %c0_57 = arith.constant 0 : index
    %c0_58 = arith.constant 0 : index
    %c0_59 = arith.constant 0 : index
    %72 = vector.load %arg12[%c0_57, %c0_58, %c0_59] : memref<1x128x1xf32, #tpu.memory_space<vmem>>, vector<1x128x1xf32>
    %73 = vector.shape_cast %72 : vector<1x128x1xf32> to vector<128x1xf32>
    %74 = vector.broadcast %73 : vector<128x1xf32> to vector<128x128xf32>
    %75 = arith.mulf %70, %74 : vector<128x128xf32>
    %c0_60 = arith.constant 0 : index
    %c0_61 = arith.constant 0 : index
    %c0_62 = arith.constant 0 : index
    %76 = vector.load %arg13[%c0_60, %c0_61, %c0_62] : memref<1x128x128xf32, #tpu.memory_space<vmem>>, vector<1x128x128xf32>
    %77 = vector.shape_cast %76 : vector<1x128x128xf32> to vector<128x128xf32>
    %78 = vector.shape_cast %75 : vector<128x128xf32> to vector<1x128x128xf32>
    tpu.vector_store %arg13[%c0_60, %c0_61, %c0_62], %78 {strides = array<i32>} : memref<1x128x128xf32, #tpu.memory_space<vmem>>, vector<1x128x128xf32>,
    %79 = vector.broadcast %73 : vector<128x1xf32> to vector<128x128xf32>
    %80 = arith.mulf %71, %79 : vector<128x128xf32>
    %c0_63 = arith.constant 0 : index
    %c0_64 = arith.constant 0 : index
    %c0_65 = arith.constant 0 : index
    %81 = vector.load %arg14[%c0_63, %c0_64, %c0_65] : memref<1x128x128xf32, #tpu.memory_space<vmem>>, vector<1x128x128xf32>
    %82 = vector.shape_cast %81 : vector<1x128x128xf32> to vector<128x128xf32>
    %83 = vector.shape_cast %80 : vector<128x128xf32> to vector<1x128x128xf32>
    tpu.vector_store %arg14[%c0_63, %c0_64, %c0_65], %83 {strides = array<i32>} : memref<1x128x128xf32, #tpu.memory_space<vmem>>, vector<1x128x128xf32>,
    return
  }
  func.func @transform_0(%arg0: i32) -> (i32, i32, i32) {
    %c0_i32 = arith.constant 0 : i32
    %c0_i32_0 = arith.constant 0 : i32
    %c0_i32_1 = arith.constant 0 : i32
    return %arg0, %c0_i32, %c0_i32_0 : i32, i32, i32
  }
  func.func @transform_1(%arg0: i32) -> (i32, i32, i32) {
    %c0_i32 = arith.constant 0 : i32
    %c0_i32_0 = arith.constant 0 : i32
    %c0_i32_1 = arith.constant 0 : i32
    return %arg0, %c0_i32, %c0_i32_0 : i32, i32, i32
  }
  func.func @transform_2(%arg0: i32) -> (i32, i32, i32) {
    %c0_i32 = arith.constant 0 : i32
    %c0_i32_0 = arith.constant 0 : i32
    %c0_i32_1 = arith.constant 0 : i32
    return %arg0, %c0_i32, %c0_i32_0 : i32, i32, i32
  }
  func.func @transform_3(%arg0: i32) -> (i32, i32, i32) {
    %c0_i32 = arith.constant 0 : i32
    %c0_i32_0 = arith.constant 0 : i32
    %c0_i32_1 = arith.constant 0 : i32
    return %arg0, %c0_i32, %c0_i32_0 : i32, i32, i32
  }
  func.func @transform_4(%arg0: i32) -> (i32, i32) {
    %c0_i32 = arith.constant 0 : i32
    %c0_i32_0 = arith.constant 0 : i32
    %c0_i32_1 = arith.constant 0 : i32
    return %c0_i32, %c0_i32_0 : i32, i32
  }
  func.func @transform_5(%arg0: i32) -> (i32, i32) {
    %c0_i32 = arith.constant 0 : i32
    %c0_i32_0 = arith.constant 0 : i32
    %c0_i32_1 = arith.constant 0 : i32
    return %c0_i32, %c0_i32_0 : i32, i32
  }
  func.func @transform_6(%arg0: i32) -> (i32, i32) {
    %c0_i32 = arith.constant 0 : i32
    %c0_i32_0 = arith.constant 0 : i32
    %c0_i32_1 = arith.constant 0 : i32
    return %c0_i32, %c0_i32_0 : i32, i32
  }
  func.func @transform_7(%arg0: i32) -> (i32, i32) {
    %c0_i32 = arith.constant 0 : i32
    %c0_i32_0 = arith.constant 0 : i32
    %c0_i32_1 = arith.constant 0 : i32
    return %c0_i32, %c0_i32_0 : i32, i32
  }
  func.func @transform_8(%arg0: i32) -> (i32, i32) {
    %c0_i32 = arith.constant 0 : i32
    %c0_i32_0 = arith.constant 0 : i32
    %c0_i32_1 = arith.constant 0 : i32
    return %c0_i32, %c0_i32_0 : i32, i32
  }
  func.func @transform_9(%arg0: i32) -> (i32, i32) {
    %c0_i32 = arith.constant 0 : i32
    %c0_i32_0 = arith.constant 0 : i32
    %c0_i32_1 = arith.constant 0 : i32
    return %c0_i32, %c0_i32_0 : i32, i32
  }
  func.func @transform_10(%arg0: i32) -> (i32, i32, i32) {
    %c0_i32 = arith.constant 0 : i32
    %c0_i32_0 = arith.constant 0 : i32
    %c0_i32_1 = arith.constant 0 : i32
    return %arg0, %c0_i32, %c0_i32_0 : i32, i32, i32
  }
  func.func @transform_11(%arg0: i32) -> (i32, i32, i32) {
    %c0_i32 = arith.constant 0 : i32
    %c0_i32_0 = arith.constant 0 : i32
    %c0_i32_1 = arith.constant 0 : i32
    return %arg0, %c0_i32, %c0_i32_0 : i32, i32, i32
  }
  func.func @transform_12(%arg0: i32) -> (i32, i32, i32) {
    %c0_i32 = arith.constant 0 : i32
    %c0_i32_0 = arith.constant 0 : i32
    %c0_i32_1 = arith.constant 0 : i32
    return %arg0, %c0_i32, %c0_i32_0 : i32, i32, i32
  }
  func.func @transform_13(%arg0: i32) -> (i32, i32, i32) {
    %c0_i32 = arith.constant 0 : i32
    %c0_i32_0 = arith.constant 0 : i32
    %c0_i32_1 = arith.constant 0 : i32
    return %arg0, %c0_i32, %c0_i32_0 : i32, i32, i32
  }
}

</mosaic_0001>

<bundles_post_ra>
// kernel: tpu_custom_call.1
= control target key start
LH: loop header
LB: loop body
LE: loop exit
PB: predicated region body
PF: predicated region fallthrough
CT: control target
= control target key end

     0   :  { %s12116_s0 = inlined_call_operand.vmem [shape: f32[2,128,128], index: 0, kind: input, shape index: {}]   ;;  %s12117_s1 = inlined_call_operand.hbm [shape: f32[2,128,128], index: 1, kind: input, shape index: {}]   ;;  %s12118_s2 = inlined_call_operand.hbm [shape: f32[2,128,128], index: 2, kind: input, shape index: {}]   ;;  %s12119_s3 = inlined_call_operand.hbm [shape: f32[2,128,128], index: 3, kind: input, shape index: {}]   ;;  %s12120_s4 = inlined_call_operand.hbm [shape: f32[128,128], index: 4, kind: input, shape index: {}]   ;;  %s12121_s5 = inlined_call_operand.hbm [shape: f32[128,128], index: 5, kind: input, shape index: {}]   ;;  %s12122_s6 = inlined_call_operand.hbm [shape: f32[128,128], index: 6, kind: input, shape index: {}]   ;;  %s12123_s7 = inlined_call_operand.hbm [shape: f32[128,128], index: 7, kind: input, shape index: {}]   ;;  %s12124_s8 = inlined_call_operand.hbm [shape: f32[128,128], index: 8, kind: input, shape index: {}]   ;;  %s12125_s9 = inlined_call_operand.hbm [shape: f32[128,128], index: 9, kind: input, shape index: {}]   ;;  %s12126_s10 = inlined_call_operand.vmem [shape: f32[2,1,128], index: 10, kind: input, shape index: {}]   ;;  %s12127_s11 = inlined_call_operand.vmem [shape: f32[2,128,1], index: 11, kind: input, shape index: {}]   ;;  %s12128_s12 = inlined_call_operand.hbm [shape: f32[2,128,128], index: 12, kind: output, shape index: {0}]   ;;  %s12129_s13 = inlined_call_operand.hbm [shape: f32[2,128,128], index: 13, kind: output, shape index: {1}]  }
   0x1   :  { %12184 = sst [smem:[#allocation76_spill]] %s12116_s0 }
   0x2   :  { %12185 = sst [smem:[#allocation77_spill]] %s12118_s2 }
   0x3   :  { %12186 = sst [smem:[#allocation78_spill]] %s12120_s4 }
   0x4   :  { %12187 = sst [smem:[#allocation79_spill]] %s12122_s6 }
   0x5   :  { %12188 = sst [smem:[#allocation80_spill]] %s12124_s8 }
   0x6   :  { %12189 = sst [smem:[#allocation81_spill]] %s12126_s10 }
   0x7   :  { %12190 = sst [smem:[#allocation82_spill]] %s12127_s11 }
   0x8   :  { %12191 = sst [smem:[#allocation83_spill]] %s12128_s12 }
   0x9   :  { %12192 = sst [smem:[#allocation84_spill]] %s12129_s13 }
   0xa   :  { %19 = vsyncpa [#allocation3], 0 }
   0xb   :  { %21 = vsyncpa [#allocation3 + $0x1], 0 }
   0xc   :  { %22 = vsyncpa [#allocation6], 0 }
   0xd   :  { %24 = vsyncpa [#allocation6 + $0x1], 0 }
   0xe   :  { %25 = vsyncpa [#allocation9], 0 }
   0xf   :  { %26 = vsyncpa [#allocation12], 0 }
  0x10   :  { %27 = vsyncpa [#allocation15], 0 }
  0x11   :  { %28 = vsyncpa [#allocation4], 0 }
  0x12   :  { %30 = vsyncpa [#allocation4 + $0x1], 0 }
  0x13   :  { %31 = vsyncpa [#allocation19], 0 }
  0x14   :  { %33 = vsyncpa [#allocation19 + $0x1], 0  ;;  %s9780_s25 = smov 0   ;;  %s9782_s26 = smov 0  }
  0x15   :  { %s9784_s27 = smov 0   ;;  %s9786_s28 = smov 0  }
  0x16 LB: > { %12193 = sst [smem:[#allocation27_spill]] %s9680_s25  ;;  %s9694_s29 = smov [#allocation8]   ;;  %s9692_s28 = sphi %s9786_s28, %s12340_s28   ;;  %s9688_s27 = sphi %s9784_s27, %s12344_s27   ;;  %s9684_s26 = sphi %s9782_s26, %s12343_s26   ;;  %s9680_s25 = sphi %s9780_s25, %s12342_s25  }
  0x17   : > { %12194 = sst [smem:[#allocation28_spill]] %s9692_s28  ;;  %s390_s30 = sshll.u32 %s9694_s29, 4  ;;  %s9806_s30 = int_to_ptr.vmem [resolvable:$true] %s390_s30 }
  0x18   : > { %s9801_s14 = sadd.s32 4294967295, %s9692_s28   ;;  %p5607_p0 = scmp.ge.s32.totalorder %s9692_s28, 1 }
  0x19   : > { %12195 = sst [smem:[#allocation29_spill]] %s9801_s14  ;;  %p12140_p1 = scmp.eq.s32.totalorder %s9801_s14, 0 }
  0x1a   : > { %p378_p2 = scmp.lt.s32.totalorder %s9692_s28, 3  ;;  %s9695_s16 = smov [#allocation11]  }
  0x1b   : > { %s416_s17 = sshll.u32 %s9695_s16, 4  ;;  %s9696_s19 = smov [#allocation14]   ;;  %s9821_s17 = int_to_ptr.vmem [resolvable:$true] %s416_s17 }
  0x1c   : > { %p9808_p3 = pnand %p5607_p0, %p378_p2  ;;  %s442_s20 = sshll.u32 %s9696_s19, 4  ;;  %s9823_s20 = int_to_ptr.vmem [resolvable:$true] %s442_s20 }
  0x1d   : > { %s12198_s4 = sld [smem:[#allocation78_spill]] }
  0x1e   : > { %s12196_s15 = scalar_select %p9808_p3, 1, 0 }
  0x1f   : > { %p9161_p5 = pneg %p9808_p3 }
  0x21   : > { %p9817_p6 = pnand %p9161_p5, %p12140_p1 }
  0x23   : > { %s12197_s18 = scalar_select %p9817_p6, 1, 0 }
  0x24   : > { %s9320_s23 = scalar_lea.hbm %s12198_s4, 2048  ;;  %p9833_p8 = pneg %p9817_p6 }
  0x25   : > { %p9321_p7 = scmp.ne.s32.totalorder %s12198_s4, %s9320_s23  ;;  %p9327_p11 = scmp.lt.u32.totalorder %s9320_s23, %s12198_s4 }
  0x26   : > { %s12199_s16 = scalar_select %p9833_p8, 1, 0 }
  0x27   : > { %p9323_p9 = pnand %p9833_p8, %p9321_p7 }
  0x29   : > { %p9324_p10 = pneg %p9323_p9 }
  0x2b   : > { %p9329_p12 = pnand %p9327_p11, %p9324_p10 }
  0x2d   : > { %9332 = shalt.err (!%p9329_p12)
}
  0x2e   : > { %s9333_s21 = scalar_lea.vmem %s9806_s30, 2048  ;;  %p9341_p5 = scmp.lt.s32.totalorder %s9806_s30, %s9806_s30 }
  0x2f   : > { %p9334_p13 = scmp.ne.s32.totalorder %s9806_s30, %s9333_s21  ;;  %p9342_p4 = scmp.lt.s32.totalorder %s9333_s21, %s9333_s21 }
  0x31   : > { %p9336_p0 = pnand %p9334_p13, %p9833_p8  ;;  %p9343_p7 = por %p9342_p4, %p9341_p5 }
  0x33   : > { %p9337_p2 = pneg %p9336_p0 }
  0x35   : > { %p9344_p9 = pnand %p9343_p7, %p9337_p2 }
  0x37   : > { %9347 = shalt.err (!%p9344_p9)
}
  0x38   : > { %s12133_s22 = smov 128   ;;  %s12136_s13 = smov 8  }
  0x39   : > { %9164 = dma.hbm_to_vmem [thread:$0]  (!%p9817_p6), %s12198_s4, 2048, %s9806_s30, [#allocation9], %s12133_s22, %s12133_s22, %s12136_s13  }
  0x3a   : > { %s12200_s6 = sld [smem:[#allocation79_spill]] }
  0x40   : > { %s9348_s21 = scalar_lea.hbm %s12200_s6, 2048 }
  0x41   : > { %p9349_p4 = scmp.ne.s32.totalorder %s12200_s6, %s9348_s21  ;;  %p9355_p12 = scmp.lt.u32.totalorder %s9348_s21, %s12200_s6 }
  0x43   : > { %p9351_p10 = pnand %p9349_p4, %p9833_p8 }
  0x45   : > { %p9352_p11 = pneg %p9351_p10 }
  0x47   : > { %p9357_p13 = pnand %p9355_p12, %p9352_p11 }
  0x49   : > { %9360 = shalt.err (!%p9357_p13)
}
  0x4a   : > { %s9361_s30 = scalar_lea.vmem %s9821_s17, 2048  ;;  %p9369_p7 = scmp.lt.s32.totalorder %s9821_s17, %s9821_s17 }
  0x4b   : > { %p9362_p0 = scmp.ne.s32.totalorder %s9821_s17, %s9361_s30  ;;  %p9370_p9 = scmp.lt.s32.totalorder %s9361_s30, %s9361_s30 }
  0x4d   : > { %p9364_p2 = pnand %p9362_p0, %p9833_p8  ;;  %p9371_p4 = por %p9370_p9, %p9369_p7 }
  0x4f   : > { %p9365_p5 = pneg %p9364_p2 }
  0x51   : > { %p9372_p10 = pnand %p9371_p4, %p9365_p5 }
  0x53   : > { %9375 = shalt.err (!%p9372_p10)
}
  0x54   : > { %9170 = dma.hbm_to_vmem [thread:$0]  (!%p9817_p6), %s12200_s6, 2048, %s9821_s17, [#allocation12], %s12133_s22, %s12133_s22, %s12136_s13  }
  0x55   : > { %s12201_s8 = sld [smem:[#allocation80_spill]] }
  0x5b   : > { %s9376_s23 = scalar_lea.hbm %s12201_s8, 2048 }
  0x5c   : > { %p9377_p11 = scmp.ne.s32.totalorder %s12201_s8, %s9376_s23  ;;  %p9383_p0 = scmp.lt.u32.totalorder %s9376_s23, %s12201_s8 }
  0x5e   : > { %p9379_p12 = pnand %p9377_p11, %p9833_p8 }
  0x60   : > { %p9380_p13 = pneg %p9379_p12 }
  0x62   : > { %p9385_p2 = pnand %p9383_p0, %p9380_p13 }
  0x64   : > { %9388 = shalt.err (!%p9385_p2)
}
  0x65   : > { %s9389_s17 = scalar_lea.vmem %s9823_s20, 2048  ;;  %p9397_p4 = scmp.lt.s32.totalorder %s9823_s20, %s9823_s20 }
  0x66   : > { %p9390_p5 = scmp.ne.s32.totalorder %s9823_s20, %s9389_s17  ;;  %p9398_p10 = scmp.lt.s32.totalorder %s9389_s17, %s9389_s17 }
  0x68   : > { %p9392_p7 = pnand %p9390_p5, %p9833_p8  ;;  %p9399_p11 = por %p9398_p10, %p9397_p4 }
  0x6a   : > { %p9393_p9 = pneg %p9392_p7 }
  0x6c   : > { %p9400_p12 = pnand %p9399_p11, %p9393_p9 }
  0x6e   : > { %9403 = shalt.err (!%p9400_p12)
}
  0x6f   : > { %9176 = dma.hbm_to_vmem [thread:$0]  (!%p9817_p6), %s12201_s8, 2048, %s9823_s20, [#allocation15], %s12133_s22, %s12133_s22, %s12136_s13  }
  0x70   : > { %s5606_s10 = sadd.s32 4294967294, %s9692_s28   ;;  %s9911_s11 = sadd.s32 1, %s9692_s28  }
  0x71   : > { %12202 = sst [smem:[#allocation30_spill]] %s9911_s11  ;;  %s72_s12 = sadd.s32 1, %s9688_s27 }
  0x72   : > { %s69_s23 = ssub.s32 %s9692_s28, %s9911_s11  ;;  %p79_p13 = scmp.ne.s32.totalorder %s9688_s27, %s9684_s26 }
  0x73   : > { %p70_p0 = scmp.eq.s32.totalorder %s69_s23, 0  ;;  %p80_p2 = scmp.eq.s32.totalorder %s9692_s28, 0 }
  0x74   : > { %p85_p5 = scmp.ne.s32.totalorder %s9684_s26, %s9680_s25  ;;  %p339_p7 = scmp.eq.s32.totalorder %s9801_s14, 1 }
  0x75   : > { %s9923_s24 = scalar_select %p70_p0, %s9688_s27, %s72_s12  }
  0x76   : > { %p81_p9 = por %p80_p2, %p79_p13  ;;  %p9927_p4 = por %p12140_p1, %p85_p5 }
  0x77   : > { %12203 = sst [smem:[#allocation31_spill]] %s9923_s24  ;;  %p9931_p10 = por %p339_p7, %p79_p13 }
  0x78   : > { %s12204_s20 = scalar_select %p9927_p4, 1, 0 }
  0x79   : > { %s12205_s29 = scalar_select %p9931_p10, 1, 0 }
  0x7a   : > { %p345_p11 = scmp.eq.s32.totalorder %s5606_s10, 1  ;;  %p9203_p12 = scmp.lt.s32.totalorder %s9692_s28, 2 }
  0x7b   : > { %12206 = sst [smem:[#allocation32_spill]] %s12205_s29  ;;  %s12135_s19 = sand.u32 1, %s9688_s27  }
  0x7c   : > { %p9937_p3 = por %p345_p11, %p85_p5  ;;  %s9943_s17 = sshll.u32 %s12135_s19, 7 }
  0x7d   : > { %s9946_s30 = sshll.u32 %s9692_s28, 11  ;;  %p9948_p0 = pnand %p9203_p12, %p81_p9 }
  0x7e   : > { %s12207_s21 = scalar_select %p9937_p3, 1, 0 }
  0x7f   : > { %s12209_s0 = scalar_select %p9948_p0, 1, 0 }
  0x80   : > { %12208 = sst [smem:[#allocation33_spill]] %s12207_s21  ;;  %s498_s12 = sand.u32 1, %s9692_s28  }
  0x81   : > { %s12210_s2 = sld [smem:[#allocation77_spill]]  ;;  %s502_s19 = scalar_lea.vmem [#allocation5], %s9943_s17 }
  0x82   : > { %s509_s13 = sshll.u32 %s502_s19, 4  ;;  %s9962_s4 = scalar_lea.sflag [#allocation6], %s498_s12  ;;  %s9960_s13 = int_to_ptr.vmem [resolvable:$true] %s509_s13 }
  0x83   : > { %p9968_p2 = pneg %p9948_p0 }
  0x85   : > { %s12211_s8 = scalar_select %p9968_p2, 1, 0 }
  0x87   : > { %s9957_s22 = scalar_lea.hbm %s12210_s2, %s9946_s30  ;;  %s9409_s24 = scalar_lea.hbm %s12210_s2, 4096 }
  0x88   : > { %s9404_s6 = scalar_lea.hbm %s9957_s22, 2048  ;;  %p9410_p9 = scmp.lt.u32.totalorder %s9957_s22, %s12210_s2 }
  0x89   : > { %p9405_p13 = scmp.ne.s32.totalorder %s9957_s22, %s9404_s6  ;;  %p9411_p11 = scmp.lt.u32.totalorder %s9409_s24, %s9404_s6 }
  0x8a   : > { %p9413_p1 = scmp.lt.u32.totalorder %s9404_s6, %s9957_s22 }
  0x8b   : > { %p9407_p5 = pnand %p9968_p2, %p9405_p13  ;;  %p9412_p12 = por %p9411_p11, %p9410_p9 }
  0x8d   : > { %p9408_p7 = pneg %p9407_p5  ;;  %p9414_p3 = por %p9413_p1, %p9412_p12 }
  0x8f   : > { %p9415_p10 = pnand %p9414_p3, %p9408_p7 }
  0x91   : > { %9418 = shalt.err (!%p9415_p10)
}
  0x92   : > { %s9419_s12 = scalar_lea.vmem %s9960_s13, 2048  ;;  %s9699_s10 = smov [#allocation5]  }
  0x93   : > { %p9420_p13 = scmp.ne.s32.totalorder %s9960_s13, %s9419_s12  ;;  %s9424_s23 = sshll.u32 %s9699_s10, 4  ;;  %s9425_s23 = int_to_ptr.vmem [resolvable:$false] %s9424_s23 }
  0x94   : > { %s9426_s11 = scalar_lea.vmem %s9425_s23, 4096  ;;  %p9427_p6 = scmp.lt.s32.totalorder %s9960_s13, %s9425_s23 }
  0x95   : > { %p9422_p5 = pnand %p9420_p13, %p9968_p2  ;;  %p9428_p8 = scmp.lt.s32.totalorder %s9426_s11, %s9419_s12 }
  0x97   : > { %p9423_p4 = pneg %p9422_p5  ;;  %p9429_p9 = por %p9428_p8, %p9427_p6 }
  0x99   : > { %p9430_p11 = pnand %p9429_p9, %p9423_p4 }
  0x9b   : > { %9433 = shalt.err (!%p9430_p11)
}
  0x9c   : > { %s12212_s6 = smov 8   ;;  %s12213_s24 = smov 128  }
  0x9d   : > { %9186 = dma.hbm_to_vmem [thread:$0]  (!%p9948_p0), %s9957_s22, 2048, %s9960_s13, %s9962_s4, %s12213_s24, %s12213_s24, %s12212_s6  }
  0x9e   : > { %s9700_s19 = smov [#allocation10]   ;;  %s9701_s10 = smov [#allocation13]  }
  0x9f   : > { %s403_s2 = sshll.u32 %s9700_s19, 4  ;;  %s429_s28 = sshll.u32 %s9701_s10, 4  ;;  %s404_s2 = int_to_ptr.vmem [resolvable:$true] %s403_s2  ;;  %s430_s28 = int_to_ptr.vmem [resolvable:$true] %s429_s28 }
  0xa0   : > { %s9434_s11 = scalar_lea.hbm %s12121_s5, 2048  ;;  %p12214_p3 = scmp.ne.s32.totalorder %s12199_s16, 0 }
  0xa1   : > { %p9435_p1 = scmp.ne.s32.totalorder %s12121_s5, %s9434_s11  ;;  %p9441_p4 = scmp.lt.u32.totalorder %s9434_s11, %s12121_s5 }
  0xa3   : > { %p9437_p6 = pnand %p9435_p1, %p12214_p3 }
  0xa5   : > { %p9438_p8 = pneg %p9437_p6 }
  0xa7   : > { %p9443_p10 = pnand %p9441_p4, %p9438_p8 }
  0xa9   : > { %9446 = shalt.err (!%p9443_p10)
}
  0xaa   : > { %s9447_s22 = scalar_lea.vmem %s404_s2, 2048  ;;  %p9455_p5 = scmp.lt.s32.totalorder %s404_s2, %s404_s2 }
  0xab   : > { %p9448_p7 = scmp.ne.s32.totalorder %s404_s2, %s9447_s22  ;;  %p9456_p9 = scmp.lt.s32.totalorder %s9447_s22, %s9447_s22 }
  0xad   : > { %p9450_p12 = pnand %p9448_p7, %p12214_p3  ;;  %p9457_p11 = por %p9456_p9, %p9455_p5 }
  0xaf   : > { %p9451_p13 = pneg %p9450_p12 }
  0xb1   : > { %p9458_p0 = pnand %p9457_p11, %p9451_p13 }
  0xb3   : > { %9461 = shalt.err (!%p9458_p0)
}
  0xb4   : > { %p12215_p1 = scmp.ne.s32.totalorder %s12197_s18, 0  ;;  %s9462_s21 = scalar_lea.hbm %s12123_s7, 2048 }
  0xb5   : > { %p9463_p6 = scmp.ne.s32.totalorder %s12123_s7, %s9462_s21  ;;  %p9469_p4 = scmp.lt.u32.totalorder %s9462_s21, %s12123_s7 }
  0xb6   : > { %9167 = dma.hbm_to_vmem [thread:$0]  (!%p12215_p1), %s12121_s5, 2048, %s404_s2, [#allocation9], %s12213_s24, %s12213_s24, %s12212_s6  }
  0xb7   : > { %p9465_p0 = pnand %p9463_p6, %p12214_p3 }
  0xb9   : > { %p9466_p8 = pneg %p9465_p0 }
  0xbb   : > { %p9471_p10 = pnand %p9469_p4, %p9466_p8 }
  0xbd   : > { %9474 = shalt.err (!%p9471_p10)
}
  0xbe   : > { %s9475_s11 = scalar_lea.vmem %s430_s28, 2048  ;;  %p9483_p5 = scmp.lt.s32.totalorder %s430_s28, %s430_s28 }
  0xbf   : > { %p9476_p7 = scmp.ne.s32.totalorder %s430_s28, %s9475_s11  ;;  %p9484_p9 = scmp.lt.s32.totalorder %s9475_s11, %s9475_s11 }
  0xc1   : > { %p9478_p12 = pnand %p9476_p7, %p12214_p3  ;;  %p9485_p11 = por %p9484_p9, %p9483_p5 }
  0xc3   : > { %p9479_p13 = pneg %p9478_p12 }
  0xc5   : > { %p9486_p2 = pnand %p9485_p11, %p9479_p13 }
  0xc7   : > { %9489 = shalt.err (!%p9486_p2)
}
  0xc8   : > { %9173 = dma.hbm_to_vmem [thread:$0]  (!%p12215_p1), %s12123_s7, 2048, %s430_s28, [#allocation12], %s12213_s24, %s12213_s24, %s12212_s6  }
  0xc9   : > { %s9702_s25 = smov [#allocation16]   ;;  %s9490_s21 = scalar_lea.hbm %s12125_s9, 2048 }
  0xca   : > { %s455_s14 = sshll.u32 %s9702_s25, 4  ;;  %p9491_p2 = scmp.ne.s32.totalorder %s12125_s9, %s9490_s21  ;;  %s456_s14 = int_to_ptr.vmem [resolvable:$true] %s455_s14 }
  0xcb   : > { %p9497_p8 = scmp.lt.u32.totalorder %s9490_s21, %s12125_s9 }
  0xcc   : > { %p9493_p6 = pnand %p9491_p2, %p12214_p3 }
  0xce   : > { %p9494_p0 = pneg %p9493_p6 }
  0xd0   : > { %p9499_p4 = pnand %p9497_p8, %p9494_p0 }
  0xd2   : > { %9502 = shalt.err (!%p9499_p4)
}
  0xd3   : > { %s9503_s28 = scalar_lea.vmem %s456_s14, 2048  ;;  %p9511_p13 = scmp.lt.s32.totalorder %s456_s14, %s456_s14 }
  0xd4   : > { %p9504_p10 = scmp.ne.s32.totalorder %s456_s14, %s9503_s28  ;;  %p9512_p5 = scmp.lt.s32.totalorder %s9503_s28, %s9503_s28 }
  0xd6   : > { %p9506_p7 = pnand %p9504_p10, %p12214_p3  ;;  %p9513_p9 = por %p9512_p5, %p9511_p13 }
  0xd8   : > { %p9507_p12 = pneg %p9506_p7 }
  0xda   : > { %p9514_p11 = pnand %p9513_p9, %p9507_p12 }
  0xdc   : > { %9517 = shalt.err (!%p9514_p11)
}
  0xdd   : > { %9179 = dma.hbm_to_vmem [thread:$0]  (!%p12215_p1), %s12125_s9, 2048, %s456_s14, [#allocation15], %s12213_s24, %s12213_s24, %s12212_s6  }
  0xde   : > { %s10062_s25 = scalar_lea.hbm %s12117_s1, %s9946_s30  ;;  %s481_s18 = scalar_lea.vmem [#allocation2], %s9943_s17 }
  0xdf   : > { %s488_s13 = sshll.u32 %s481_s18, 4  ;;  %s12216_s29 = sand.u32 1, %s9688_s27   ;;  %s10065_s13 = int_to_ptr.vmem [resolvable:$true] %s488_s13 }
  0xe0   : > { %s10069_s21 = scalar_lea.sflag [#allocation3], %s12216_s29  ;;  %s9518_s19 = scalar_lea.hbm %s10062_s25, 2048 }
  0xe1   : > { %p9519_p3 = scmp.ne.s32.totalorder %s10062_s25, %s9518_s19  ;;  %p12217_p2 = scmp.ne.s32.totalorder %s12211_s8, 0 }
  0xe2   : > { %s9523_s23 = scalar_lea.hbm %s12117_s1, 4096  ;;  %p9524_p0 = scmp.lt.u32.totalorder %s10062_s25, %s12117_s1 }
  0xe3   : > { %p9521_p1 = pnand %p9519_p3, %p12217_p2  ;;  %p9525_p8 = scmp.lt.u32.totalorder %s9523_s23, %s9518_s19 }
  0xe4   : > { %p9527_p10 = scmp.lt.u32.totalorder %s9518_s19, %s10062_s25 }
  0xe5   : > { %p9522_p6 = pneg %p9521_p1  ;;  %p9526_p4 = por %p9525_p8, %p9524_p0 }
  0xe7   : > { %p9528_p7 = por %p9527_p10, %p9526_p4 }
  0xe9   : > { %p9529_p12 = pnand %p9528_p7, %p9522_p6 }
  0xeb   : > { %9532 = shalt.err (!%p9529_p12)
}
  0xec   : > { %s9533_s11 = scalar_lea.vmem %s10065_s13, 2048  ;;  %s9703_s2 = smov [#allocation2]  }
  0xed   : > { %p9534_p13 = scmp.ne.s32.totalorder %s10065_s13, %s9533_s11  ;;  %s9538_s16 = sshll.u32 %s9703_s2, 4  ;;  %s9539_s16 = int_to_ptr.vmem [resolvable:$false] %s9538_s16 }
  0xee   : > { %s9540_s22 = scalar_lea.vmem %s9539_s16, 4096  ;;  %p9541_p11 = scmp.lt.s32.totalorder %s10065_s13, %s9539_s16 }
  0xef   : > { %p9536_p5 = pnand %p9534_p13, %p12217_p2  ;;  %p9542_p3 = scmp.lt.s32.totalorder %s9540_s22, %s9533_s11 }
  0xf1   : > { %p9537_p9 = pneg %p9536_p5  ;;  %p9543_p1 = por %p9542_p3, %p9541_p11 }
  0xf3   : > { %p9544_p0 = pnand %p9543_p1, %p9537_p9 }
  0xf5   : > { %9547 = shalt.err (!%p9544_p0)
}
  0xf6   : > { %p12218_p6 = scmp.ne.s32.totalorder %s12209_s0, 0  ;;  %s10100_s19 = scalar_lea.hbm %s12119_s3, %s9946_s30 }
  0xf7   : > { %s523_s14 = scalar_lea.vmem [#allocation7], %s9943_s17  ;;  %s9548_s23 = scalar_lea.hbm %s10100_s19, 2048 }
  0xf8   : > { %9183 = dma.hbm_to_vmem [thread:$0]  (!%p12218_p6), %s10062_s25, 2048, %s10065_s13, %s10069_s21, %s12213_s24, %s12213_s24, %s12212_s6  }
  0xf9   : > { %s530_s10 = sshll.u32 %s523_s14, 4  ;;  %p9549_p8 = scmp.ne.s32.totalorder %s10100_s19, %s9548_s23  ;;  %s10103_s10 = int_to_ptr.vmem [resolvable:$true] %s530_s10 }
  0xfa   : > { %s9553_s13 = scalar_lea.hbm %s12119_s3, 4096  ;;  %p9554_p7 = scmp.lt.u32.totalorder %s10100_s19, %s12119_s3 }
  0xfb   : > { %p9551_p4 = pnand %p9549_p8, %p12217_p2  ;;  %p9555_p12 = scmp.lt.u32.totalorder %s9553_s13, %s9548_s23 }
  0xfc   : > { %p9557_p5 = scmp.lt.u32.totalorder %s9548_s23, %s10100_s19 }
  0xfd   : > { %p9552_p10 = pneg %p9551_p4  ;;  %p9556_p13 = por %p9555_p12, %p9554_p7 }
  0xff   : > { %p9558_p9 = por %p9557_p5, %p9556_p13 }
 0x101   : > { %p9559_p11 = pnand %p9558_p9, %p9552_p10 }
 0x103   : > { %9562 = shalt.err (!%p9559_p11)
}
 0x104   : > { %s9563_s17 = scalar_lea.vmem %s10103_s10, 2048  ;;  %s9704_s28 = smov [#allocation7]  }
 0x105   : > { %p9564_p3 = scmp.ne.s32.totalorder %s10103_s10, %s9563_s17  ;;  %s9568_s11 = sshll.u32 %s9704_s28, 4  ;;  %s9569_s11 = int_to_ptr.vmem [resolvable:$false] %s9568_s11 }
 0x106   : > { %s9570_s2 = scalar_lea.vmem %s9569_s11, 4096  ;;  %p9571_p8 = scmp.lt.s32.totalorder %s10103_s10, %s9569_s11 }
 0x107   : > { %p9566_p1 = pnand %p9564_p3, %p12217_p2  ;;  %p9572_p4 = scmp.lt.s32.totalorder %s9570_s2, %s9563_s17 }
 0x109   : > { %p9567_p0 = pneg %p9566_p1  ;;  %p9573_p7 = por %p9572_p4, %p9571_p8 }
 0x10b   : > { %p9574_p12 = pnand %p9573_p7, %p9567_p0 }
 0x10d   : > { %9577 = shalt.err (!%p9574_p12)
}
 0x10e   : > { %9189 = dma.hbm_to_vmem [thread:$0]  (!%p12218_p6), %s10100_s19, 2048, %s10103_s10, %s9962_s4, %s12213_s24, %s12213_s24, %s12212_s6  }
 0x10f   : > { %p12219_p2 = scmp.ne.s32.totalorder %s12196_s15, 0 }
 0x111   : > { %556 = sbr.rel (%p12219_p2) target bundleno = 2321 (0x911), region = 68 }
 0x118   : > { %s10133_s8 = sand.u32 1, %s9684_s26   ;;  %p12220_p10 = scmp.ne.s32.totalorder %s12204_s20, 0 }
 0x119   : > { %s10136_s16 = sshll.u32 %s10133_s8, 7  ;;  %s559_s0 = scalar_lea.sflag [#allocation3], %s10133_s8 }
 0x11a   : > { %s10140_s22 = scalar_lea.vmem [#allocation2], %s10136_s16 }
 0x11b   : > { %9651 = dma.done.wait (%p12220_p10), %s559_s0, 2048  }
 0x11c   : > { %9653 = vsyncadd (%p12220_p10), %s559_s0, 4294965248  ;;  %s12221_s4 = sld [smem:[#allocation29_spill]]  ;;  %s10148_s24 = scalar_lea.vmem [#allocation5], %s10136_s16 }
 0x122   : > { %s567_s15 = sand.u32 1, %s12221_s4  }
 0x123   : > { %s568_s6 = scalar_lea.sflag [#allocation6], %s567_s15 }
 0x124   : > { %9655 = dma.done.wait (%p12220_p10), %s568_s6, 4096  }
 0x125   : > { %9657 = vsyncadd (%p12220_p10), %s568_s6, 4294963200  ;;  %s10155_s18 = scalar_lea.vmem [#allocation7], %s10136_s16  ;;  %p12222_p6 = scmp.eq.s32.totalorder %s12221_s4, 0 }
 0x127   : > { %9659 = dma.done.wait (%p12222_p6), [#allocation9], 4096   ;;  %p12223_p13 = pmov %p12222_p6 }
 0x128   : > { %p12224_p5 = pmov %p12222_p6 }
 0x129   : > { %9661 = vsyncadd (%p12223_p13), [#allocation9], 4294963200 }
 0x12a   : > { %9663 = dma.done.wait (%p12224_p5), [#allocation12], 4096   ;;  %p12225_p9 = pmov %p12224_p5 }
 0x12b   : > { %p12226_p11 = pmov %p12224_p5 }
 0x12c   : > { %9665 = vsyncadd (%p12225_p9), [#allocation12], 4294963200 }
 0x12d   : > { %9667 = dma.done.wait (%p12226_p11), [#allocation15], 4096   ;;  %p12227_p3 = pmov %p12224_p5 }
 0x12e   : > { %p675_p1 = scmp.lt.s32.totalorder %s12221_s4, 1  ;;  %s12228_s10 = sld [smem:[#allocation76_spill]]  ;;  %v704_v3 = vld [vmem:[%s10140_s22] sm:$0xff]  ;;  %v705_v4 = vld [vmem:[%s10140_s22 + $0x8] sm:$0xff]  ;;  %v706_v8 = vld [vmem:[%s10140_s22 + $0x10] sm:$0xff] }
 0x12f   : > { %9669 = vsyncadd (%p12227_p3), [#allocation15], 4294963200  ;;  %v10188_v6 = vpack.c.bf16 %v705_v4, %v704_v3  ;;  %v707_v9 = vld [vmem:[%s10140_s22 + $0x18] sm:$0xff]  ;;  %v708_v14 = vld [vmem:[%s10140_s22 + $0x20] sm:$0xff]  ;;  %s12329_s13 = sld [smem:[#allocation81_spill]]  ;;  %s12330_s28 = sld [smem:[#allocation82_spill]] }
 0x130   : > { %s10171_s20 = scalar_select %p675_p1, %s12221_s4, 1  ;;  %v10196_v11 = vpack.c.bf16 %v707_v9, %v706_v8  ;;  %v709_v15 = vld [vmem:[%s10140_s22 + $0x28] sm:$0xff]  ;;  %v710_v20 = vld [vmem:[%s10140_s22 + $0x30] sm:$0xff]  ;;  %v711_v21 = vld [vmem:[%s10140_s22 + $0x38] sm:$0xff] }
 0x131   : > { %8152 = vmatprep.subr.bf16.mxu1 %v10188_v6  ;;  %v10209_v17 = vpack.c.bf16 %v709_v15, %v708_v14  ;;  %v10221_v23 = vpack.c.bf16 %v711_v21, %v710_v20  ;;  %v712_v26 = vld [vmem:[%s10140_s22 + $0x40] sm:$0xff]  ;;  %v713_v27 = vld [vmem:[%s10140_s22 + $0x48] sm:$0xff]  ;;  %v714_v34 = vld [vmem:[%s10140_s22 + $0x50] sm:$0xff]  ;;  %s11938_s2 = scalar_lea.vmem [#allocation17], %s10136_s16  ;;  %s5653_s0 = sshll.u32 %s12221_s4, 11 }
 0x132   : > { %s5651_s29 = sshll.u32 %s10171_s20, 7  ;;  %8154 = vmatpush3.bf16.msra.mxu1 %v10188_v6  ;;  %v10227_v28 = vld [vmem:[#allocation8] sm:$0xff]  ;;  %v10238_v31 = vpack.c.bf16 %v713_v27, %v712_v26  ;;  %v715_v35 = vld [vmem:[%s10140_s22 + $0x58] sm:$0xff]  ;;  %v717_v41 = vld [vmem:[%s10140_s22 + $0x68] sm:$0xff]  ;;  %s12331_s15 = sld [smem:[#allocation32_spill]] }
 0x133   : > { %8156 = vmatprep.subr.bf16.mxu1 %v10196_v11  ;;  %v10229_v29 = vld [vmem:[#allocation10] sm:$0xff]  ;;  %6583 = vmatprep.mubr.f32.mxu0 %v10227_v28  ;;  %v10251_v37 = vpack.c.bf16 %v715_v35, %v714_v34  ;;  %v718_v46 = vld [vmem:[%s10140_s22 + $0x70] sm:$0xff]  ;;  %v719_v47 = vld [vmem:[%s10140_s22 + $0x78] sm:$0xff]  ;;  %s9706_s14 = smov [#allocation17]  }
 0x134   : > { %s10179_s23 = scalar_lea.vmem %s12228_s10, %s5651_s29  ;;  %6639 = vmatprep.mubr.f32.mxu1 %v10229_v29  ;;  %v716_v40 = vld [vmem:[%s10140_s22 + $0x60] sm:$0xff]  ;;  %v10275_v49 = vpack.c.bf16 %v719_v47, %v718_v46  ;;  %v10280_v50 = vld [vmem:[#allocation10 + $0x8] sm:$0xff]  ;;  %v10292_v53 = vld [vmem:[#allocation8 + $0x10] sm:$0xff]  ;;  %s5352_s22 = sshll.u32 %s11938_s2, 4  ;;  %s11994_s22 = int_to_ptr.vmem [resolvable:$true] %s5352_s22 }
 0x135   : > { %v688_v0 = vld [vmem:[%s10179_s23] sm:$0xff]  ;;  %v689_v1 = vld [vmem:[%s10179_s23 + $0x8] sm:$0xff]  ;;  %v690_v5 = vld [vmem:[%s10179_s23 + $0x10] sm:$0xff]  ;;  %v10263_v43 = vpack.c.bf16 %v717_v41, %v716_v40  ;;  %v10285_v51 = vpack.c.bf16 %v10280_v50, %v10229_v29  ;;  %s682_s21 = scalar_lea.vmem %s12329_s13, %s10171_s20  ;;  %s11852_s11 = scalar_lea.vmem %s12330_s28, %s5651_s29 }
 0x136   : > { %v10183_v2 = vpack.c.bf16 %v689_v1, %v688_v0  ;;  %v691_v7 = vld [vmem:[%s10179_s23 + $0x18] sm:$0xff]  ;;  %v692_v12 = vld [vmem:[%s10179_s23 + $0x20] sm:$0xff]  ;;  %v693_v13 = vld [vmem:[%s10179_s23 + $0x28] sm:$0xff]  ;;  %8158 = vmatpush3.bf16.msra.mxu1 %v10196_v11  ;;  %s5334_s29 = scalar_lea.sflag [#allocation4], %s10133_s8  ;;  %s9578_s19 = scalar_lea.vmem %s11994_s22, 2048 }
 0x137   : > { %v10194_v10 = vpack.c.bf16 %v691_v7, %v690_v5  ;;  %v10206_v16 = vpack.c.bf16 %v693_v13, %v692_v12  ;;  %v694_v18 = vld [vmem:[%s10179_s23 + $0x30] sm:$0xff]  ;;  %v695_v19 = vld [vmem:[%s10179_s23 + $0x38] sm:$0xff]  ;;  %8160 = vmatprep.subr.bf16.mxu1 %v10209_v17  ;;  %v696_v24 = vld [vmem:[%s10179_s23 + $0x40] sm:$0xff]  ;;  %p9579_p0 = scmp.ne.s32.totalorder %s11994_s22, %s9578_s19  ;;  %s9582_s10 = sshll.u32 %s9706_s14, 4  ;;  %s9583_s10 = int_to_ptr.vmem [resolvable:$false] %s9582_s10 }
 0x138   : > { %8120 = vmatprep.subr.bf16.mxu0 %v10183_v2  ;;  %v10218_v22 = vpack.c.bf16 %v695_v19, %v694_v18  ;;  %v697_v25 = vld [vmem:[%s10179_s23 + $0x48] sm:$0xff]  ;;  %v698_v32 = vld [vmem:[%s10179_s23 + $0x50] sm:$0xff]  ;;  %v699_v33 = vld [vmem:[%s10179_s23 + $0x58] sm:$0xff]  ;;  %p12333_p8 = scmp.ne.s32.totalorder %s12331_s15, 0  ;;  %p9585_p12 = scmp.lt.s32.totalorder %s11994_s22, %s9583_s10 }
 0x139   : > { %8122 = vmatpush3.bf16.msra.mxu0 %v10183_v2  ;;  %v10235_v30 = vpack.c.bf16 %v697_v25, %v696_v24  ;;  %v10248_v36 = vpack.c.bf16 %v699_v33, %v698_v32  ;;  %v700_v38 = vld [vmem:[%s10179_s23 + $0x60] sm:$0xff]  ;;  %v701_v39 = vld [vmem:[%s10179_s23 + $0x68] sm:$0xff]  ;;  %v702_v44 = vld [vmem:[%s10179_s23 + $0x70] sm:$0xff] }
 0x13a   : > { %8124 = vmatprep.subr.bf16.mxu0 %v10194_v10  ;;  %8162 = vmatpush3.bf16.msra.mxu1 %v10209_v17  ;;  %v10260_v42 = vpack.c.bf16 %v701_v39, %v700_v38  ;;  %v703_v45 = vld [vmem:[%s10179_s23 + $0x78] sm:$0xff]  ;;  %v10288_v52 = vld [vmem:[#allocation8 + $0x8] sm:$0xff]  ;;  %v10294_v54 = vld [vmem:[#allocation10 + $0x10] sm:$0xff]  ;;  %p9580_p4 = pnand %p9579_p0, %p12333_p8  ;;  %s9584_s23 = scalar_lea.vmem %s9583_s10, 4096 }
 0x13b   : > { %8164 = vmatprep.subr.bf16.mxu1 %v10221_v23  ;;  %v10272_v48 = vpack.c.bf16 %v703_v45, %v702_v44  ;;  %v10300_v55 = vld [vmem:[#allocation8 + $0x18] sm:$0xff]  ;;  %v10307_v57 = vld [vmem:[#allocation8 + $0x20] sm:$0xff]  ;;  %v10318_v60 = vld [vmem:[#allocation8 + $0x28] sm:$0xff]  ;;  %p9586_p2 = scmp.lt.s32.totalorder %s9584_s23, %s9578_s19 }
 0x13c   : > { %v10304_v56 = vld [vmem:[#allocation10 + $0x18] sm:$0xff]  ;;  %v10309_v58 = vld [vmem:[#allocation10 + $0x20] sm:$0xff]  ;;  %v10322_v61 = vld [vmem:[#allocation10 + $0x28] sm:$0xff]  ;;  %v10465_v26 = vpack.c.bf16 %v10318_v60, %v10307_v57  ;;  %p9581_p7 = pneg %p9580_p4 }
 0x13d   : > { %8126 = vmatpush3.bf16.msra.mxu0 %v10194_v10  ;;  %v10314_v59 = vpack.c.bf16 %v10304_v56, %v10294_v54  ;;  %v10325_v62 = vld [vmem:[#allocation8 + $0x30] sm:$0xff]  ;;  %v10334_v0 = vld [vmem:[#allocation8 + $0x38] sm:$0xff]  ;;  %v10343_v3 = vld [vmem:[#allocation10 + $0x40] sm:$0xff]  ;;  %v10347_v4 = vpack.c.bf16 %v10322_v61, %v10309_v58  ;;  %p9587_p10 = por %p9586_p2, %p9585_p12 }
 0x13e   : > { %8128 = vmatprep.subr.bf16.mxu0 %v10206_v16  ;;  %8166 = vmatpush3.bf16.msra.mxu1 %v10221_v23  ;;  %v10327_v63 = vld [vmem:[#allocation10 + $0x30] sm:$0xff]  ;;  %v10338_v1 = vld [vmem:[#allocation10 + $0x38] sm:$0xff]  ;;  %v10352_v5 = vld [vmem:[#allocation8 + $0x48] sm:$0xff]  ;;  %v10475_v27 = vpack.c.bf16 %v10334_v0, %v10325_v62 }
 0x13f   : > { %8168 = vmatprep.subr.bf16.mxu1 %v10238_v31  ;;  %v10356_v7 = vld [vmem:[#allocation10 + $0x48] sm:$0xff]  ;;  %v10359_v8 = vld [vmem:[#allocation8 + $0x50] sm:$0xff]  ;;  %v779_v12 = vld [vmem:[#allocation10 + $0x58] sm:$0xff]  ;;  %v10377_v15 = vpack.c.bf16 %v10338_v1, %v10327_v63  ;;  %p9588_p6 = pnand %p9587_p10, %p9581_p7 }
 0x140   : > { %v10361_v9 = vld [vmem:[#allocation10 + $0x50] sm:$0xff]  ;;  %v10373_v13 = vld [vmem:[#allocation8 + $0x60] sm:$0xff]  ;;  %v781_v18 = vld [vmem:[#allocation10 + $0x68] sm:$0xff]  ;;  %v10397_v24 = vpack.c.bf16 %v10356_v7, %v10343_v3 }
 0x141   : > { %8130 = vmatpush3.bf16.msra.mxu0 %v10206_v16  ;;  %v780_v14 = vld [vmem:[#allocation10 + $0x60] sm:$0xff]  ;;  %v10385_v19 = vld [vmem:[#allocation8 + $0x70] sm:$0xff]  ;;  %v10391_v21 = vld [vmem:[#allocation8 + $0x78] sm:$0xff]  ;;  %v10410_v25 = vpack.c.bf16 %v779_v12, %v10361_v9 }
 0x142   : > { %8132 = vmatprep.subr.bf16.mxu0 %v10218_v22  ;;  %8170 = vmatpush3.bf16.msra.mxu1 %v10238_v31  ;;  %v782_v20 = vld [vmem:[#allocation10 + $0x70] sm:$0xff] }
 0x143   : > { %8172 = vmatprep.subr.bf16.mxu1 %v10251_v37 }
 0x145   : > { %8134 = vmatpush3.bf16.msra.mxu0 %v10218_v22 }
 0x146   : > { %8136 = vmatprep.subr.bf16.mxu0 %v10235_v30  ;;  %8174 = vmatpush3.bf16.msra.mxu1 %v10251_v37 }
 0x147   : > { %8176 = vmatprep.subr.bf16.mxu1 %v10263_v43 }
 0x149   : > { %8138 = vmatpush3.bf16.msra.mxu0 %v10235_v30 }
 0x14a   : > { %8140 = vmatprep.subr.bf16.mxu0 %v10248_v36  ;;  %8178 = vmatpush3.bf16.msra.mxu1 %v10263_v43 }
 0x14b   : > { %8180 = vmatprep.subr.bf16.mxu1 %v10275_v49 }
 0x14d   : > { %8142 = vmatpush3.bf16.msra.mxu0 %v10248_v36 }
 0x14e   : > { %8144 = vmatprep.subr.bf16.mxu0 %v10260_v42  ;;  %8182 = vmatpush3.bf16.msra.mxu1 %v10275_v49 }
 0x14f   : > { %8248 = vmatprep.subr.bf16.mxu1 %v10285_v51 }
 0x151   : > { %8146 = vmatpush3.bf16.msra.mxu0 %v10260_v42  ;;  %6640 = vmatmul.mubr.f32.vlgmr.msra.gmra.mrb[0].mxu1 %v10280_v50 }
 0x152   : > { %8148 = vmatprep.subr.bf16.mxu0 %v10272_v48  ;;  %6642 = vmatprep.mubr.f32.mxu1 %v10294_v54 }
 0x155   : > { %8150 = vmatpush3.bf16.msra.mxu0 %v10272_v48  ;;  %6643 = vmatmul.mubr.f32.gmra.mrb[2].mxu1 %v10304_v56 }
 0x156   : > { %8184 = vmatprep.subr.bf16.mxu0 %v10183_v2  ;;  %6645 = vmatprep.mubr.f32.mxu1 %v10309_v58 }
 0x157   : > { %8250 = vmatpush3.bf16.xpose.msra.mxu1 %v10285_v51 }
 0x158   : > { %6584 = vmatmul.mubr.f32.vlgmr.msra.gmra.mrb[0].mxu0 %v10288_v52  ;;  %8252 = vmatprep.subr.bf16.mxu1 %v10314_v59 }
 0x159   : > { %8186 = vmatpush3.bf16.msra.mxu0 %v10183_v2  ;;  %6586 = vmatprep.mubr.f32.mxu0 %v10292_v53  ;;  %v10341_v2 = vld [vmem:[#allocation8 + $0x40] sm:$0xff] }
 0x15a   : > { %8188 = vmatprep.subr.bf16.mxu0 %v10194_v10  ;;  %6646 = vmatmul.mubr.f32.gmra.mrb[4].mxu1 %v10322_v61 }
 0x15b   : > { %6648 = vmatprep.mubr.f32.mxu1 %v10327_v63 }
 0x15c   : > { %6587 = vmatmul.mubr.f32.gmra.mrb[2].mxu0 %v10300_v55 }
 0x15d   : > { %8190 = vmatpush3.bf16.msra.mxu0 %v10194_v10  ;;  %6589 = vmatprep.mubr.f32.mxu0 %v10307_v57  ;;  %v10368_v10 = vld [vmem:[#allocation8 + $0x58] sm:$0xff] }
 0x15e   : > { %8192 = vmatprep.subr.bf16.mxu0 %v10206_v16  ;;  %6649 = vmatmul.mubr.f32.gmra.mrb[6].mxu1 %v10338_v1 }
 0x15f   : > { %6651 = vmatprep.mubr.f32.mxu1 %v10343_v3  ;;  %8254 = vmatpush3.bf16.xpose.msra.mxu1 %v10314_v59 }
 0x160   : > { %6590 = vmatmul.mubr.f32.gmra.mrb[4].mxu0 %v10318_v60  ;;  %8256 = vmatprep.subr.bf16.mxu1 %v10347_v4 }
 0x161   : > { %8194 = vmatpush3.bf16.msra.mxu0 %v10206_v16  ;;  %6592 = vmatprep.mubr.f32.mxu0 %v10325_v62  ;;  %v10381_v16 = vld [vmem:[#allocation8 + $0x68] sm:$0xff] }
 0x162   : > { %8196 = vmatprep.subr.bf16.mxu0 %v10218_v22  ;;  %6652 = vmatmul.mubr.f32.gmra.mrb[8].mxu1 %v10356_v7 }
 0x163   : > { %6654 = vmatprep.mubr.f32.mxu1 %v10361_v9 }
 0x164   : > { %6593 = vmatmul.mubr.f32.gmra.mrb[6].mxu0 %v10334_v0 }
 0x165   : > { %8198 = vmatpush3.bf16.msra.mxu0 %v10218_v22  ;;  %6595 = vmatprep.mubr.f32.mxu0 %v10341_v2  ;;  %v783_v22 = vld [vmem:[#allocation10 + $0x78] sm:$0xff] }
 0x166   : > { %8200 = vmatprep.subr.bf16.mxu0 %v10235_v30  ;;  %6655 = vmatmul.mubr.f32.gmra.mrb[10].mxu1 %v779_v12 }
 0x167   : > { %6657 = vmatprep.mubr.f32.mxu1 %v780_v14  ;;  %8258 = vmatpush3.bf16.xpose.msra.mxu1 %v10347_v4 }
 0x168   : > { %6596 = vmatmul.mubr.f32.gmra.mrb[8].mxu0 %v10352_v5  ;;  %8260 = vmatprep.subr.bf16.mxu1 %v10377_v15 }
 0x169   : > { %8202 = vmatpush3.bf16.msra.mxu0 %v10235_v30  ;;  %6598 = vmatprep.mubr.f32.mxu0 %v10359_v8  ;;  %v10498_v30 = vpack.c.bf16 %v10381_v16, %v10373_v13 }
 0x16a   : > { %8204 = vmatprep.subr.bf16.mxu0 %v10248_v36  ;;  %6658 = vmatmul.mubr.f32.gmra.mrb[12].mxu1 %v781_v18 }
 0x16b   : > { %6660 = vmatprep.mubr.f32.mxu1 %v782_v20 }
 0x16c   : > { %6599 = vmatmul.mubr.f32.gmra.mrb[10].mxu0 %v10368_v10 }
 0x16d   : > { %8206 = vmatpush3.bf16.msra.mxu0 %v10248_v36  ;;  %6601 = vmatprep.mubr.f32.mxu0 %v10373_v13 }
 0x16e   : > { %8208 = vmatprep.subr.bf16.mxu0 %v10260_v42  ;;  %6661 = vmatmul.mubr.f32.gmra.mrb[14].mxu1 %v783_v22 }
 0x16f   : > { %8262 = vmatpush3.bf16.xpose.msra.mxu1 %v10377_v15 }
 0x170   : > { %6602 = vmatmul.mubr.f32.gmra.mrb[12].mxu0 %v10381_v16  ;;  %8264 = vmatprep.subr.bf16.mxu1 %v10397_v24 }
 0x171   : > { %8210 = vmatpush3.bf16.msra.mxu0 %v10260_v42  ;;  %6604 = vmatprep.mubr.f32.mxu0 %v10385_v19 }
 0x172   : > { %8212 = vmatprep.subr.bf16.mxu0 %v10272_v48 }
 0x174   : > { %6605 = vmatmul.mubr.f32.gmra.mrb[14].mxu0 %v10391_v21 }
 0x175   : > { %8214 = vmatpush3.bf16.msra.mxu0 %v10272_v48  ;;  %6695 = vmatprep.mubr.f32.mxu0 %v10229_v29  ;;  %v10492_v29 = vpack.c.bf16 %v10368_v10, %v10359_v8 }
 0x176   : > { %8216 = vmatprep.subr.bf16.mxu0 %v10188_v6 }
 0x177   : > { %8266 = vmatpush3.bf16.xpose.msra.mxu1 %v10397_v24 }
 0x178   : > { %6696 = vmatmul.mubr.f32.vlgmr.msra.gmra.mrb[16].mxu0 %v10280_v50  ;;  %8268 = vmatprep.subr.bf16.mxu1 %v10410_v25 }
 0x179   : > { %8218 = vmatpush3.bf16.msra.mxu0 %v10188_v6  ;;  %6698 = vmatprep.mubr.f32.mxu0 %v10294_v54  ;;  %v10422_v6 = vpack.c.bf16 %v781_v18, %v780_v14 }
 0x17a   : > { %8220 = vmatprep.subr.bf16.mxu0 %v10196_v11 }
 0x17c   : > { %6699 = vmatmul.mubr.f32.gmra.mrb[18].mxu0 %v10304_v56 }
 0x17d   : > { %8222 = vmatpush3.bf16.msra.mxu0 %v10196_v11  ;;  %6701 = vmatprep.mubr.f32.mxu0 %v10309_v58  ;;  %v10434_v11 = vpack.c.bf16 %v783_v22, %v782_v20 }
 0x17e   : > { %8224 = vmatprep.subr.bf16.mxu0 %v10209_v17 }
 0x17f   : > { %8270 = vmatpush3.bf16.xpose.msra.mxu1 %v10410_v25 }
 0x180   : > { %6702 = vmatmul.mubr.f32.gmra.mrb[20].mxu0 %v10322_v61  ;;  %8272 = vmatprep.subr.bf16.mxu1 %v10422_v6 }
 0x181   : > { %8226 = vmatpush3.bf16.msra.mxu0 %v10209_v17  ;;  %6704 = vmatprep.mubr.f32.mxu0 %v10327_v63  ;;  %v10443_v17 = vpack.c.bf16 %v10288_v52, %v10227_v28 }
 0x182   : > { %8228 = vmatprep.subr.bf16.mxu0 %v10221_v23 }
 0x184   : > { %6705 = vmatmul.mubr.f32.gmra.mrb[22].mxu0 %v10338_v1 }
 0x185   : > { %8230 = vmatpush3.bf16.msra.mxu0 %v10221_v23  ;;  %6707 = vmatprep.mubr.f32.mxu0 %v10343_v3  ;;  %v10455_v23 = vpack.c.bf16 %v10300_v55, %v10292_v53 }
 0x186   : > { %8232 = vmatprep.subr.bf16.mxu0 %v10238_v31 }
 0x187   : > { %8274 = vmatpush3.bf16.xpose.msra.mxu1 %v10422_v6 }
 0x188   : > { %6708 = vmatmul.mubr.f32.gmra.mrb[24].mxu0 %v10356_v7  ;;  %8276 = vmatprep.subr.bf16.mxu1 %v10434_v11 }
 0x189   : > { %8234 = vmatpush3.bf16.msra.mxu0 %v10238_v31  ;;  %6710 = vmatprep.mubr.f32.mxu0 %v10361_v9  ;;  %v10504_v31 = vpack.c.bf16 %v10391_v21, %v10385_v19 }
 0x18a   : > { %8236 = vmatprep.subr.bf16.mxu0 %v10251_v37 }
 0x18c   : > { %6711 = vmatmul.mubr.f32.gmra.mrb[26].mxu0 %v779_v12 }
 0x18d   : > { %8238 = vmatpush3.bf16.msra.mxu0 %v10251_v37  ;;  %6713 = vmatprep.mubr.f32.mxu0 %v780_v14 }
 0x18e   : > { %8240 = vmatprep.subr.bf16.mxu0 %v10263_v43 }
 0x18f   : > { %8278 = vmatpush3.bf16.xpose.msra.mxu1 %v10434_v11 }
 0x190   : > { %6714 = vmatmul.mubr.f32.gmra.mrb[28].mxu0 %v781_v18  ;;  %8280 = vmatprep.subr.bf16.mxu1 %v10443_v17 }
 0x191   : > { %8242 = vmatpush3.bf16.msra.mxu0 %v10263_v43  ;;  %6716 = vmatprep.mubr.f32.mxu0 %v782_v20 }
 0x192   : > { %8244 = vmatprep.subr.bf16.mxu0 %v10275_v49 }
 0x194   : > { %6717 = vmatmul.mubr.f32.gmra.mrb[30].mxu0 %v783_v22 }
 0x195   : > { %8246 = vmatpush3.bf16.msra.mxu0 %v10275_v49  ;;  %6751 = vmatprep.mubr.f32.mxu0 %v10227_v28  ;;  %v10485_v28 = vpack.c.bf16 %v10352_v5, %v10341_v2 }
 0x196   : > { %8312 = vmatprep.subr.bf16.mxu0 %v10443_v17 }
 0x198   : > { %6752 = vmatmul.mubr.f32.vlgmr.msra.gmra.mrb[16].mxu0 %v10288_v52 }
 0x199   : > { %6754 = vmatprep.mubr.f32.mxu0 %v10292_v53 }
 0x19c   : > { %6755 = vmatmul.mubr.f32.gmra.mrb[18].mxu0 %v10300_v55 }
 0x19d   : > { %6757 = vmatprep.mubr.f32.mxu0 %v10307_v57 }
 0x19e   : > { %8314 = vmatpush3.bf16.xpose.msra.mxu0 %v10443_v17 }
 0x19f   : > { %8316 = vmatprep.subr.bf16.mxu0 %v10455_v23 }
 0x1a0   : > { %6758 = vmatmul.mubr.f32.gmra.mrb[20].mxu0 %v10318_v60 }
 0x1a1   : > { %6760 = vmatprep.mubr.f32.mxu0 %v10325_v62 }
 0x1a4   : > { %6761 = vmatmul.mubr.f32.gmra.mrb[22].mxu0 %v10334_v0 }
 0x1a5   : > { %6763 = vmatprep.mubr.f32.mxu0 %v10341_v2 }
 0x1a6   : > { %8318 = vmatpush3.bf16.xpose.msra.mxu0 %v10455_v23 }
 0x1a7   : > { %8320 = vmatprep.subr.bf16.mxu0 %v10465_v26 }
 0x1a8   : > { %6764 = vmatmul.mubr.f32.gmra.mrb[24].mxu0 %v10352_v5 }
 0x1a9   : > { %6766 = vmatprep.mubr.f32.mxu0 %v10359_v8 }
 0x1ac   : > { %6767 = vmatmul.mubr.f32.gmra.mrb[26].mxu0 %v10368_v10 }
 0x1ad   : > { %6769 = vmatprep.mubr.f32.mxu0 %v10373_v13 }
 0x1ae   : > { %8322 = vmatpush3.bf16.xpose.msra.mxu0 %v10465_v26 }
 0x1af   : > { %8324 = vmatprep.subr.bf16.mxu0 %v10475_v27 }
 0x1b0   : > { %6770 = vmatmul.mubr.f32.gmra.mrb[28].mxu0 %v10381_v16 }
 0x1b1   : > { %6772 = vmatprep.mubr.f32.mxu0 %v10385_v19 }
 0x1b4   : > { %6773 = vmatmul.mubr.f32.gmra.mrb[30].mxu0 %v10391_v21 }
 0x1b6   : > { %8326 = vmatpush3.bf16.xpose.msra.mxu0 %v10475_v27 }
 0x1b7   : > { %8328 = vmatprep.subr.bf16.mxu0 %v10485_v28 }
 0x1be   : > { %8330 = vmatpush3.bf16.xpose.msra.mxu0 %v10485_v28 }
 0x1bf   : > { %8332 = vmatprep.subr.bf16.mxu0 %v10492_v29 }
 0x1c6   : > { %8334 = vmatpush3.bf16.xpose.msra.mxu0 %v10492_v29 }
 0x1c7   : > { %8336 = vmatprep.subr.bf16.mxu0 %v10498_v30 }
 0x1ce   : > { %8338 = vmatpush3.bf16.xpose.msra.mxu0 %v10498_v30 }
 0x1cf   : > { %8340 = vmatprep.subr.bf16.mxu0 %v10504_v31 }
 0x1d6   : > { %8342 = vmatpush3.bf16.xpose.msra.mxu0 %v10504_v31 }
 0x1d7   : > { %8344 = vmatprep.subr.bf16.mxu0 %v10285_v51 }
 0x224   : > { %v6641_v33 = vpop.f32.mrb[0].mxu1 }
 0x225   : > { %v995_v36 = vpop.f32.mrb[1].mxu1 }
 0x228   : > { %v6644_v39 = vpop.f32.mrb[2].mxu1 }
 0x229   : > { %v1005_v42 = vpop.f32.mrb[3].mxu1 }
 0x22b   : > { %v6585_v32 = vpop.f32.mrb[0].mxu0 }
 0x22c   : > { %v850_v34 = vpop.f32.mrb[1].mxu0  ;;  %v10510_v35 = vsub.f32 %v6585_v32, %v6641_v33 }
 0x22d   : > { %v10512_v37 = vsub.f32 %v850_v34, %v995_v36  ;;  %v6647_v45 = vpop.f32.mrb[4].mxu1 }
 0x22e   : > { %v1015_v48 = vpop.f32.mrb[5].mxu1 }
 0x22f   : > { %v6588_v38 = vpop.f32.mrb[2].mxu0 }
 0x230   : > { %v860_v40 = vpop.f32.mrb[3].mxu0  ;;  %v10514_v41 = vsub.f32 %v6588_v38, %v6644_v39 }
 0x231   : > { %v10516_v43 = vsub.f32 %v860_v40, %v1005_v42  ;;  %v6650_v52 = vpop.f32.mrb[6].mxu1 }
 0x232   : > { %v1025_v55 = vpop.f32.mrb[7].mxu1 }
 0x233   : > { %v6591_v44 = vpop.f32.mrb[4].mxu0 }
 0x234   : > { %v870_v46 = vpop.f32.mrb[5].mxu0  ;;  %v10518_v47 = vsub.f32 %v6591_v44, %v6647_v45 }
 0x235   : > { %v10520_v49 = vsub.f32 %v870_v46, %v1015_v48  ;;  %v6653_v58 = vpop.f32.mrb[8].mxu1  ;;  %v731_v48 = vld [vmem:[%s10148_s24 + $0x58] sm:$0xff] }
 0x236   : > { %v1035_v62 = vpop.f32.mrb[9].mxu1 }
 0x237   : > { %v6594_v50 = vpop.f32.mrb[6].mxu0 }
 0x238   : > { %v880_v53 = vpop.f32.mrb[7].mxu0  ;;  %v10522_v54 = vsub.f32 %v6594_v50, %v6650_v52  ;;  %v732_v50 = vld [vmem:[%s10148_s24 + $0x60] sm:$0xff]  ;;  %v733_v52 = vld [vmem:[%s10148_s24 + $0x68] sm:$0xff] }
 0x239   : > { %v10524_v56 = vsub.f32 %v880_v53, %v1025_v55  ;;  %v6656_v1 = vpop.f32.mrb[10].mxu1  ;;  %v10641_v53 = vpack.c.bf16 %v733_v52, %v732_v50  ;;  %v735_v55 = vld [vmem:[%s10148_s24 + $0x78] sm:$0xff]  ;;  %v10812_v52 = vld [vmem:[#allocation11 + $0x70] sm:$0xff] }
 0x23a   : > { %v1045_v5 = vpop.f32.mrb[11].mxu1 }
 0x23b   : > { %v6597_v57 = vpop.f32.mrb[8].mxu0 }
 0x23c   : > { %v890_v60 = vpop.f32.mrb[9].mxu0  ;;  %v10526_v61 = vsub.f32 %v6597_v57, %v6653_v58  ;;  %v736_v57 = vld [vmem:[%s10155_s18] sm:$0xff]  ;;  %v737_v58 = vld [vmem:[%s10155_s18 + $0x8] sm:$0xff] }
 0x23d   : > { %v10528_v63 = vsub.f32 %v890_v60, %v1035_v62  ;;  %v6659_v9 = vpop.f32.mrb[12].mxu1  ;;  %v10663_v60 = vld [vmem:[#allocation13] sm:$0xff]  ;;  %v10669_v62 = vpack.c.bf16 %v737_v58, %v736_v57 }
 0x23e   : > { %v1055_v13 = vpop.f32.mrb[13].mxu1 }
 0x23f   : > { %v6600_v0 = vpop.f32.mrb[10].mxu0 }
 0x240   : > { %v900_v2 = vpop.f32.mrb[11].mxu0  ;;  %v10530_v3 = vsub.f32 %v6600_v0, %v6656_v1  ;;  %v739_v0 = vld [vmem:[%s10155_s18 + $0x18] sm:$0xff]  ;;  %v10679_v1 = vld [vmem:[#allocation13 + $0x8] sm:$0xff] }
 0x241   : > { %v10532_v7 = vsub.f32 %v900_v2, %v1045_v5  ;;  %v6662_v18 = vpop.f32.mrb[14].mxu1  ;;  %v10682_v2 = vld [vmem:[#allocation11 + $0x8] sm:$0xff]  ;;  %v10824_v57 = vpack.c.bf16 %v10679_v1, %v10663_v60 }
 0x242   : > { %v1065_v21 = vpop.f32.mrb[15].mxu1 }
 0x243   : > { %v6603_v8 = vpop.f32.mrb[12].mxu0 }
 0x244   : > { %v910_v10 = vpop.f32.mrb[13].mxu0  ;;  %v10534_v12 = vsub.f32 %v6603_v8, %v6659_v9  ;;  %v741_v8 = vld [vmem:[%s10155_s18 + $0x28] sm:$0xff]  ;;  %v10694_v9 = vld [vmem:[#allocation11 + $0x10] sm:$0xff] }
 0x245   : > { %v10536_v14 = vsub.f32 %v910_v10, %v1055_v13  ;;  %v10698_v10 = vld [vmem:[#allocation13 + $0x18] sm:$0xff]  ;;  %v10703_v13 = vld [vmem:[#allocation13 + $0x20] sm:$0xff] }
 0x247   : > { %v6606_v16 = vpop.f32.mrb[14].mxu0 }
 0x248   : > { %v920_v19 = vpop.f32.mrb[15].mxu0  ;;  %v10538_v20 = vsub.f32 %v6606_v16, %v6662_v18  ;;  %v742_v16 = vld [vmem:[%s10155_s18 + $0x30] sm:$0xff]  ;;  %v743_v18 = vld [vmem:[%s10155_s18 + $0x38] sm:$0xff] }
 0x249   : > { %v10540_v22 = vsub.f32 %v920_v19, %v1065_v21  ;;  %v10714_v19 = vld [vmem:[#allocation11 + $0x20] sm:$0xff]  ;;  %v10720_v21 = vld [vmem:[#allocation11 + $0x28] sm:$0xff] }
 0x26b   : > { %v6753_v32 = vpop.f32.mrb[16].mxu0 }
 0x26c   : > { %v1301_v33 = vpop.f32.mrb[17].mxu0 }
 0x26d   : > { %6807 = vmatprep.mubr.f32.mxu1 %v1301_v33  ;;  %6919 = vmatprep.mubr.f32.mxu0 %v1301_v33  ;;  %v744_v33 = vld [vmem:[%s10155_s18 + $0x40] sm:$0xff] }
 0x26e   : > { %6808 = vmatmul.mubr.f32.vlgmr.msra.gmra.mrb[16].mxu1 %v6753_v32  ;;  %6920 = vmatmul.mubr.f32.vlgmr.msra.gmra.mrb[32].mxu0 %v6753_v32  ;;  %v10725_v32 = vpack.c.bf16 %v743_v18, %v742_v16 }
 0x26f   : > { %8282 = vmatpush3.bf16.xpose.msra.mxu1 %v10443_v17  ;;  %8346 = vmatpush3.bf16.xpose.msra.mxu0 %v10285_v51  ;;  %v6756_v34 = vpop.f32.mrb[18].mxu0 }
 0x270   : > { %v1311_v36 = vpop.f32.mrb[19].mxu0  ;;  %8284 = vmatprep.subr.bf16.mxu1 %v10455_v23  ;;  %8348 = vmatprep.subr.bf16.mxu0 %v10314_v59 }
 0x271   : > { %6810 = vmatprep.mubr.f32.mxu1 %v1311_v36  ;;  %6922 = vmatprep.mubr.f32.mxu0 %v1311_v36  ;;  %v10734_v36 = vld [vmem:[#allocation11 + $0x30] sm:$0xff] }
 0x272   : > { %6811 = vmatmul.mubr.f32.gmra.mrb[18].mxu1 %v6756_v34  ;;  %6923 = vmatmul.mubr.f32.gmra.mrb[34].mxu0 %v6756_v34  ;;  %v745_v34 = vld [vmem:[%s10155_s18 + $0x48] sm:$0xff] }
 0x273   : > { %v6759_v38 = vpop.f32.mrb[20].mxu0 }
 0x274   : > { %v1321_v39 = vpop.f32.mrb[21].mxu0 }
 0x275   : > { %6813 = vmatprep.mubr.f32.mxu1 %v1321_v39  ;;  %6925 = vmatprep.mubr.f32.mxu0 %v1321_v39  ;;  %v10740_v39 = vld [vmem:[#allocation11 + $0x38] sm:$0xff] }
 0x276   : > { %6814 = vmatmul.mubr.f32.gmra.mrb[20].mxu1 %v6759_v38  ;;  %6926 = vmatmul.mubr.f32.gmra.mrb[36].mxu0 %v6759_v38  ;;  %v10738_v38 = vld [vmem:[#allocation13 + $0x38] sm:$0xff] }
 0x277   : > { %8286 = vmatpush3.bf16.xpose.msra.mxu1 %v10455_v23  ;;  %8350 = vmatpush3.bf16.xpose.msra.mxu0 %v10314_v59  ;;  %v6762_v51 = vpop.f32.mrb[22].mxu0 }
 0x278   : > { %v1331_v17 = vpop.f32.mrb[23].mxu0  ;;  %8288 = vmatprep.subr.bf16.mxu1 %v10465_v26  ;;  %8352 = vmatprep.subr.bf16.mxu0 %v10347_v4 }
 0x279   : > { %6816 = vmatprep.mubr.f32.mxu1 %v1331_v17  ;;  %6928 = vmatprep.mubr.f32.mxu0 %v1331_v17  ;;  %v10745_v17 = vpack.c.bf16 %v745_v34, %v744_v33 }
 0x27a   : > { %6817 = vmatmul.mubr.f32.gmra.mrb[22].mxu1 %v6762_v51  ;;  %6929 = vmatmul.mubr.f32.gmra.mrb[38].mxu0 %v6762_v51  ;;  %v10743_v51 = vld [vmem:[#allocation13 + $0x40] sm:$0xff] }
 0x27b   : > { %v6765_v40 = vpop.f32.mrb[24].mxu0 }
 0x27c   : > { %v1341_v42 = vpop.f32.mrb[25].mxu0 }
 0x27d   : > { %6819 = vmatprep.mubr.f32.mxu1 %v1341_v42  ;;  %6931 = vmatprep.mubr.f32.mxu0 %v1341_v42  ;;  %v747_v42 = vld [vmem:[%s10155_s18 + $0x58] sm:$0xff] }
 0x27e   : > { %6820 = vmatmul.mubr.f32.gmra.mrb[24].mxu1 %v6765_v40  ;;  %6932 = vmatmul.mubr.f32.gmra.mrb[40].mxu0 %v6765_v40  ;;  %v746_v40 = vld [vmem:[%s10155_s18 + $0x50] sm:$0xff] }
 0x27f   : > { %8290 = vmatpush3.bf16.xpose.msra.mxu1 %v10465_v26  ;;  %8354 = vmatpush3.bf16.xpose.msra.mxu0 %v10347_v4  ;;  %v6768_v59 = vpop.f32.mrb[26].mxu0 }
 0x280   : > { %v1351_v23 = vpop.f32.mrb[27].mxu0  ;;  %8292 = vmatprep.subr.bf16.mxu1 %v10475_v27  ;;  %8356 = vmatprep.subr.bf16.mxu0 %v10377_v15 }
 0x281   : > { %6822 = vmatprep.mubr.f32.mxu1 %v1351_v23  ;;  %6934 = vmatprep.mubr.f32.mxu0 %v1351_v23  ;;  %v10758_v23 = vld [vmem:[#allocation13 + $0x48] sm:$0xff] }
 0x282   : > { %6823 = vmatmul.mubr.f32.gmra.mrb[26].mxu1 %v6768_v59  ;;  %6935 = vmatmul.mubr.f32.gmra.mrb[42].mxu0 %v6768_v59  ;;  %v10754_v59 = vld [vmem:[#allocation11 + $0x40] sm:$0xff] }
 0x283   : > { %v6771_v44 = vpop.f32.mrb[28].mxu0 }
 0x284   : > { %v1361_v45 = vpop.f32.mrb[29].mxu0 }
 0x285   : > { %6825 = vmatprep.mubr.f32.mxu1 %v1361_v45  ;;  %6937 = vmatprep.mubr.f32.mxu0 %v1361_v45  ;;  %v10763_v45 = vld [vmem:[#allocation13 + $0x50] sm:$0xff] }
 0x286   : > { %6826 = vmatmul.mubr.f32.gmra.mrb[28].mxu1 %v6771_v44  ;;  %6938 = vmatmul.mubr.f32.gmra.mrb[44].mxu0 %v6771_v44  ;;  %v10760_v44 = vld [vmem:[#allocation11 + $0x48] sm:$0xff] }
 0x287   : > { %8294 = vmatpush3.bf16.xpose.msra.mxu1 %v10475_v27  ;;  %8358 = vmatpush3.bf16.xpose.msra.mxu0 %v10377_v15  ;;  %v6774_v4 = vpop.f32.mrb[30].mxu0  ;;  %v720_v15 = vld [vmem:[%s10148_s24] sm:$0xff] }
 0x288   : > { %v1371_v26 = vpop.f32.mrb[31].mxu0  ;;  %8296 = vmatprep.subr.bf16.mxu1 %v10485_v28  ;;  %8360 = vmatprep.subr.bf16.mxu0 %v10397_v24 }
 0x289   : > { %6828 = vmatprep.mubr.f32.mxu1 %v1371_v26  ;;  %6940 = vmatprep.mubr.f32.mxu0 %v1371_v26  ;;  %v748_v26 = vld [vmem:[%s10155_s18 + $0x60] sm:$0xff] }
 0x28a   : > { %6829 = vmatmul.mubr.f32.gmra.mrb[30].mxu1 %v6774_v4  ;;  %6941 = vmatmul.mubr.f32.gmra.mrb[46].mxu0 %v6774_v4  ;;  %v10765_v4 = vpack.c.bf16 %v747_v42, %v746_v40 }
 0x28b   : > { %6863 = vmatprep.mubr.f32.mxu1 %v10512_v37  ;;  %6975 = vmatprep.mubr.f32.mxu0 %v10512_v37 }
 0x28f   : > { %8298 = vmatpush3.bf16.xpose.msra.mxu1 %v10485_v28  ;;  %8362 = vmatpush3.bf16.xpose.msra.mxu0 %v10397_v24  ;;  %v721_v24 = vld [vmem:[%s10148_s24 + $0x8] sm:$0xff] }
 0x290   : > { %8300 = vmatprep.subr.bf16.mxu1 %v10492_v29  ;;  %8364 = vmatprep.subr.bf16.mxu0 %v10410_v25  ;;  %v10574_v27 = vpack.c.bf16 %v721_v24, %v720_v15  ;;  %v749_v15 = vld [vmem:[%s10155_s18 + $0x68] sm:$0xff]  ;;  %v10774_v24 = vld [vmem:[#allocation11 + $0x50] sm:$0xff] }
 0x297   : > { %8302 = vmatpush3.bf16.xpose.msra.mxu1 %v10492_v29  ;;  %8366 = vmatpush3.bf16.xpose.msra.mxu0 %v10410_v25  ;;  %v722_v25 = vld [vmem:[%s10148_s24 + $0x10] sm:$0xff]  ;;  %v724_v29 = vld [vmem:[%s10148_s24 + $0x20] sm:$0xff] }
 0x298   : > { %8304 = vmatprep.subr.bf16.mxu1 %v10498_v30  ;;  %8368 = vmatprep.subr.bf16.mxu0 %v10422_v6 }
 0x29f   : > { %8306 = vmatpush3.bf16.xpose.msra.mxu1 %v10498_v30  ;;  %8370 = vmatpush3.bf16.xpose.msra.mxu0 %v10422_v6  ;;  %v723_v6 = vld [vmem:[%s10148_s24 + $0x18] sm:$0xff]  ;;  %v725_v30 = vld [vmem:[%s10148_s24 + $0x28] sm:$0xff] }
 0x2a0   : > { %8308 = vmatprep.subr.bf16.mxu1 %v10504_v31  ;;  %8372 = vmatprep.subr.bf16.mxu0 %v10434_v11  ;;  %v10582_v28 = vpack.c.bf16 %v723_v6, %v722_v25  ;;  %v10778_v25 = vld [vmem:[#allocation13 + $0x58] sm:$0xff] }
 0x2a1   : > { %v10780_v6 = vld [vmem:[#allocation11 + $0x58] sm:$0xff] }
 0x2a7   : > { %8310 = vmatpush3.bf16.xpose.msra.mxu1 %v10504_v31  ;;  %8374 = vmatpush3.bf16.xpose.msra.mxu0 %v10434_v11  ;;  %v10593_v11 = vpack.c.bf16 %v725_v30, %v724_v29  ;;  %v726_v31 = vld [vmem:[%s10148_s24 + $0x30] sm:$0xff]  ;;  %v10783_v29 = vld [vmem:[#allocation13 + $0x60] sm:$0xff]  ;;  %v10785_v30 = vpack.c.bf16 %v749_v15, %v748_v26 }
 0x2a8   : > { %8440 = vmatprep.subr.bf16.mxu0 %v10574_v27  ;;  %8376 = vmatprep.subr.bf16.mxu1 %v10574_v27 }
 0x2ae   : > { %6864 = vmatmul.mubr.f32.vlgmr.msra.gmra.mrb[16].mxu1 %v10510_v35  ;;  %6976 = vmatmul.mubr.f32.vlgmr.msra.gmra.mrb[48].mxu0 %v10510_v35  ;;  %v727_v35 = vld [vmem:[%s10148_s24 + $0x38] sm:$0xff] }
 0x2af   : > { %6866 = vmatprep.mubr.f32.mxu1 %v10516_v43  ;;  %6978 = vmatprep.mubr.f32.mxu0 %v10516_v43  ;;  %v10605_v37 = vpack.c.bf16 %v727_v35, %v726_v31  ;;  %v729_v43 = vld [vmem:[%s10148_s24 + $0x48] sm:$0xff]  ;;  %v750_v31 = vld [vmem:[%s10155_s18 + $0x70] sm:$0xff]  ;;  %v751_v35 = vld [vmem:[%s10155_s18 + $0x78] sm:$0xff] }
 0x2b0   : > { %8442 = vmatpush3.bf16.msra.mxu0 %v10574_v27  ;;  %8378 = vmatpush3.bf16.msra.mxu1 %v10574_v27  ;;  %v10805_v50 = vpack.c.bf16 %v751_v35, %v750_v31 }
 0x2b1   : > { %8444 = vmatprep.subr.bf16.mxu0 %v10582_v28  ;;  %8380 = vmatprep.subr.bf16.mxu1 %v10582_v28 }
 0x2b2   : > { %6867 = vmatmul.mubr.f32.gmra.mrb[18].mxu1 %v10514_v41  ;;  %6979 = vmatmul.mubr.f32.gmra.mrb[50].mxu0 %v10514_v41  ;;  %v728_v41 = vld [vmem:[%s10148_s24 + $0x40] sm:$0xff] }
 0x2b3   : > { %6869 = vmatprep.mubr.f32.mxu1 %v10520_v49  ;;  %6981 = vmatprep.mubr.f32.mxu0 %v10520_v49  ;;  %v10617_v46 = vpack.c.bf16 %v729_v43, %v728_v41  ;;  %v10794_v41 = vld [vmem:[#allocation11 + $0x60] sm:$0xff]  ;;  %v10798_v43 = vld [vmem:[#allocation13 + $0x68] sm:$0xff] }
 0x2b4   : > { %8446 = vmatpush3.bf16.msra.mxu0 %v10582_v28  ;;  %8382 = vmatpush3.bf16.msra.mxu1 %v10582_v28 }
 0x2b5   : > { %8448 = vmatprep.subr.bf16.mxu0 %v10593_v11  ;;  %8384 = vmatprep.subr.bf16.mxu1 %v10593_v11 }
 0x2b6   : > { %6870 = vmatmul.mubr.f32.gmra.mrb[20].mxu1 %v10518_v47  ;;  %6982 = vmatmul.mubr.f32.gmra.mrb[52].mxu0 %v10518_v47  ;;  %v730_v47 = vld [vmem:[%s10148_s24 + $0x50] sm:$0xff] }
 0x2b7   : > { %6872 = vmatprep.mubr.f32.mxu1 %v10524_v56  ;;  %6984 = vmatprep.mubr.f32.mxu0 %v10524_v56  ;;  %v10629_v49 = vpack.c.bf16 %v731_v48, %v730_v47  ;;  %v10800_v47 = vld [vmem:[#allocation11 + $0x68] sm:$0xff]  ;;  %v10803_v48 = vld [vmem:[#allocation13 + $0x70] sm:$0xff] }
 0x2b8   : > { %8450 = vmatpush3.bf16.msra.mxu0 %v10593_v11  ;;  %8386 = vmatpush3.bf16.msra.mxu1 %v10593_v11 }
 0x2b9   : > { %8452 = vmatprep.subr.bf16.mxu0 %v10605_v37  ;;  %8388 = vmatprep.subr.bf16.mxu1 %v10605_v37 }
 0x2ba   : > { %6873 = vmatmul.mubr.f32.gmra.mrb[22].mxu1 %v10522_v54  ;;  %6985 = vmatmul.mubr.f32.gmra.mrb[54].mxu0 %v10522_v54  ;;  %v734_v54 = vld [vmem:[%s10148_s24 + $0x70] sm:$0xff] }
 0x2bb   : > { %6875 = vmatprep.mubr.f32.mxu1 %v10528_v63  ;;  %6987 = vmatprep.mubr.f32.mxu0 %v10528_v63  ;;  %v10653_v56 = vpack.c.bf16 %v735_v55, %v734_v54  ;;  %v738_v63 = vld [vmem:[%s10155_s18 + $0x10] sm:$0xff]  ;;  %v10816_v54 = vld [vmem:[#allocation13 + $0x78] sm:$0xff] }
 0x2bc   : > { %8454 = vmatpush3.bf16.msra.mxu0 %v10605_v37  ;;  %8390 = vmatpush3.bf16.msra.mxu1 %v10605_v37  ;;  %v10687_v5 = vpack.c.bf16 %v739_v0, %v738_v63  ;;  %v10818_v55 = vld [vmem:[#allocation11 + $0x78] sm:$0xff]  ;;  %v10948_v16 = vpack.c.bf16 %v10816_v54, %v10803_v48 }
 0x2bd   : > { %8456 = vmatprep.subr.bf16.mxu0 %v10617_v46  ;;  %8392 = vmatprep.subr.bf16.mxu1 %v10617_v46 }
 0x2be   : > { %6876 = vmatmul.mubr.f32.gmra.mrb[24].mxu1 %v10526_v61  ;;  %6988 = vmatmul.mubr.f32.gmra.mrb[56].mxu0 %v10526_v61  ;;  %v10666_v61 = vld [vmem:[#allocation11] sm:$0xff] }
 0x2bf   : > { %6878 = vmatprep.mubr.f32.mxu1 %v10532_v7  ;;  %6990 = vmatprep.mubr.f32.mxu0 %v10532_v7  ;;  %v740_v7 = vld [vmem:[%s10155_s18 + $0x20] sm:$0xff]  ;;  %v10828_v58 = vpack.c.bf16 %v10682_v2, %v10666_v61  ;;  %s12332_s18 = sld [smem:[#allocation83_spill]] }
 0x2c0   : > { %8458 = vmatpush3.bf16.msra.mxu0 %v10617_v46  ;;  %8394 = vmatpush3.bf16.msra.mxu1 %v10617_v46 }
 0x2c1   : > { %8460 = vmatprep.subr.bf16.mxu0 %v10629_v49  ;;  %8396 = vmatprep.subr.bf16.mxu1 %v10629_v49 }
 0x2c2   : > { %6879 = vmatmul.mubr.f32.gmra.mrb[26].mxu1 %v10530_v3  ;;  %6991 = vmatmul.mubr.f32.gmra.mrb[58].mxu0 %v10530_v3  ;;  %v10685_v3 = vld [vmem:[#allocation13 + $0x10] sm:$0xff] }
 0x2c3   : > { %6881 = vmatprep.mubr.f32.mxu1 %v10536_v14  ;;  %6993 = vmatprep.mubr.f32.mxu0 %v10536_v14  ;;  %v10705_v14 = vpack.c.bf16 %v741_v8, %v740_v7  ;;  %v10910_v7 = vpack.c.bf16 %v10758_v23, %v10743_v51  ;;  %v10920_v8 = vpack.c.bf16 %v10780_v6, %v10774_v24 }
 0x2c4   : > { %8462 = vmatpush3.bf16.msra.mxu0 %v10629_v49  ;;  %8398 = vmatpush3.bf16.msra.mxu1 %v10629_v49 }
 0x2c5   : > { %8464 = vmatprep.subr.bf16.mxu0 %v10641_v53  ;;  %8400 = vmatprep.subr.bf16.mxu1 %v10641_v53  ;;  %s11992_s20 = scalar_lea.hbm %s12332_s18, %s5653_s0 }
 0x2c6   : > { %6882 = vmatmul.mubr.f32.gmra.mrb[28].mxu1 %v10534_v12  ;;  %6994 = vmatmul.mubr.f32.gmra.mrb[60].mxu0 %v10534_v12  ;;  %v10700_v12 = vld [vmem:[#allocation11 + $0x18] sm:$0xff] }
 0x2c7   : > { %6884 = vmatprep.mubr.f32.mxu1 %v10540_v22  ;;  %6996 = vmatprep.mubr.f32.mxu0 %v10540_v22  ;;  %v10723_v22 = vld [vmem:[#allocation13 + $0x30] sm:$0xff]  ;;  %v10846_v63 = vpack.c.bf16 %v10700_v12, %v10694_v9 }
 0x2c8   : > { %8466 = vmatpush3.bf16.msra.mxu0 %v10641_v53  ;;  %8402 = vmatpush3.bf16.msra.mxu1 %v10641_v53 }
 0x2c9   : > { %8468 = vmatprep.subr.bf16.mxu0 %v10653_v56  ;;  %8404 = vmatprep.subr.bf16.mxu1 %v10653_v56 }
 0x2ca   : > { %6885 = vmatmul.mubr.f32.gmra.mrb[30].mxu1 %v10538_v20  ;;  %6997 = vmatmul.mubr.f32.gmra.mrb[62].mxu0 %v10538_v20  ;;  %v10718_v20 = vld [vmem:[#allocation13 + $0x28] sm:$0xff] }
 0x2cb   : > { %7143 = vmatprep.mubr.f32.mxu0 %v10663_v60  ;;  %7031 = vmatprep.mubr.f32.mxu1 %v10666_v61  ;;  %v10870_v0 = vpack.c.bf16 %v10718_v20, %v10703_v13 }
 0x2cc   : > { %8470 = vmatpush3.bf16.msra.mxu0 %v10653_v56  ;;  %8406 = vmatpush3.bf16.msra.mxu1 %v10653_v56 }
 0x2cd   : > { %8472 = vmatprep.subr.bf16.mxu0 %v10669_v62  ;;  %8408 = vmatprep.subr.bf16.mxu1 %v10669_v62 }
 0x2cf   : > { %7144 = vmatmul.mubr.f32.vlgmr.msra.gmra.mrb[64].mxu0 %v10679_v1  ;;  %7032 = vmatmul.mubr.f32.vlgmr.msra.gmra.mrb[32].mxu1 %v10682_v2 }
 0x2d0   : > { %8474 = vmatpush3.bf16.msra.mxu0 %v10669_v62  ;;  %7146 = vmatprep.mubr.f32.mxu0 %v10685_v3 }
 0x2d1   : > { %8476 = vmatprep.subr.bf16.mxu0 %v10687_v5  ;;  %8410 = vmatpush3.bf16.msra.mxu1 %v10669_v62 }
 0x2d2   : > { %7034 = vmatprep.mubr.f32.mxu1 %v10694_v9  ;;  %8412 = vmatprep.subr.bf16.mxu1 %v10687_v5 }
 0x2d3   : > { %7147 = vmatmul.mubr.f32.gmra.mrb[66].mxu0 %v10698_v10  ;;  %7035 = vmatmul.mubr.f32.gmra.mrb[34].mxu1 %v10700_v12 }
 0x2d4   : > { %8478 = vmatpush3.bf16.msra.mxu0 %v10687_v5  ;;  %7149 = vmatprep.mubr.f32.mxu0 %v10703_v13 }
 0x2d5   : > { %8480 = vmatprep.subr.bf16.mxu0 %v10705_v14  ;;  %8414 = vmatpush3.bf16.msra.mxu1 %v10687_v5 }
 0x2d6   : > { %7037 = vmatprep.mubr.f32.mxu1 %v10714_v19  ;;  %8416 = vmatprep.subr.bf16.mxu1 %v10705_v14 }
 0x2d7   : > { %7150 = vmatmul.mubr.f32.gmra.mrb[68].mxu0 %v10718_v20  ;;  %7038 = vmatmul.mubr.f32.gmra.mrb[36].mxu1 %v10720_v21 }
 0x2d8   : > { %8482 = vmatpush3.bf16.msra.mxu0 %v10705_v14  ;;  %7152 = vmatprep.mubr.f32.mxu0 %v10723_v22 }
 0x2d9   : > { %8484 = vmatprep.subr.bf16.mxu0 %v10725_v32  ;;  %8418 = vmatpush3.bf16.msra.mxu1 %v10705_v14 }
 0x2da   : > { %7040 = vmatprep.mubr.f32.mxu1 %v10734_v36  ;;  %8420 = vmatprep.subr.bf16.mxu1 %v10725_v32 }
 0x2db   : > { %7153 = vmatmul.mubr.f32.gmra.mrb[70].mxu0 %v10738_v38  ;;  %7041 = vmatmul.mubr.f32.gmra.mrb[38].mxu1 %v10740_v39 }
 0x2dc   : > { %8486 = vmatpush3.bf16.msra.mxu0 %v10725_v32  ;;  %7155 = vmatprep.mubr.f32.mxu0 %v10743_v51 }
 0x2dd   : > { %8488 = vmatprep.subr.bf16.mxu0 %v10745_v17  ;;  %8422 = vmatpush3.bf16.msra.mxu1 %v10725_v32 }
 0x2de   : > { %7043 = vmatprep.mubr.f32.mxu1 %v10754_v59  ;;  %8424 = vmatprep.subr.bf16.mxu1 %v10745_v17 }
 0x2df   : > { %7156 = vmatmul.mubr.f32.gmra.mrb[72].mxu0 %v10758_v23  ;;  %7044 = vmatmul.mubr.f32.gmra.mrb[40].mxu1 %v10760_v44 }
 0x2e0   : > { %8490 = vmatpush3.bf16.msra.mxu0 %v10745_v17  ;;  %7158 = vmatprep.mubr.f32.mxu0 %v10763_v45 }
 0x2e1   : > { %8492 = vmatprep.subr.bf16.mxu0 %v10765_v4  ;;  %8426 = vmatpush3.bf16.msra.mxu1 %v10745_v17 }
 0x2e2   : > { %7046 = vmatprep.mubr.f32.mxu1 %v10774_v24  ;;  %8428 = vmatprep.subr.bf16.mxu1 %v10765_v4 }
 0x2e3   : > { %7159 = vmatmul.mubr.f32.gmra.mrb[74].mxu0 %v10778_v25  ;;  %7047 = vmatmul.mubr.f32.gmra.mrb[42].mxu1 %v10780_v6 }
 0x2e4   : > { %8494 = vmatpush3.bf16.msra.mxu0 %v10765_v4  ;;  %7161 = vmatprep.mubr.f32.mxu0 %v10783_v29 }
 0x2e5   : > { %8496 = vmatprep.subr.bf16.mxu0 %v10785_v30  ;;  %8430 = vmatpush3.bf16.msra.mxu1 %v10765_v4 }
 0x2e6   : > { %7049 = vmatprep.mubr.f32.mxu1 %v10794_v41  ;;  %8432 = vmatprep.subr.bf16.mxu1 %v10785_v30 }
 0x2e7   : > { %7162 = vmatmul.mubr.f32.gmra.mrb[76].mxu0 %v10798_v43  ;;  %7050 = vmatmul.mubr.f32.gmra.mrb[44].mxu1 %v10800_v47 }
 0x2e8   : > { %8498 = vmatpush3.bf16.msra.mxu0 %v10785_v30  ;;  %7164 = vmatprep.mubr.f32.mxu0 %v10803_v48 }
 0x2e9   : > { %8500 = vmatprep.subr.bf16.mxu0 %v10805_v50  ;;  %8434 = vmatpush3.bf16.msra.mxu1 %v10785_v30 }
 0x2ea   : > { %7052 = vmatprep.mubr.f32.mxu1 %v10812_v52  ;;  %8436 = vmatprep.subr.bf16.mxu1 %v10805_v50 }
 0x2eb   : > { %7165 = vmatmul.mubr.f32.gmra.mrb[78].mxu0 %v10816_v54  ;;  %7053 = vmatmul.mubr.f32.gmra.mrb[46].mxu1 %v10818_v55 }
 0x2ec   : > { %8502 = vmatpush3.bf16.msra.mxu0 %v10805_v50  ;;  %7199 = vmatprep.mubr.f32.mxu0 %v10666_v61  ;;  %v10850_v61 = vpack.c.bf16 %v10698_v10, %v10685_v3 }
 0x2ed   : > { %8438 = vmatpush3.bf16.msra.mxu1 %v10805_v50  ;;  %7087 = vmatprep.mubr.f32.mxu1 %v10663_v60  ;;  %v10866_v60 = vpack.c.bf16 %v10720_v21, %v10714_v19 }
 0x2ee   : > { %8504 = vmatprep.subr.bf16.mxu1 %v10824_v57  ;;  %8568 = vmatprep.subr.bf16.mxu0 %v10828_v58 }
 0x2ef   : > { %7200 = vmatmul.mubr.f32.vlgmr.msra.gmra.mrb[64].mxu0 %v10682_v2  ;;  %v10890_v2 = vpack.c.bf16 %v10738_v38, %v10723_v22 }
 0x2f0   : > { %7202 = vmatprep.mubr.f32.mxu0 %v10694_v9  ;;  %7088 = vmatmul.mubr.f32.vlgmr.msra.gmra.mrb[48].mxu1 %v10679_v1  ;;  %v10886_v1 = vpack.c.bf16 %v10740_v39, %v10734_v36  ;;  %v10924_v9 = vpack.c.bf16 %v10778_v25, %v10763_v45 }
 0x2f1   : > { %7090 = vmatprep.mubr.f32.mxu1 %v10685_v3  ;;  %v10906_v3 = vpack.c.bf16 %v10760_v44, %v10754_v59 }
 0x2f3   : > { %7203 = vmatmul.mubr.f32.gmra.mrb[66].mxu0 %v10700_v12  ;;  %v10936_v12 = vpack.c.bf16 %v10798_v43, %v10783_v29 }
 0x2f4   : > { %7205 = vmatprep.mubr.f32.mxu0 %v10714_v19  ;;  %7091 = vmatmul.mubr.f32.gmra.mrb[50].mxu1 %v10698_v10  ;;  %v10932_v10 = vpack.c.bf16 %v10800_v47, %v10794_v41 }
 0x2f5   : > { %7093 = vmatprep.mubr.f32.mxu1 %v10703_v13  ;;  %8570 = vmatpush3.bf16.xpose.msra.mxu0 %v10828_v58  ;;  %v10944_v13 = vpack.c.bf16 %v10818_v55, %v10812_v52 }
 0x2f6   : > { %8506 = vmatpush3.bf16.xpose.msra.mxu1 %v10824_v57  ;;  %8572 = vmatprep.subr.bf16.mxu0 %v10846_v63 }
 0x2f7   : > { %7206 = vmatmul.mubr.f32.gmra.mrb[68].mxu0 %v10720_v21  ;;  %8508 = vmatprep.subr.bf16.mxu1 %v10850_v61 }
 0x2f8   : > { %7208 = vmatprep.mubr.f32.mxu0 %v10734_v36  ;;  %7094 = vmatmul.mubr.f32.gmra.mrb[52].mxu1 %v10718_v20 }
 0x2f9   : > { %7096 = vmatprep.mubr.f32.mxu1 %v10723_v22 }
 0x2fb   : > { %7209 = vmatmul.mubr.f32.gmra.mrb[70].mxu0 %v10740_v39 }
 0x2fc   : > { %7211 = vmatprep.mubr.f32.mxu0 %v10754_v59  ;;  %7097 = vmatmul.mubr.f32.gmra.mrb[54].mxu1 %v10738_v38 }
 0x2fd   : > { %7099 = vmatprep.mubr.f32.mxu1 %v10743_v51  ;;  %8574 = vmatpush3.bf16.xpose.msra.mxu0 %v10846_v63 }
 0x2fe   : > { %8510 = vmatpush3.bf16.xpose.msra.mxu1 %v10850_v61  ;;  %8576 = vmatprep.subr.bf16.mxu0 %v10866_v60 }
 0x2ff   : > { %7212 = vmatmul.mubr.f32.gmra.mrb[72].mxu0 %v10760_v44  ;;  %8512 = vmatprep.subr.bf16.mxu1 %v10870_v0 }
 0x300   : > { %7214 = vmatprep.mubr.f32.mxu0 %v10774_v24  ;;  %7100 = vmatmul.mubr.f32.gmra.mrb[56].mxu1 %v10758_v23 }
 0x301   : > { %7102 = vmatprep.mubr.f32.mxu1 %v10763_v45 }
 0x303   : > { %7215 = vmatmul.mubr.f32.gmra.mrb[74].mxu0 %v10780_v6 }
 0x304   : > { %7217 = vmatprep.mubr.f32.mxu0 %v10794_v41  ;;  %7103 = vmatmul.mubr.f32.gmra.mrb[58].mxu1 %v10778_v25 }
 0x305   : > { %7105 = vmatprep.mubr.f32.mxu1 %v10783_v29  ;;  %8578 = vmatpush3.bf16.xpose.msra.mxu0 %v10866_v60 }
 0x306   : > { %8514 = vmatpush3.bf16.xpose.msra.mxu1 %v10870_v0  ;;  %8580 = vmatprep.subr.bf16.mxu0 %v10886_v1 }
 0x307   : > { %7218 = vmatmul.mubr.f32.gmra.mrb[76].mxu0 %v10800_v47  ;;  %8516 = vmatprep.subr.bf16.mxu1 %v10890_v2 }
 0x308   : > { %7220 = vmatprep.mubr.f32.mxu0 %v10812_v52  ;;  %7106 = vmatmul.mubr.f32.gmra.mrb[60].mxu1 %v10798_v43 }
 0x309   : > { %7108 = vmatprep.mubr.f32.mxu1 %v10803_v48 }
 0x30b   : > { %7221 = vmatmul.mubr.f32.gmra.mrb[78].mxu0 %v10818_v55 }
 0x30c   : > { %7109 = vmatmul.mubr.f32.gmra.mrb[62].mxu1 %v10816_v54 }
 0x30d   : > { %8582 = vmatpush3.bf16.xpose.msra.mxu0 %v10886_v1 }
 0x30e   : > { %8518 = vmatpush3.bf16.xpose.msra.mxu1 %v10890_v2  ;;  %8584 = vmatprep.subr.bf16.mxu0 %v10906_v3 }
 0x30f   : > { %8520 = vmatprep.subr.bf16.mxu1 %v10910_v7 }
 0x315   : > { %8586 = vmatpush3.bf16.xpose.msra.mxu0 %v10906_v3 }
 0x316   : > { %8522 = vmatpush3.bf16.xpose.msra.mxu1 %v10910_v7  ;;  %8588 = vmatprep.subr.bf16.mxu0 %v10920_v8 }
 0x317   : > { %8524 = vmatprep.subr.bf16.mxu1 %v10924_v9 }
 0x31d   : > { %8590 = vmatpush3.bf16.xpose.msra.mxu0 %v10920_v8 }
 0x31e   : > { %8526 = vmatpush3.bf16.xpose.msra.mxu1 %v10924_v9  ;;  %8592 = vmatprep.subr.bf16.mxu0 %v10932_v10 }
 0x31f   : > { %8528 = vmatprep.subr.bf16.mxu1 %v10936_v12 }
 0x325   : > { %8594 = vmatpush3.bf16.xpose.msra.mxu0 %v10932_v10 }
 0x326   : > { %8530 = vmatpush3.bf16.xpose.msra.mxu1 %v10936_v12  ;;  %8596 = vmatprep.subr.bf16.mxu0 %v10944_v13 }
 0x327   : > { %8532 = vmatprep.subr.bf16.mxu1 %v10948_v16 }
 0x32d   : > { %8598 = vmatpush3.bf16.xpose.msra.mxu0 %v10944_v13 }
 0x32e   : > { %8534 = vmatpush3.bf16.xpose.msra.mxu1 %v10948_v16  ;;  %8600 = vmatprep.subr.bf16.mxu0 %v10824_v57 }
 0x32f   : > { %8536 = vmatprep.subr.bf16.mxu1 %v10828_v58 }
 0x341   : > { %v10958_v18 = vpop.f32.mrb[32].mxu0 }
 0x342   : > { %v10960_v19 = vpop.f32.mrb[33].mxu0 }
 0x345   : > { %v10962_v20 = vpop.f32.mrb[34].mxu0 }
 0x346   : > { %12229 = vst [vmem:[#allocation34_spill] sm:$0xff] %v10962_v20  ;;  %v10964_v21 = vpop.f32.mrb[35].mxu0 }
 0x349   : > { %v10966_v22 = vpop.f32.mrb[36].mxu0 }
 0x34a   : > { %12230 = vst [vmem:[#allocation35_spill] sm:$0xff] %v10966_v22  ;;  %v10968_v33 = vpop.f32.mrb[37].mxu0 }
 0x34b   : > { %12231 = vst [vmem:[#allocation36_spill] sm:$0xff] %v10968_v33 }
 0x34d   : > { %v10970_v34 = vpop.f32.mrb[38].mxu0 }
 0x34e   : > { %12232 = vst [vmem:[#allocation37_spill] sm:$0xff] %v10970_v34  ;;  %v10972_v36 = vpop.f32.mrb[39].mxu0 }
 0x34f   : > { %12233 = vst [vmem:[#allocation38_spill] sm:$0xff] %v10972_v36 }
 0x351   : > { %v10974_v38 = vpop.f32.mrb[40].mxu0 }
 0x352   : > { %12234 = vst [vmem:[#allocation39_spill] sm:$0xff] %v10974_v38  ;;  %v10976_v39 = vpop.f32.mrb[41].mxu0 }
 0x353   : > { %12235 = vst [vmem:[#allocation40_spill] sm:$0xff] %v10976_v39 }
 0x355   : > { %v10978_v51 = vpop.f32.mrb[42].mxu0 }
 0x356   : > { %12236 = vst [vmem:[#allocation41_spill] sm:$0xff] %v10978_v51  ;;  %v10980_v40 = vpop.f32.mrb[43].mxu0 }
 0x357   : > { %12237 = vst [vmem:[#allocation42_spill] sm:$0xff] %v10980_v40 }
 0x359   : > { %v10982_v42 = vpop.f32.mrb[44].mxu0 }
 0x35a   : > { %12238 = vst [vmem:[#allocation43_spill] sm:$0xff] %v10982_v42  ;;  %v10984_v59 = vpop.f32.mrb[45].mxu0 }
 0x35b   : > { %12239 = vst [vmem:[#allocation44_spill] sm:$0xff] %v10984_v59 }
 0x35d   : > { %v10986_v23 = vpop.f32.mrb[46].mxu0 }
 0x35e   : > { %12240 = vst [vmem:[#allocation45_spill] sm:$0xff] %v10986_v23  ;;  %v10988_v44 = vpop.f32.mrb[47].mxu0 }
 0x35f   : > { %12241 = vst [vmem:[#allocation46_spill] sm:$0xff] %v10988_v44 }
 0x381   : > { %v10990_v45 = vpop.f32.mrb[16].mxu1  ;;  %v10992_v26 = vpop.f32.mrb[48].mxu0 }
 0x382   : > { %12242 = vst [vmem:[#allocation47_spill] sm:$0xff] %v10990_v45  ;;  %v10996_v24 = vpop.f32.mrb[17].mxu1  ;;  %v10998_v25 = vpop.f32.mrb[49].mxu0 }
 0x383   : > { %12243 = vst [vmem:[#allocation48_spill] sm:$0xff] %v10996_v24 }
 0x385   : > { %v11002_v29 = vpop.f32.mrb[18].mxu1  ;;  %v11004_v31 = vpop.f32.mrb[50].mxu0 }
 0x386   : > { %12244 = vst [vmem:[#allocation49_spill] sm:$0xff] %v11002_v29  ;;  %12245 = vst [vmem:[#allocation50_spill] sm:$0xff] %v11004_v31  ;;  %v11008_v41 = vpop.f32.mrb[19].mxu1  ;;  %v11010_v43 = vpop.f32.mrb[51].mxu0 }
 0x387   : > { %12246 = vst [vmem:[#allocation51_spill] sm:$0xff] %v11008_v41 }
 0x389   : > { %v11014_v48 = vpop.f32.mrb[20].mxu1  ;;  %v11016_v52 = vpop.f32.mrb[52].mxu0 }
 0x38a   : > { %12247 = vst [vmem:[#allocation52_spill] sm:$0xff] %v11014_v48  ;;  %12248 = vst [vmem:[#allocation53_spill] sm:$0xff] %v11016_v52  ;;  %v11020_v55 = vpop.f32.mrb[21].mxu1  ;;  %v11022_v15 = vpop.f32.mrb[53].mxu0 }
 0x38b   : > { %12249 = vst [vmem:[#allocation54_spill] sm:$0xff] %v11020_v55  ;;  %12250 = vst [vmem:[#allocation55_spill] sm:$0xff] %v11022_v15 }
 0x38d   : > { %v11026_v6 = vpop.f32.mrb[22].mxu1  ;;  %v11028_v29 = vpop.f32.mrb[54].mxu0 }
 0x38e   : > { %12251 = vst [vmem:[#allocation56_spill] sm:$0xff] %v11026_v6  ;;  %12252 = vst [vmem:[#allocation57_spill] sm:$0xff] %v11028_v29  ;;  %v11032_v48 = vpop.f32.mrb[23].mxu1  ;;  %v11034_v41 = vpop.f32.mrb[55].mxu0 }
 0x38f   : > { %12253 = vst [vmem:[#allocation58_spill] sm:$0xff] %v11032_v48  ;;  %12254 = vst [vmem:[#allocation59_spill] sm:$0xff] %v11034_v41 }
 0x391   : > { %v11038_v55 = vpop.f32.mrb[24].mxu1  ;;  %v11040_v45 = vpop.f32.mrb[56].mxu0 }
 0x392   : > { %12255 = vst [vmem:[#allocation60_spill] sm:$0xff] %v11038_v55  ;;  %12256 = vst [vmem:[#allocation61_spill] sm:$0xff] %v11040_v45  ;;  %v11044_v6 = vpop.f32.mrb[25].mxu1  ;;  %v11046_v24 = vpop.f32.mrb[57].mxu0 }
 0x393   : > { %12257 = vst [vmem:[#allocation62_spill] sm:$0xff] %v11044_v6  ;;  %12258 = vst [vmem:[#allocation63_spill] sm:$0xff] %v11046_v24 }
 0x395   : > { %v11050_v48 = vpop.f32.mrb[26].mxu1  ;;  %v11052_v29 = vpop.f32.mrb[58].mxu0 }
 0x396   : > { %12259 = vst [vmem:[#allocation64_spill] sm:$0xff] %v11050_v48  ;;  %12260 = vst [vmem:[#allocation65_spill] sm:$0xff] %v11052_v29  ;;  %v11056_v55 = vpop.f32.mrb[27].mxu1  ;;  %v11058_v34 = vpop.f32.mrb[59].mxu0 }
 0x397   : > { %12261 = vst [vmem:[#allocation66_spill] sm:$0xff] %v11056_v55  ;;  %12262 = vst [vmem:[#allocation67_spill] sm:$0xff] %v11058_v34 }
 0x399   : > { %v11062_v6 = vpop.f32.mrb[28].mxu1  ;;  %v11064_v45 = vpop.f32.mrb[60].mxu0 }
 0x39a   : > { %12263 = vst [vmem:[#allocation68_spill] sm:$0xff] %v11062_v6  ;;  %12264 = vst [vmem:[#allocation69_spill] sm:$0xff] %v11064_v45  ;;  %v11068_v48 = vpop.f32.mrb[29].mxu1  ;;  %v11070_v38 = vpop.f32.mrb[61].mxu0 }
 0x39b   : > { %12265 = vst [vmem:[#allocation70_spill] sm:$0xff] %v11068_v48  ;;  %12266 = vst [vmem:[#allocation71_spill] sm:$0xff] %v11070_v38 }
 0x39d   : > { %v11074_v55 = vpop.f32.mrb[30].mxu1  ;;  %v11076_v29 = vpop.f32.mrb[62].mxu0 }
 0x39e   : > { %12267 = vst [vmem:[#allocation72_spill] sm:$0xff] %v11074_v55  ;;  %12268 = vst [vmem:[#allocation73_spill] sm:$0xff] %v11076_v29  ;;  %v11080_v6 = vpop.f32.mrb[31].mxu1  ;;  %v11082_v51 = vpop.f32.mrb[63].mxu0 }
 0x39f   : > { %12269 = vst [vmem:[#allocation74_spill] sm:$0xff] %v11080_v6  ;;  %12270 = vst [vmem:[#allocation75_spill] sm:$0xff] %v11082_v51 }
 0x3a2   : > { %v7033_v48 = vpop.f32.mrb[32].mxu1 }
 0x3a3   : > { %v2074_v45 = vpop.f32.mrb[33].mxu1 }
 0x3a6   : > { %v7036_v42 = vpop.f32.mrb[34].mxu1 }
 0x3a7   : > { %v2084_v34 = vpop.f32.mrb[35].mxu1 }
 0x3aa   : > { %v7039_v40 = vpop.f32.mrb[36].mxu1 }
 0x3ab   : > { %v2094_v54 = vpop.f32.mrb[37].mxu1 }
 0x3ae   : > { %v7042_v38 = vpop.f32.mrb[38].mxu1 }
 0x3af   : > { %v2104_v55 = vpop.f32.mrb[39].mxu1 }
 0x3b2   : > { %v7045_v59 = vpop.f32.mrb[40].mxu1 }
 0x3b3   : > { %v11086_v24 = vpop.f32.mrb[41].mxu1 }
 0x3b6   : > { %v11088_v39 = vpop.f32.mrb[42].mxu1 }
 0x3b7   : > { %v11090_v35 = vpop.f32.mrb[43].mxu1 }
 0x3ba   : > { %v11092_v6 = vpop.f32.mrb[44].mxu1 }
 0x3bb   : > { %v11094_v29 = vpop.f32.mrb[45].mxu1 }
 0x3be   : > { %v11096_v47 = vpop.f32.mrb[46].mxu1 }
 0x3bf   : > { %v11098_v23 = vpop.f32.mrb[47].mxu1 }
 0x3c2   : > { %v7201_v51 = vpop.f32.mrb[64].mxu0 }
 0x3c3   : > { %v2525_v44 = vpop.f32.mrb[65].mxu0  ;;  %v7089_v41 = vpop.f32.mrb[48].mxu1 }
 0x3c4   : > { %7255 = vmatprep.mubr.f32.mxu1 %v2525_v44  ;;  %7367 = vmatprep.mubr.f32.mxu0 %v2525_v44  ;;  %v11100_v36 = vsub.f32 %v7033_v48, %v7089_v41  ;;  %v2219_v52 = vpop.f32.mrb[49].mxu1 }
 0x3c5   : > { %7256 = vmatmul.mubr.f32.vlgmr.msra.gmra.mrb[64].mxu1 %v7201_v51  ;;  %7368 = vmatmul.mubr.f32.vlgmr.msra.gmra.mrb[80].mxu0 %v7201_v51  ;;  %v11102_v22 = vsub.f32 %v2074_v45, %v2219_v52 }
 0x3c6   : > { %8538 = vmatpush3.bf16.xpose.msra.mxu1 %v10828_v58  ;;  %8602 = vmatpush3.bf16.xpose.msra.mxu0 %v10824_v57  ;;  %v7204_v15 = vpop.f32.mrb[66].mxu0 }
 0x3c7   : > { %v2535_v33 = vpop.f32.mrb[67].mxu0  ;;  %8540 = vmatprep.subr.bf16.mxu1 %v10846_v63  ;;  %8604 = vmatprep.subr.bf16.mxu0 %v10850_v61  ;;  %v7092_v31 = vpop.f32.mrb[50].mxu1 }
 0x3c8   : > { %7258 = vmatprep.mubr.f32.mxu1 %v2535_v33  ;;  %7370 = vmatprep.mubr.f32.mxu0 %v2535_v33  ;;  %v11108_v44 = vsub.f32 %v7036_v42, %v7092_v31  ;;  %v2229_v41 = vpop.f32.mrb[51].mxu1 }
 0x3c9   : > { %7259 = vmatmul.mubr.f32.gmra.mrb[66].mxu1 %v7204_v15  ;;  %7371 = vmatmul.mubr.f32.gmra.mrb[82].mxu0 %v7204_v15  ;;  %v11110_v51 = vsub.f32 %v2084_v34, %v2229_v41 }
 0x3ca   : > { %v7207_v45 = vpop.f32.mrb[68].mxu0 }
 0x3cb   : > { %v2545_v58 = vpop.f32.mrb[69].mxu0  ;;  %v7095_v48 = vpop.f32.mrb[52].mxu1 }
 0x3cc   : > { %7261 = vmatprep.mubr.f32.mxu1 %v2545_v58  ;;  %7373 = vmatprep.mubr.f32.mxu0 %v2545_v58  ;;  %v11112_v57 = vsub.f32 %v7039_v40, %v7095_v48  ;;  %v2239_v52 = vpop.f32.mrb[53].mxu1 }
 0x3cd   : > { %7262 = vmatmul.mubr.f32.gmra.mrb[68].mxu1 %v7207_v45  ;;  %7374 = vmatmul.mubr.f32.gmra.mrb[84].mxu0 %v7207_v45  ;;  %v11114_v20 = vsub.f32 %v2094_v54, %v2239_v52 }
 0x3ce   : > { %8542 = vmatpush3.bf16.xpose.msra.mxu1 %v10846_v63  ;;  %8606 = vmatpush3.bf16.xpose.msra.mxu0 %v10850_v61  ;;  %v7210_v33 = vpop.f32.mrb[70].mxu0 }
 0x3cf   : > { %v2555_v42 = vpop.f32.mrb[71].mxu0  ;;  %8544 = vmatprep.subr.bf16.mxu1 %v10866_v60  ;;  %8608 = vmatprep.subr.bf16.mxu0 %v10870_v0  ;;  %v7098_v34 = vpop.f32.mrb[54].mxu1 }
 0x3d0   : > { %7264 = vmatprep.mubr.f32.mxu1 %v2555_v42  ;;  %7376 = vmatprep.mubr.f32.mxu0 %v2555_v42  ;;  %v11120_v40 = vsub.f32 %v7042_v38, %v7098_v34  ;;  %v2249_v15 = vpop.f32.mrb[55].mxu1 }
 0x3d1   : > { %7265 = vmatmul.mubr.f32.gmra.mrb[70].mxu1 %v7210_v33  ;;  %7377 = vmatmul.mubr.f32.gmra.mrb[86].mxu0 %v7210_v33  ;;  %v11122_v31 = vsub.f32 %v2104_v55, %v2249_v15 }
 0x3d2   : > { %v7213_v54 = vpop.f32.mrb[72].mxu0 }
 0x3d3   : > { %v2565_v63 = vpop.f32.mrb[73].mxu0  ;;  %v7101_v41 = vpop.f32.mrb[56].mxu1 }
 0x3d4   : > { %7267 = vmatprep.mubr.f32.mxu1 %v2565_v63  ;;  %7379 = vmatprep.mubr.f32.mxu0 %v2565_v63  ;;  %v11124_v61 = vsub.f32 %v7045_v59, %v7101_v41  ;;  %v2259_v45 = vpop.f32.mrb[57].mxu1 }
 0x3d5   : > { %7268 = vmatmul.mubr.f32.gmra.mrb[72].mxu1 %v7213_v54  ;;  %7380 = vmatmul.mubr.f32.gmra.mrb[88].mxu0 %v7213_v54  ;;  %v11127_v58 = vsub.f32 %v11086_v24, %v2259_v45 }
 0x3d6   : > { %8546 = vmatpush3.bf16.xpose.msra.mxu1 %v10866_v60  ;;  %8610 = vmatpush3.bf16.xpose.msra.mxu0 %v10870_v0  ;;  %v7216_v38 = vpop.f32.mrb[74].mxu0 }
 0x3d7   : > { %v2575_v55 = vpop.f32.mrb[75].mxu0  ;;  %8548 = vmatprep.subr.bf16.mxu1 %v10886_v1  ;;  %8612 = vmatprep.subr.bf16.mxu0 %v10890_v2  ;;  %v7104_v48 = vpop.f32.mrb[58].mxu1 }
 0x3d8   : > { %7270 = vmatprep.mubr.f32.mxu1 %v2575_v55  ;;  %7382 = vmatprep.mubr.f32.mxu0 %v2575_v55  ;;  %v11134_v59 = vsub.f32 %v11088_v39, %v7104_v48  ;;  %v2269_v52 = vpop.f32.mrb[59].mxu1 }
 0x3d9   : > { %7271 = vmatmul.mubr.f32.gmra.mrb[74].mxu1 %v7216_v38  ;;  %7383 = vmatmul.mubr.f32.gmra.mrb[90].mxu0 %v7216_v38  ;;  %v11137_v24 = vsub.f32 %v11090_v35, %v2269_v52 }
 0x3da   : > { %v7219_v60 = vpop.f32.mrb[76].mxu0 }
 0x3db   : > { %v2585_v0 = vpop.f32.mrb[77].mxu0  ;;  %v7107_v33 = vpop.f32.mrb[60].mxu1 }
 0x3dc   : > { %7273 = vmatprep.mubr.f32.mxu1 %v2585_v0  ;;  %7385 = vmatprep.mubr.f32.mxu0 %v2585_v0  ;;  %v11140_v42 = vsub.f32 %v11092_v6, %v7107_v33  ;;  %v2279_v34 = vpop.f32.mrb[61].mxu1 }
 0x3dd   : > { %7274 = vmatmul.mubr.f32.gmra.mrb[76].mxu1 %v7219_v60  ;;  %7386 = vmatmul.mubr.f32.gmra.mrb[92].mxu0 %v7219_v60  ;;  %v11143_v39 = vsub.f32 %v11094_v29, %v2279_v34 }
 0x3de   : > { %8550 = vmatpush3.bf16.xpose.msra.mxu1 %v10886_v1  ;;  %8614 = vmatpush3.bf16.xpose.msra.mxu0 %v10890_v2  ;;  %v7222_v35 = vpop.f32.mrb[78].mxu0  ;;  %v11258_v1 = vld [vmem:[#allocation16 + $0x20] sm:$0xff] }
 0x3df   : > { %v2595_v15 = vpop.f32.mrb[79].mxu0  ;;  %8552 = vmatprep.subr.bf16.mxu1 %v10906_v3  ;;  %8616 = vmatprep.subr.bf16.mxu0 %v10910_v7  ;;  %v7110_v54 = vpop.f32.mrb[62].mxu1  ;;  %v11265_v2 = vld [vmem:[#allocation14 + $0x20] sm:$0xff] }
 0x3e0   : > { %7276 = vmatprep.mubr.f32.mxu1 %v2595_v15  ;;  %7388 = vmatprep.mubr.f32.mxu0 %v2595_v15  ;;  %v11150_v6 = vsub.f32 %v11096_v47, %v7110_v54  ;;  %v2289_v63 = vpop.f32.mrb[63].mxu1  ;;  %v11333_v47 = vld [vmem:[#allocation16 + $0x68] sm:$0xff] }
 0x3e1   : > { %7277 = vmatmul.mubr.f32.gmra.mrb[78].mxu1 %v7222_v35  ;;  %7389 = vmatmul.mubr.f32.gmra.mrb[94].mxu0 %v7222_v35  ;;  %v11153_v29 = vsub.f32 %v11098_v23, %v2289_v63  ;;  %v11329_v23 = vld [vmem:[#allocation14 + $0x60] sm:$0xff] }
 0x3e2   : > { %7311 = vmatprep.mubr.f32.mxu1 %v11102_v22  ;;  %7423 = vmatprep.mubr.f32.mxu0 %v11102_v22  ;;  %v11317_v22 = vld [vmem:[#allocation16 + $0x58] sm:$0xff] }
 0x3e6   : > { %8554 = vmatpush3.bf16.xpose.msra.mxu1 %v10906_v3  ;;  %8618 = vmatpush3.bf16.xpose.msra.mxu0 %v10910_v7  ;;  %v11269_v3 = vld [vmem:[#allocation16 + $0x28] sm:$0xff] }
 0x3e7   : > { %8556 = vmatprep.subr.bf16.mxu1 %v10920_v8  ;;  %8620 = vmatprep.subr.bf16.mxu0 %v10924_v9  ;;  %v11271_v7 = vld [vmem:[#allocation14 + $0x28] sm:$0xff] }
 0x3e8   : > { %v11399_v41 = vpack.c.bf16 %v11271_v7, %v11265_v2 }
 0x3ee   : > { %8558 = vmatpush3.bf16.xpose.msra.mxu1 %v10920_v8  ;;  %8622 = vmatpush3.bf16.xpose.msra.mxu0 %v10924_v9  ;;  %v11281_v8 = vld [vmem:[#allocation14 + $0x30] sm:$0xff]  ;;  %v11285_v9 = vld [vmem:[#allocation16 + $0x38] sm:$0xff] }
 0x3ef   : > { %8560 = vmatprep.subr.bf16.mxu1 %v10932_v10  ;;  %8624 = vmatprep.subr.bf16.mxu0 %v10936_v12 }
 0x3f6   : > { %8562 = vmatpush3.bf16.xpose.msra.mxu1 %v10932_v10  ;;  %8626 = vmatpush3.bf16.xpose.msra.mxu0 %v10936_v12  ;;  %v11287_v10 = vld [vmem:[#allocation14 + $0x38] sm:$0xff]  ;;  %v11297_v12 = vld [vmem:[#allocation14 + $0x40] sm:$0xff] }
 0x3f7   : > { %8564 = vmatprep.subr.bf16.mxu1 %v10944_v13  ;;  %8628 = vmatprep.subr.bf16.mxu0 %v10948_v16  ;;  %v11419_v45 = vpack.c.bf16 %v11287_v10, %v11281_v8 }
 0x3fe   : > { %8566 = vmatpush3.bf16.xpose.msra.mxu1 %v10944_v13  ;;  %8630 = vmatpush3.bf16.xpose.msra.mxu0 %v10948_v16  ;;  %v11301_v13 = vld [vmem:[#allocation16 + $0x48] sm:$0xff] }
 0x3ff   : > { %8696 = vmatprep.subr.bf16.mxu0 %v10574_v27  ;;  %8632 = vmatprep.subr.bf16.mxu1 %v10574_v27  ;;  %v11303_v16 = vld [vmem:[#allocation14 + $0x48] sm:$0xff] }
 0x400   : > { %v11439_v38 = vpack.c.bf16 %v11303_v16, %v11297_v12 }
 0x405   : > { %7312 = vmatmul.mubr.f32.vlgmr.msra.gmra.mrb[64].mxu1 %v11100_v36  ;;  %7424 = vmatmul.mubr.f32.vlgmr.msra.gmra.mrb[96].mxu0 %v11100_v36  ;;  %v11319_v36 = vld [vmem:[#allocation14 + $0x58] sm:$0xff] }
 0x406   : > { %7314 = vmatprep.mubr.f32.mxu1 %v11110_v51  ;;  %7426 = vmatprep.mubr.f32.mxu0 %v11110_v51  ;;  %v11345_v51 = vld [vmem:[#allocation14 + $0x70] sm:$0xff] }
 0x407   : > { %8698 = vmatpush3.bf16.msra.mxu0 %v10574_v27  ;;  %8634 = vmatpush3.bf16.msra.mxu1 %v10574_v27  ;;  %v11226_v27 = vld [vmem:[#allocation16] sm:$0xff] }
 0x408   : > { %8700 = vmatprep.subr.bf16.mxu0 %v10582_v28  ;;  %8636 = vmatprep.subr.bf16.mxu1 %v10582_v28 }
 0x409   : > { %7315 = vmatmul.mubr.f32.gmra.mrb[66].mxu1 %v11108_v44  ;;  %7427 = vmatmul.mubr.f32.gmra.mrb[98].mxu0 %v11108_v44  ;;  %v11335_v44 = vld [vmem:[#allocation14 + $0x68] sm:$0xff] }
 0x40a   : > { %7317 = vmatprep.mubr.f32.mxu1 %v11114_v20  ;;  %7429 = vmatprep.mubr.f32.mxu0 %v11114_v20  ;;  %v11313_v20 = vld [vmem:[#allocation14 + $0x50] sm:$0xff]  ;;  %v11465_v52 = vpack.c.bf16 %v11335_v44, %v11329_v23 }
 0x40b   : > { %8702 = vmatpush3.bf16.msra.mxu0 %v10582_v28  ;;  %8638 = vmatpush3.bf16.msra.mxu1 %v10582_v28  ;;  %v11229_v28 = vld [vmem:[#allocation14] sm:$0xff]  ;;  %v11453_v48 = vpack.c.bf16 %v11319_v36, %v11313_v20 }
 0x40c   : > { %8704 = vmatprep.subr.bf16.mxu0 %v10593_v11  ;;  %8640 = vmatprep.subr.bf16.mxu1 %v10593_v11 }
 0x40d   : > { %7318 = vmatmul.mubr.f32.gmra.mrb[68].mxu1 %v11112_v57  ;;  %7430 = vmatmul.mubr.f32.gmra.mrb[100].mxu0 %v11112_v57  ;;  %v11349_v57 = vld [vmem:[#allocation16 + $0x78] sm:$0xff] }
 0x40e   : > { %7320 = vmatprep.mubr.f32.mxu1 %v11122_v31  ;;  %7432 = vmatprep.mubr.f32.mxu0 %v11122_v31 }
 0x40f   : > { %8706 = vmatpush3.bf16.msra.mxu0 %v10593_v11  ;;  %8642 = vmatpush3.bf16.msra.mxu1 %v10593_v11  ;;  %v11238_v11 = vld [vmem:[#allocation16 + $0x8] sm:$0xff] }
 0x410   : > { %8708 = vmatprep.subr.bf16.mxu0 %v10605_v37  ;;  %8644 = vmatprep.subr.bf16.mxu1 %v10605_v37 }
 0x411   : > { %7321 = vmatmul.mubr.f32.gmra.mrb[70].mxu1 %v11120_v40  ;;  %7433 = vmatmul.mubr.f32.gmra.mrb[102].mxu0 %v11120_v40  ;;  %v11351_v40 = vld [vmem:[#allocation14 + $0x78] sm:$0xff] }
 0x412   : > { %7323 = vmatprep.mubr.f32.mxu1 %v11127_v58  ;;  %7435 = vmatprep.mubr.f32.mxu0 %v11127_v58  ;;  %v11477_v60 = vpack.c.bf16 %v11351_v40, %v11345_v51 }
 0x413   : > { %8710 = vmatpush3.bf16.msra.mxu0 %v10605_v37  ;;  %8646 = vmatpush3.bf16.msra.mxu1 %v10605_v37  ;;  %v11241_v37 = vld [vmem:[#allocation14 + $0x8] sm:$0xff] }
 0x414   : > { %8712 = vmatprep.subr.bf16.mxu0 %v10617_v46  ;;  %8648 = vmatprep.subr.bf16.mxu1 %v10617_v46  ;;  %v11361_v31 = vpack.c.bf16 %v11241_v37, %v11229_v28 }
 0x415   : > { %7324 = vmatmul.mubr.f32.gmra.mrb[72].mxu1 %v11124_v61  ;;  %7436 = vmatmul.mubr.f32.gmra.mrb[104].mxu0 %v11124_v61  ;;  %v11403_v61 = vpack.c.bf16 %v11269_v3, %v11258_v1 }
 0x416   : > { %7326 = vmatprep.mubr.f32.mxu1 %v11137_v24  ;;  %7438 = vmatprep.mubr.f32.mxu0 %v11137_v24 }
 0x417   : > { %8714 = vmatpush3.bf16.msra.mxu0 %v10617_v46  ;;  %8650 = vmatpush3.bf16.msra.mxu1 %v10617_v46  ;;  %v11244_v46 = vld [vmem:[#allocation16 + $0x10] sm:$0xff] }
 0x418   : > { %8716 = vmatprep.subr.bf16.mxu0 %v10629_v49  ;;  %8652 = vmatprep.subr.bf16.mxu1 %v10629_v49 }
 0x419   : > { %7327 = vmatmul.mubr.f32.gmra.mrb[74].mxu1 %v11134_v59  ;;  %7439 = vmatmul.mubr.f32.gmra.mrb[106].mxu0 %v11134_v59 }
 0x41a   : > { %7329 = vmatprep.mubr.f32.mxu1 %v11143_v39  ;;  %7441 = vmatprep.mubr.f32.mxu0 %v11143_v39 }
 0x41b   : > { %8718 = vmatpush3.bf16.msra.mxu0 %v10629_v49  ;;  %8654 = vmatpush3.bf16.msra.mxu1 %v10629_v49  ;;  %v11249_v49 = vld [vmem:[#allocation14 + $0x10] sm:$0xff] }
 0x41c   : > { %8720 = vmatprep.subr.bf16.mxu0 %v10641_v53  ;;  %8656 = vmatprep.subr.bf16.mxu1 %v10641_v53 }
 0x41d   : > { %7330 = vmatmul.mubr.f32.gmra.mrb[76].mxu1 %v11140_v42  ;;  %7442 = vmatmul.mubr.f32.gmra.mrb[108].mxu0 %v11140_v42 }
 0x41e   : > { %7332 = vmatprep.mubr.f32.mxu1 %v11153_v29  ;;  %7444 = vmatprep.mubr.f32.mxu0 %v11153_v29 }
 0x41f   : > { %8722 = vmatpush3.bf16.msra.mxu0 %v10641_v53  ;;  %8658 = vmatpush3.bf16.msra.mxu1 %v10641_v53  ;;  %v11253_v53 = vld [vmem:[#allocation16 + $0x18] sm:$0xff] }
 0x420   : > { %8724 = vmatprep.subr.bf16.mxu0 %v10653_v56  ;;  %8660 = vmatprep.subr.bf16.mxu1 %v10653_v56 }
 0x421   : > { %7333 = vmatmul.mubr.f32.gmra.mrb[78].mxu1 %v11150_v6  ;;  %7445 = vmatmul.mubr.f32.gmra.mrb[110].mxu0 %v11150_v6 }
 0x422   : > { %7591 = vmatprep.mubr.f32.mxu0 %v11226_v27  ;;  %7479 = vmatprep.mubr.f32.mxu1 %v11229_v28 }
 0x423   : > { %8726 = vmatpush3.bf16.msra.mxu0 %v10653_v56  ;;  %8662 = vmatpush3.bf16.msra.mxu1 %v10653_v56  ;;  %v11255_v56 = vld [vmem:[#allocation14 + $0x18] sm:$0xff] }
 0x424   : > { %8728 = vmatprep.subr.bf16.mxu0 %v10669_v62  ;;  %8664 = vmatprep.subr.bf16.mxu1 %v10669_v62 }
 0x426   : > { %7592 = vmatmul.mubr.f32.vlgmr.msra.gmra.mrb[112].mxu0 %v11238_v11  ;;  %7480 = vmatmul.mubr.f32.vlgmr.msra.gmra.mrb[80].mxu1 %v11241_v37 }
 0x427   : > { %8730 = vmatpush3.bf16.msra.mxu0 %v10669_v62  ;;  %7594 = vmatprep.mubr.f32.mxu0 %v11244_v46 }
 0x428   : > { %8732 = vmatprep.subr.bf16.mxu0 %v10687_v5  ;;  %8666 = vmatpush3.bf16.msra.mxu1 %v10669_v62  ;;  %v11274_v62 = vld [vmem:[#allocation16 + $0x30] sm:$0xff] }
 0x429   : > { %7482 = vmatprep.mubr.f32.mxu1 %v11249_v49  ;;  %8668 = vmatprep.subr.bf16.mxu1 %v10687_v5  ;;  %v11423_v58 = vpack.c.bf16 %v11285_v9, %v11274_v62 }
 0x42a   : > { %7595 = vmatmul.mubr.f32.gmra.mrb[114].mxu0 %v11253_v53  ;;  %7483 = vmatmul.mubr.f32.gmra.mrb[82].mxu1 %v11255_v56 }
 0x42b   : > { %8734 = vmatpush3.bf16.msra.mxu0 %v10687_v5  ;;  %7597 = vmatprep.mubr.f32.mxu0 %v11258_v1 }
 0x42c   : > { %8736 = vmatprep.subr.bf16.mxu0 %v10705_v14  ;;  %8670 = vmatpush3.bf16.msra.mxu1 %v10687_v5  ;;  %v11290_v5 = vld [vmem:[#allocation16 + $0x40] sm:$0xff] }
 0x42d   : > { %7485 = vmatprep.mubr.f32.mxu1 %v11265_v2  ;;  %8672 = vmatprep.subr.bf16.mxu1 %v10705_v14  ;;  %v11443_v55 = vpack.c.bf16 %v11301_v13, %v11290_v5 }
 0x42e   : > { %7598 = vmatmul.mubr.f32.gmra.mrb[116].mxu0 %v11269_v3  ;;  %7486 = vmatmul.mubr.f32.gmra.mrb[84].mxu1 %v11271_v7 }
 0x42f   : > { %8738 = vmatpush3.bf16.msra.mxu0 %v10705_v14  ;;  %7600 = vmatprep.mubr.f32.mxu0 %v11274_v62 }
 0x430   : > { %8740 = vmatprep.subr.bf16.mxu0 %v10725_v32  ;;  %8674 = vmatpush3.bf16.msra.mxu1 %v10705_v14  ;;  %v11306_v14 = vld [vmem:[#allocation16 + $0x50] sm:$0xff] }
 0x431   : > { %7488 = vmatprep.mubr.f32.mxu1 %v11281_v8  ;;  %8676 = vmatprep.subr.bf16.mxu1 %v10725_v32  ;;  %v11457_v59 = vpack.c.bf16 %v11317_v22, %v11306_v14 }
 0x432   : > { %7601 = vmatmul.mubr.f32.gmra.mrb[118].mxu0 %v11285_v9  ;;  %7489 = vmatmul.mubr.f32.gmra.mrb[86].mxu1 %v11287_v10 }
 0x433   : > { %8742 = vmatpush3.bf16.msra.mxu0 %v10725_v32  ;;  %7603 = vmatprep.mubr.f32.mxu0 %v11290_v5 }
 0x434   : > { %8744 = vmatprep.subr.bf16.mxu0 %v10745_v17  ;;  %8678 = vmatpush3.bf16.msra.mxu1 %v10725_v32  ;;  %v11322_v32 = vld [vmem:[#allocation16 + $0x60] sm:$0xff] }
 0x435   : > { %7491 = vmatprep.mubr.f32.mxu1 %v11297_v12  ;;  %8680 = vmatprep.subr.bf16.mxu1 %v10745_v17  ;;  %v11469_v24 = vpack.c.bf16 %v11333_v47, %v11322_v32 }
 0x436   : > { %7604 = vmatmul.mubr.f32.gmra.mrb[120].mxu0 %v11301_v13  ;;  %7492 = vmatmul.mubr.f32.gmra.mrb[88].mxu1 %v11303_v16 }
 0x437   : > { %8746 = vmatpush3.bf16.msra.mxu0 %v10745_v17  ;;  %7606 = vmatprep.mubr.f32.mxu0 %v11306_v14 }
 0x438   : > { %8748 = vmatprep.subr.bf16.mxu0 %v10765_v4  ;;  %8682 = vmatpush3.bf16.msra.mxu1 %v10745_v17  ;;  %v11338_v17 = vld [vmem:[#allocation16 + $0x70] sm:$0xff] }
 0x439   : > { %7494 = vmatprep.mubr.f32.mxu1 %v11313_v20  ;;  %8684 = vmatprep.subr.bf16.mxu1 %v10765_v4  ;;  %v11481_v0 = vpack.c.bf16 %v11349_v57, %v11338_v17 }
 0x43a   : > { %7607 = vmatmul.mubr.f32.gmra.mrb[122].mxu0 %v11317_v22  ;;  %7495 = vmatmul.mubr.f32.gmra.mrb[90].mxu1 %v11319_v36 }
 0x43b   : > { %8750 = vmatpush3.bf16.msra.mxu0 %v10765_v4  ;;  %7609 = vmatprep.mubr.f32.mxu0 %v11322_v32 }
 0x43c   : > { %8752 = vmatprep.subr.bf16.mxu0 %v10785_v30  ;;  %8686 = vmatpush3.bf16.msra.mxu1 %v10765_v4  ;;  %v11357_v4 = vpack.c.bf16 %v11238_v11, %v11226_v27 }
 0x43d   : > { %7497 = vmatprep.mubr.f32.mxu1 %v11329_v23  ;;  %8688 = vmatprep.subr.bf16.mxu1 %v10785_v30 }
 0x43e   : > { %7610 = vmatmul.mubr.f32.gmra.mrb[124].mxu0 %v11333_v47  ;;  %7498 = vmatmul.mubr.f32.gmra.mrb[92].mxu1 %v11335_v44 }
 0x43f   : > { %8754 = vmatpush3.bf16.msra.mxu0 %v10785_v30  ;;  %7612 = vmatprep.mubr.f32.mxu0 %v11338_v17 }
 0x440   : > { %8756 = vmatprep.subr.bf16.mxu0 %v10805_v50  ;;  %8690 = vmatpush3.bf16.msra.mxu1 %v10785_v30  ;;  %v11379_v30 = vpack.c.bf16 %v11255_v56, %v11249_v49 }
 0x441   : > { %7500 = vmatprep.mubr.f32.mxu1 %v11345_v51  ;;  %8692 = vmatprep.subr.bf16.mxu1 %v10805_v50 }
 0x442   : > { %7613 = vmatmul.mubr.f32.gmra.mrb[126].mxu0 %v11349_v57  ;;  %7501 = vmatmul.mubr.f32.gmra.mrb[94].mxu1 %v11351_v40 }
 0x443   : > { %8758 = vmatpush3.bf16.msra.mxu0 %v10805_v50  ;;  %7647 = vmatprep.mubr.f32.mxu0 %v11229_v28 }
 0x444   : > { %8694 = vmatpush3.bf16.msra.mxu1 %v10805_v50  ;;  %7535 = vmatprep.mubr.f32.mxu1 %v11226_v27  ;;  %v11383_v50 = vpack.c.bf16 %v11253_v53, %v11244_v46 }
 0x445   : > { %8760 = vmatprep.subr.bf16.mxu1 %v11357_v4  ;;  %8824 = vmatprep.subr.bf16.mxu0 %v11361_v31 }
 0x446   : > { %7648 = vmatmul.mubr.f32.vlgmr.msra.gmra.mrb[112].mxu0 %v11241_v37 }
 0x447   : > { %7650 = vmatprep.mubr.f32.mxu0 %v11249_v49  ;;  %7536 = vmatmul.mubr.f32.vlgmr.msra.gmra.mrb[96].mxu1 %v11238_v11 }
 0x448   : > { %7538 = vmatprep.mubr.f32.mxu1 %v11244_v46 }
 0x44a   : > { %7651 = vmatmul.mubr.f32.gmra.mrb[114].mxu0 %v11255_v56 }
 0x44b   : > { %7653 = vmatprep.mubr.f32.mxu0 %v11265_v2  ;;  %7539 = vmatmul.mubr.f32.gmra.mrb[98].mxu1 %v11253_v53 }
 0x44c   : > { %7541 = vmatprep.mubr.f32.mxu1 %v11258_v1  ;;  %8826 = vmatpush3.bf16.xpose.msra.mxu0 %v11361_v31 }
 0x44d   : > { %8762 = vmatpush3.bf16.xpose.msra.mxu1 %v11357_v4  ;;  %8828 = vmatprep.subr.bf16.mxu0 %v11379_v30 }
 0x44e   : > { %7654 = vmatmul.mubr.f32.gmra.mrb[116].mxu0 %v11271_v7  ;;  %8764 = vmatprep.subr.bf16.mxu1 %v11383_v50 }
 0x44f   : > { %7656 = vmatprep.mubr.f32.mxu0 %v11281_v8  ;;  %7542 = vmatmul.mubr.f32.gmra.mrb[100].mxu1 %v11269_v3 }
 0x450   : > { %7544 = vmatprep.mubr.f32.mxu1 %v11274_v62 }
 0x452   : > { %7657 = vmatmul.mubr.f32.gmra.mrb[118].mxu0 %v11287_v10 }
 0x453   : > { %7659 = vmatprep.mubr.f32.mxu0 %v11297_v12  ;;  %7545 = vmatmul.mubr.f32.gmra.mrb[102].mxu1 %v11285_v9 }
 0x454   : > { %7547 = vmatprep.mubr.f32.mxu1 %v11290_v5  ;;  %8830 = vmatpush3.bf16.xpose.msra.mxu0 %v11379_v30 }
 0x455   : > { %8766 = vmatpush3.bf16.xpose.msra.mxu1 %v11383_v50  ;;  %8832 = vmatprep.subr.bf16.mxu0 %v11399_v41 }
 0x456   : > { %7660 = vmatmul.mubr.f32.gmra.mrb[120].mxu0 %v11303_v16  ;;  %8768 = vmatprep.subr.bf16.mxu1 %v11403_v61 }
 0x457   : > { %7662 = vmatprep.mubr.f32.mxu0 %v11313_v20  ;;  %7548 = vmatmul.mubr.f32.gmra.mrb[104].mxu1 %v11301_v13 }
 0x458   : > { %7550 = vmatprep.mubr.f32.mxu1 %v11306_v14 }
 0x45a   : > { %7663 = vmatmul.mubr.f32.gmra.mrb[122].mxu0 %v11319_v36 }
 0x45b   : > { %7665 = vmatprep.mubr.f32.mxu0 %v11329_v23  ;;  %7551 = vmatmul.mubr.f32.gmra.mrb[106].mxu1 %v11317_v22 }
 0x45c   : > { %7553 = vmatprep.mubr.f32.mxu1 %v11322_v32  ;;  %8834 = vmatpush3.bf16.xpose.msra.mxu0 %v11399_v41 }
 0x45d   : > { %8770 = vmatpush3.bf16.xpose.msra.mxu1 %v11403_v61  ;;  %8836 = vmatprep.subr.bf16.mxu0 %v11419_v45 }
 0x45e   : > { %7666 = vmatmul.mubr.f32.gmra.mrb[124].mxu0 %v11335_v44  ;;  %8772 = vmatprep.subr.bf16.mxu1 %v11423_v58 }
 0x45f   : > { %7668 = vmatprep.mubr.f32.mxu0 %v11345_v51  ;;  %7554 = vmatmul.mubr.f32.gmra.mrb[108].mxu1 %v11333_v47 }
 0x460   : > { %7556 = vmatprep.mubr.f32.mxu1 %v11338_v17 }
 0x462   : > { %7669 = vmatmul.mubr.f32.gmra.mrb[126].mxu0 %v11351_v40 }
 0x463   : > { %7557 = vmatmul.mubr.f32.gmra.mrb[110].mxu1 %v11349_v57 }
 0x464   : > { %8838 = vmatpush3.bf16.xpose.msra.mxu0 %v11419_v45 }
 0x465   : > { %8774 = vmatpush3.bf16.xpose.msra.mxu1 %v11423_v58  ;;  %8840 = vmatprep.subr.bf16.mxu0 %v11439_v38 }
 0x466   : > { %8776 = vmatprep.subr.bf16.mxu1 %v11443_v55 }
 0x46c   : > { %8842 = vmatpush3.bf16.xpose.msra.mxu0 %v11439_v38 }
 0x46d   : > { %8778 = vmatpush3.bf16.xpose.msra.mxu1 %v11443_v55  ;;  %8844 = vmatprep.subr.bf16.mxu0 %v11453_v48 }
 0x46e   : > { %8780 = vmatprep.subr.bf16.mxu1 %v11457_v59 }
 0x474   : > { %8846 = vmatpush3.bf16.xpose.msra.mxu0 %v11453_v48 }
 0x475   : > { %8782 = vmatpush3.bf16.xpose.msra.mxu1 %v11457_v59  ;;  %8848 = vmatprep.subr.bf16.mxu0 %v11465_v52 }
 0x476   : > { %8784 = vmatprep.subr.bf16.mxu1 %v11469_v24 }
 0x47c   : > { %8850 = vmatpush3.bf16.xpose.msra.mxu0 %v11465_v52 }
 0x47d   : > { %8786 = vmatpush3.bf16.xpose.msra.mxu1 %v11469_v24  ;;  %8852 = vmatprep.subr.bf16.mxu0 %v11477_v60 }
 0x47e   : > { %8788 = vmatprep.subr.bf16.mxu1 %v11481_v0 }
 0x484   : > { %8854 = vmatpush3.bf16.xpose.msra.mxu0 %v11477_v60 }
 0x485   : > { %8790 = vmatpush3.bf16.xpose.msra.mxu1 %v11481_v0  ;;  %8856 = vmatprep.subr.bf16.mxu0 %v11357_v4 }
 0x486   : > { %8792 = vmatprep.subr.bf16.mxu1 %v11361_v31 }
 0x498   : > { %v7369_v33 = vpop.f32.mrb[80].mxu0 }
 0x499   : > { %v2960_v42 = vpop.f32.mrb[81].mxu0 }
 0x49c   : > { %v7372_v34 = vpop.f32.mrb[82].mxu0 }
 0x49d   : > { %v2970_v39 = vpop.f32.mrb[83].mxu0 }
 0x4a0   : > { %v7375_v35 = vpop.f32.mrb[84].mxu0 }
 0x4a1   : > { %v2980_v15 = vpop.f32.mrb[85].mxu0 }
 0x4a4   : > { %v7378_v54 = vpop.f32.mrb[86].mxu0 }
 0x4a5   : > { %v2990_v6 = vpop.f32.mrb[87].mxu0 }
 0x4a8   : > { %v7381_v63 = vpop.f32.mrb[88].mxu0 }
 0x4a9   : > { %v3000_v29 = vpop.f32.mrb[89].mxu0 }
 0x4ac   : > { %v7384_v27 = vpop.f32.mrb[90].mxu0 }
 0x4ad   : > { %v3010_v28 = vpop.f32.mrb[91].mxu0 }
 0x4b0   : > { %v7387_v11 = vpop.f32.mrb[92].mxu0 }
 0x4b1   : > { %v3020_v37 = vpop.f32.mrb[93].mxu0 }
 0x4b4   : > { %v11491_v46 = vpop.f32.mrb[94].mxu0 }
 0x4b5   : > { %v11493_v49 = vpop.f32.mrb[95].mxu0 }
 0x4d8   : > { %v7313_v53 = vpop.f32.mrb[64].mxu1  ;;  %v7425_v56 = vpop.f32.mrb[96].mxu0 }
 0x4d9   : > { %v3185_v1 = vsub.f32 %v7369_v33, %v7425_v56  ;;  %v2815_v2 = vpop.f32.mrb[65].mxu1  ;;  %v3105_v3 = vpop.f32.mrb[97].mxu0 }
 0x4da   : > { %v11495_v7 = vpack.c.bf16 %v7313_v53, %v2815_v2  ;;  %v3184_v62 = vsub.f32 %v2960_v42, %v3105_v3 }
 0x4dc   : > { %v11497_v8 = vpack.c.bf16 %v3185_v1, %v3184_v62  ;;  %v7316_v9 = vpop.f32.mrb[66].mxu1  ;;  %v7428_v10 = vpop.f32.mrb[98].mxu0 }
 0x4dd   : > { %v3187_v5 = vsub.f32 %v7372_v34, %v7428_v10  ;;  %v2825_v12 = vpop.f32.mrb[67].mxu1  ;;  %v3115_v13 = vpop.f32.mrb[99].mxu0 }
 0x4de   : > { %v11499_v16 = vpack.c.bf16 %v7316_v9, %v2825_v12  ;;  %v3186_v14 = vsub.f32 %v2970_v39, %v3115_v13 }
 0x4e0   : > { %v11501_v20 = vpack.c.bf16 %v3187_v5, %v3186_v14  ;;  %v7319_v22 = vpop.f32.mrb[68].mxu1  ;;  %v7431_v36 = vpop.f32.mrb[100].mxu0 }
 0x4e1   : > { %v3189_v32 = vsub.f32 %v7375_v35, %v7431_v36  ;;  %v2835_v23 = vpop.f32.mrb[69].mxu1  ;;  %v3125_v47 = vpop.f32.mrb[101].mxu0 }
 0x4e2   : > { %v11503_v44 = vpack.c.bf16 %v7319_v22, %v2835_v23  ;;  %v3188_v17 = vsub.f32 %v2980_v15, %v3125_v47 }
 0x4e4   : > { %v11505_v51 = vpack.c.bf16 %v3189_v32, %v3188_v17  ;;  %v7322_v57 = vpop.f32.mrb[70].mxu1  ;;  %v7434_v40 = vpop.f32.mrb[102].mxu0 }
 0x4e5   : > { %v3191_v33 = vsub.f32 %v7378_v54, %v7434_v40  ;;  %v2845_v42 = vpop.f32.mrb[71].mxu1  ;;  %v3135_v34 = vpop.f32.mrb[103].mxu0 }
 0x4e6   : > { %v11507_v53 = vpack.c.bf16 %v7322_v57, %v2845_v42  ;;  %v3190_v39 = vsub.f32 %v2990_v6, %v3135_v34 }
 0x4e8   : > { %v11509_v56 = vpack.c.bf16 %v3191_v33, %v3190_v39  ;;  %v7325_v1 = vpop.f32.mrb[72].mxu1  ;;  %v7437_v2 = vpop.f32.mrb[104].mxu0 }
 0x4e9   : > { %v3193_v35 = vsub.f32 %v7381_v63, %v7437_v2  ;;  %v2855_v3 = vpop.f32.mrb[73].mxu1  ;;  %v3145_v62 = vpop.f32.mrb[105].mxu0 }
 0x4ea   : > { %v11511_v9 = vpack.c.bf16 %v7325_v1, %v2855_v3  ;;  %v3192_v15 = vsub.f32 %v3000_v29, %v3145_v62 }
 0x4ec   : > { %v11513_v10 = vpack.c.bf16 %v3193_v35, %v3192_v15  ;;  %v7328_v5 = vpop.f32.mrb[74].mxu1  ;;  %v7440_v12 = vpop.f32.mrb[106].mxu0 }
 0x4ed   : > { %v3195_v54 = vsub.f32 %v7384_v27, %v7440_v12  ;;  %v2865_v13 = vpop.f32.mrb[75].mxu1  ;;  %v3155_v14 = vpop.f32.mrb[107].mxu0 }
 0x4ee   : > { %v11515_v22 = vpack.c.bf16 %v7328_v5, %v2865_v13  ;;  %v3194_v6 = vsub.f32 %v3010_v28, %v3155_v14 }
 0x4f0   : > { %v11517_v36 = vpack.c.bf16 %v3195_v54, %v3194_v6  ;;  %v7331_v32 = vpop.f32.mrb[76].mxu1  ;;  %v7443_v23 = vpop.f32.mrb[108].mxu0 }
 0x4f1   : > { %v3197_v63 = vsub.f32 %v7387_v11, %v7443_v23  ;;  %v2875_v47 = vpop.f32.mrb[77].mxu1  ;;  %v3165_v17 = vpop.f32.mrb[109].mxu0 }
 0x4f2   : > { %v11519_v57 = vpack.c.bf16 %v7331_v32, %v2875_v47  ;;  %v3196_v29 = vsub.f32 %v3020_v37, %v3165_v17 }
 0x4f4   : > { %v11521_v40 = vpack.c.bf16 %v3197_v63, %v3196_v29  ;;  %v7334_v33 = vpop.f32.mrb[78].mxu1  ;;  %v7446_v42 = vpop.f32.mrb[110].mxu0 }
 0x4f5   : > { %v3199_v27 = vsub.f32 %v11491_v46, %v7446_v42  ;;  %v2885_v34 = vpop.f32.mrb[79].mxu1  ;;  %v3175_v39 = vpop.f32.mrb[111].mxu0 }
 0x4f6   : > { %v11524_v1 = vpack.c.bf16 %v7334_v33, %v2885_v34  ;;  %v3198_v28 = vsub.f32 %v11493_v49, %v3175_v39 }
 0x4f8   : > { %v11527_v2 = vpack.c.bf16 %v3199_v27, %v3198_v28 }
 0x4f9   : > { %v7481_v11 = vpop.f32.mrb[80].mxu1 }
 0x4fa   : > { %v3298_v35 = vpop.f32.mrb[81].mxu1 }
 0x4fd   : > { %v7484_v3 = vpop.f32.mrb[82].mxu1 }
 0x4fe   : > { %v3308_v62 = vpop.f32.mrb[83].mxu1 }
 0x501   : > { %v7487_v15 = vpop.f32.mrb[84].mxu1 }
 0x502   : > { %v3318_v37 = vpop.f32.mrb[85].mxu1 }
 0x505   : > { %v7490_v5 = vpop.f32.mrb[86].mxu1 }
 0x506   : > { %v3328_v12 = vpop.f32.mrb[87].mxu1 }
 0x509   : > { %v7493_v54 = vpop.f32.mrb[88].mxu1 }
 0x50a   : > { %v11529_v13 = vpop.f32.mrb[89].mxu1 }
 0x50d   : > { %v11531_v46 = vpop.f32.mrb[90].mxu1 }
 0x50e   : > { %v11533_v14 = vpop.f32.mrb[91].mxu1 }
 0x511   : > { %v11535_v6 = vpop.f32.mrb[92].mxu1 }
 0x512   : > { %v11537_v49 = vpop.f32.mrb[93].mxu1 }
 0x515   : > { %v11539_v32 = vpop.f32.mrb[94].mxu1 }
 0x516   : > { %v11541_v23 = vpop.f32.mrb[95].mxu1 }
 0x519   : > { %v7649_v63 = vpop.f32.mrb[112].mxu0 }
 0x51a   : > { %v3749_v47 = vpop.f32.mrb[113].mxu0  ;;  %v7537_v17 = vpop.f32.mrb[96].mxu1 }
 0x51b   : > { %7703 = vmatprep.mubr.f32.mxu1 %v3749_v47  ;;  %7815 = vmatprep.mubr.f32.mxu0 %v3749_v47  ;;  %v11543_v29 = vsub.f32 %v7481_v11, %v7537_v17  ;;  %v3443_v33 = vpop.f32.mrb[97].mxu1 }
 0x51c   : > { %7704 = vmatmul.mubr.f32.vlgmr.msra.gmra.mrb[112].mxu1 %v7649_v63  ;;  %7816 = vmatmul.mubr.f32.vlgmr.msra.gmra.mrb[128].mxu0 %v7649_v63  ;;  %v11545_v42 = vsub.f32 %v3298_v35, %v3443_v33 }
 0x51d   : > { %8794 = vmatpush3.bf16.xpose.msra.mxu1 %v11361_v31  ;;  %8858 = vmatpush3.bf16.xpose.msra.mxu0 %v11357_v4  ;;  %v7652_v27 = vpop.f32.mrb[114].mxu0 }
 0x51e   : > { %v3759_v34 = vpop.f32.mrb[115].mxu0  ;;  %8796 = vmatprep.subr.bf16.mxu1 %v11379_v30  ;;  %8860 = vmatprep.subr.bf16.mxu0 %v11383_v50  ;;  %v7540_v39 = vpop.f32.mrb[98].mxu1 }
 0x51f   : > { %7706 = vmatprep.mubr.f32.mxu1 %v3759_v34  ;;  %7818 = vmatprep.mubr.f32.mxu0 %v3759_v34  ;;  %v11551_v28 = vsub.f32 %v7484_v3, %v7540_v39  ;;  %v3453_v11 = vpop.f32.mrb[99].mxu1 }
 0x520   : > { %7707 = vmatmul.mubr.f32.gmra.mrb[114].mxu1 %v7652_v27  ;;  %7819 = vmatmul.mubr.f32.gmra.mrb[130].mxu0 %v7652_v27  ;;  %v11553_v35 = vsub.f32 %v3308_v62, %v3453_v11 }
 0x521   : > { %v7655_v63 = vpop.f32.mrb[116].mxu0 }
 0x522   : > { %v3769_v31 = vpop.f32.mrb[117].mxu0  ;;  %v7543_v47 = vpop.f32.mrb[100].mxu1 }
 0x523   : > { %7709 = vmatprep.mubr.f32.mxu1 %v3769_v31  ;;  %7821 = vmatprep.mubr.f32.mxu0 %v3769_v31  ;;  %v11555_v4 = vsub.f32 %v7487_v15, %v7543_v47  ;;  %v3463_v17 = vpop.f32.mrb[101].mxu1 }
 0x524   : > { %7710 = vmatmul.mubr.f32.gmra.mrb[116].mxu1 %v7655_v63  ;;  %7822 = vmatmul.mubr.f32.gmra.mrb[132].mxu0 %v7655_v63  ;;  %v11557_v33 = vsub.f32 %v3318_v37, %v3463_v17 }
 0x525   : > { %8798 = vmatpush3.bf16.xpose.msra.mxu1 %v11379_v30  ;;  %8862 = vmatpush3.bf16.xpose.msra.mxu0 %v11383_v50  ;;  %v7658_v3 = vpop.f32.mrb[118].mxu0 }
 0x526   : > { %v3779_v27 = vpop.f32.mrb[119].mxu0  ;;  %8800 = vmatprep.subr.bf16.mxu1 %v11399_v41  ;;  %8864 = vmatprep.subr.bf16.mxu0 %v11403_v61  ;;  %v7546_v62 = vpop.f32.mrb[102].mxu1 }
 0x527   : > { %7712 = vmatprep.mubr.f32.mxu1 %v3779_v27  ;;  %7824 = vmatprep.mubr.f32.mxu0 %v3779_v27  ;;  %v11563_v15 = vsub.f32 %v7490_v5, %v7546_v62  ;;  %v3473_v34 = vpop.f32.mrb[103].mxu1 }
 0x528   : > { %7713 = vmatmul.mubr.f32.gmra.mrb[118].mxu1 %v7658_v3  ;;  %7825 = vmatmul.mubr.f32.gmra.mrb[134].mxu0 %v7658_v3  ;;  %v11565_v37 = vsub.f32 %v3328_v12, %v3473_v34 }
 0x529   : > { %v7661_v39 = vpop.f32.mrb[120].mxu0 }
 0x52a   : > { %v3789_v30 = vpop.f32.mrb[121].mxu0  ;;  %v7549_v11 = vpop.f32.mrb[104].mxu1 }
 0x52b   : > { %7715 = vmatprep.mubr.f32.mxu1 %v3789_v30  ;;  %7827 = vmatprep.mubr.f32.mxu0 %v3789_v30  ;;  %v11567_v50 = vsub.f32 %v7493_v54, %v7549_v11  ;;  %v3483_v63 = vpop.f32.mrb[105].mxu1  ;;  %v12307_v11 = vld [vmem:[#allocation46_spill] sm:$0xff] }
 0x52c   : > { %7716 = vmatmul.mubr.f32.gmra.mrb[120].mxu1 %v7661_v39  ;;  %7828 = vmatmul.mubr.f32.gmra.mrb[136].mxu0 %v7661_v39  ;;  %v11570_v31 = vsub.f32 %v11529_v13, %v3483_v63 }
 0x52d   : > { %8802 = vmatpush3.bf16.xpose.msra.mxu1 %v11399_v41  ;;  %8866 = vmatpush3.bf16.xpose.msra.mxu0 %v11403_v61  ;;  %v7664_v5 = vpop.f32.mrb[122].mxu0 }
 0x52e   : > { %v3799_v12 = vpop.f32.mrb[123].mxu0  ;;  %8804 = vmatprep.subr.bf16.mxu1 %v11419_v45  ;;  %8868 = vmatprep.subr.bf16.mxu0 %v11423_v58  ;;  %v7552_v47 = vpop.f32.mrb[106].mxu1 }
 0x52f   : > { %7718 = vmatprep.mubr.f32.mxu1 %v3799_v12  ;;  %7830 = vmatprep.mubr.f32.mxu0 %v3799_v12  ;;  %v11577_v54 = vsub.f32 %v11531_v46, %v7552_v47  ;;  %v3493_v17 = vpop.f32.mrb[107].mxu1  ;;  %v12313_v12 = vld [vmem:[#allocation48_spill] sm:$0xff]  ;;  %v12315_v47 = vld [vmem:[#allocation51_spill] sm:$0xff] }
 0x530   : > { %7719 = vmatmul.mubr.f32.gmra.mrb[122].mxu1 %v7664_v5  ;;  %7831 = vmatmul.mubr.f32.gmra.mrb[138].mxu0 %v7664_v5  ;;  %v11580_v13 = vsub.f32 %v11533_v14, %v3493_v17  ;;  %v12317_v17 = vld [vmem:[#allocation54_spill] sm:$0xff] }
 0x531   : > { %v7667_v41 = vpop.f32.mrb[124].mxu0 }
 0x532   : > { %v3809_v61 = vpop.f32.mrb[125].mxu0  ;;  %v7555_v3 = vpop.f32.mrb[108].mxu1 }
 0x533   : > { %7721 = vmatprep.mubr.f32.mxu1 %v3809_v61  ;;  %7833 = vmatprep.mubr.f32.mxu0 %v3809_v61  ;;  %v11583_v27 = vsub.f32 %v11535_v6, %v7555_v3  ;;  %v3503_v62 = vpop.f32.mrb[109].mxu1  ;;  %v12323_v61 = vld [vmem:[#allocation66_spill] sm:$0xff] }
 0x534   : > { %7722 = vmatmul.mubr.f32.gmra.mrb[124].mxu1 %v7667_v41  ;;  %7834 = vmatmul.mubr.f32.gmra.mrb[140].mxu0 %v7667_v41  ;;  %v3534_v46 = vsub.f32 %v11537_v49, %v3503_v62  ;;  %v12321_v41 = vld [vmem:[#allocation62_spill] sm:$0xff] }
 0x535   : > { %8806 = vmatpush3.bf16.xpose.msra.mxu1 %v11419_v45  ;;  %8870 = vmatpush3.bf16.xpose.msra.mxu0 %v11423_v58  ;;  %v7670_v34 = vpop.f32.mrb[126].mxu0  ;;  %v12271_v45 = vsub.f32 %v10960_v19, %v10998_v25  ;;  %v12272_v19 = vsub.f32 %v10958_v18, %v10992_v26  ;;  %v12273_v25 = vsub.f32 %v10964_v21, %v11010_v43  ;;  %v12274_v58 = vld [vmem:[#allocation34_spill] sm:$0xff]  ;;  %v12286_v43 = vld [vmem:[#allocation37_spill] sm:$0xff] }
 0x536   : > { %v3819_v14 = vpop.f32.mrb[127].mxu0  ;;  %8808 = vmatprep.subr.bf16.mxu1 %v11439_v38  ;;  %8872 = vmatprep.subr.bf16.mxu0 %v11443_v55  ;;  %v7558_v39 = vpop.f32.mrb[110].mxu1  ;;  %v12283_v26 = vld [vmem:[#allocation38_spill] sm:$0xff] }
 0x537   : > { %7724 = vmatprep.mubr.f32.mxu1 %v3819_v14  ;;  %7836 = vmatprep.mubr.f32.mxu0 %v3819_v14  ;;  %v3537_v6 = vsub.f32 %v11539_v32, %v7558_v39  ;;  %v3513_v30 = vpop.f32.mrb[111].mxu1  ;;  %v12296_v32 = vld [vmem:[#allocation67_spill] sm:$0xff]  ;;  %v12325_v62 = vld [vmem:[#allocation70_spill] sm:$0xff]  ;;  %v12326_v14 = vld [vmem:[#allocation68_spill] sm:$0xff] }
 0x538   : > { %7725 = vmatmul.mubr.f32.gmra.mrb[126].mxu1 %v7670_v34  ;;  %7837 = vmatmul.mubr.f32.gmra.mrb[142].mxu0 %v7670_v34  ;;  %v3536_v49 = vsub.f32 %v11541_v23, %v3513_v30  ;;  %v12327_v39 = vld [vmem:[#allocation74_spill] sm:$0xff] }
 0x539   : > { %7759 = vmatprep.mubr.f32.mxu1 %v11545_v42  ;;  %7871 = vmatprep.mubr.f32.mxu0 %v11545_v42 }
 0x53d   : > { %8810 = vmatpush3.bf16.xpose.msra.mxu1 %v11439_v38  ;;  %8874 = vmatpush3.bf16.xpose.msra.mxu0 %v11443_v55  ;;  %v12275_v38 = vld [vmem:[#allocation50_spill] sm:$0xff] }
 0x53e   : > { %8812 = vmatprep.subr.bf16.mxu1 %v11453_v48  ;;  %8876 = vmatprep.subr.bf16.mxu0 %v11457_v59  ;;  %v12276_v55 = vsub.f32 %v12274_v58, %v12275_v38 }
 0x545   : > { %8814 = vmatpush3.bf16.xpose.msra.mxu1 %v11453_v48  ;;  %8878 = vmatpush3.bf16.xpose.msra.mxu0 %v11457_v59  ;;  %v12277_v48 = vld [vmem:[#allocation36_spill] sm:$0xff]  ;;  %v12278_v59 = vld [vmem:[#allocation55_spill] sm:$0xff] }
 0x546   : > { %8816 = vmatprep.subr.bf16.mxu1 %v11465_v52  ;;  %8880 = vmatprep.subr.bf16.mxu0 %v11469_v24 }
 0x54d   : > { %8818 = vmatpush3.bf16.xpose.msra.mxu1 %v11465_v52  ;;  %8882 = vmatpush3.bf16.xpose.msra.mxu0 %v11469_v24  ;;  %v12279_v52 = vsub.f32 %v12277_v48, %v12278_v59  ;;  %v12280_v24 = vld [vmem:[#allocation35_spill] sm:$0xff] }
 0x54e   : > { %8820 = vmatprep.subr.bf16.mxu1 %v11477_v60  ;;  %8884 = vmatprep.subr.bf16.mxu0 %v11481_v0 }
 0x555   : > { %8822 = vmatpush3.bf16.xpose.msra.mxu1 %v11477_v60  ;;  %8886 = vmatpush3.bf16.xpose.msra.mxu0 %v11481_v0  ;;  %v12281_v60 = vld [vmem:[#allocation53_spill] sm:$0xff]  ;;  %v12284_v0 = vld [vmem:[#allocation59_spill] sm:$0xff] }
 0x556   : > { %8888 = vmatprep.subr.bf16.mxu1 %v11497_v8  ;;  %v12282_v18 = vsub.f32 %v12280_v24, %v12281_v60  ;;  %v12285_v21 = vsub.f32 %v12283_v26, %v12284_v0 }
 0x55c   : > { %7760 = vmatmul.mubr.f32.vlgmr.msra.gmra.mrb[112].mxu1 %v11543_v29  ;;  %7872 = vmatmul.mubr.f32.vlgmr.msra.gmra.mrb[144].mxu0 %v11543_v29  ;;  %v12299_v29 = vld [vmem:[#allocation65_spill] sm:$0xff] }
 0x55d   : > { %7762 = vmatprep.mubr.f32.mxu1 %v11553_v35  ;;  %7874 = vmatprep.mubr.f32.mxu0 %v11553_v35  ;;  %v12302_v35 = vld [vmem:[#allocation71_spill] sm:$0xff] }
 0x55e   : > { %8890 = vmatpush3.bf16.xpose.msra.mxu1 %v11497_v8 }
 0x55f   : > { %8892 = vmatprep.subr.bf16.mxu1 %v11501_v20 }
 0x560   : > { %7763 = vmatmul.mubr.f32.gmra.mrb[114].mxu1 %v11551_v28  ;;  %7875 = vmatmul.mubr.f32.gmra.mrb[146].mxu0 %v11551_v28  ;;  %v12301_v28 = vld [vmem:[#allocation44_spill] sm:$0xff] }
 0x561   : > { %7765 = vmatprep.mubr.f32.mxu1 %v11557_v33  ;;  %7877 = vmatprep.mubr.f32.mxu0 %v11557_v33  ;;  %v12304_v33 = vld [vmem:[#allocation43_spill] sm:$0xff] }
 0x564   : > { %7766 = vmatmul.mubr.f32.gmra.mrb[116].mxu1 %v11555_v4  ;;  %7878 = vmatmul.mubr.f32.gmra.mrb[148].mxu0 %v11555_v4  ;;  %v12303_v4 = vsub.f32 %v12301_v28, %v12302_v35 }
 0x565   : > { %7768 = vmatprep.mubr.f32.mxu1 %v11565_v37  ;;  %7880 = vmatprep.mubr.f32.mxu0 %v11565_v37 }
 0x566   : > { %8894 = vmatpush3.bf16.xpose.msra.mxu1 %v11501_v20  ;;  %v12289_v20 = vld [vmem:[#allocation40_spill] sm:$0xff] }
 0x567   : > { %8896 = vmatprep.subr.bf16.mxu1 %v11505_v51 }
 0x568   : > { %7769 = vmatmul.mubr.f32.gmra.mrb[118].mxu1 %v11563_v15  ;;  %7881 = vmatmul.mubr.f32.gmra.mrb[150].mxu0 %v11563_v15  ;;  %v12305_v15 = vld [vmem:[#allocation69_spill] sm:$0xff] }
 0x569   : > { %7771 = vmatprep.mubr.f32.mxu1 %v11570_v31  ;;  %7883 = vmatprep.mubr.f32.mxu0 %v11570_v31  ;;  %v12306_v37 = vsub.f32 %v12304_v33, %v12305_v15  ;;  %v12311_v31 = vld [vmem:[#allocation73_spill] sm:$0xff] }
 0x56c   : > { %7772 = vmatmul.mubr.f32.gmra.mrb[120].mxu1 %v11567_v50  ;;  %7884 = vmatmul.mubr.f32.gmra.mrb[152].mxu0 %v11567_v50  ;;  %v12308_v50 = vld [vmem:[#allocation75_spill] sm:$0xff] }
 0x56d   : > { %7774 = vmatprep.mubr.f32.mxu1 %v11580_v13  ;;  %7886 = vmatprep.mubr.f32.mxu0 %v11580_v13  ;;  %v12309_v63 = vsub.f32 %v12307_v11, %v12308_v50  ;;  %v12319_v13 = vld [vmem:[#allocation58_spill] sm:$0xff] }
 0x56e   : > { %8898 = vmatpush3.bf16.xpose.msra.mxu1 %v11505_v51  ;;  %v12290_v51 = vld [vmem:[#allocation63_spill] sm:$0xff] }
 0x56f   : > { %8900 = vmatprep.subr.bf16.mxu1 %v11509_v56 }
 0x570   : > { %7775 = vmatmul.mubr.f32.gmra.mrb[122].mxu1 %v11577_v54  ;;  %7887 = vmatmul.mubr.f32.gmra.mrb[154].mxu0 %v11577_v54  ;;  %v12316_v54 = vld [vmem:[#allocation49_spill] sm:$0xff] }
 0x571   : > { %7777 = vmatprep.mubr.f32.mxu1 %v3534_v46  ;;  %7889 = vmatprep.mubr.f32.mxu0 %v3534_v46 }
 0x574   : > { %7778 = vmatmul.mubr.f32.gmra.mrb[124].mxu1 %v11583_v27  ;;  %7890 = vmatmul.mubr.f32.gmra.mrb[156].mxu0 %v11583_v27  ;;  %v12324_v27 = vld [vmem:[#allocation64_spill] sm:$0xff] }
 0x575   : > { %7780 = vmatprep.mubr.f32.mxu1 %v3536_v49  ;;  %7892 = vmatprep.mubr.f32.mxu0 %v3536_v49  ;;  %v12328_v49 = vld [vmem:[#allocation72_spill] sm:$0xff] }
 0x576   : > { %8902 = vmatpush3.bf16.xpose.msra.mxu1 %v11509_v56  ;;  %v12291_v56 = vsub.f32 %v12289_v20, %v12290_v51 }
 0x577   : > { %8904 = vmatprep.subr.bf16.mxu1 %v11513_v10 }
 0x578   : > { %7781 = vmatmul.mubr.f32.gmra.mrb[126].mxu1 %v3537_v6  ;;  %7893 = vmatmul.mubr.f32.gmra.mrb[158].mxu0 %v3537_v6 }
 0x579   : > { %7927 = vmatprep.mubr.f32.mxu1 %v12271_v45 }
 0x57e   : > { %8906 = vmatpush3.bf16.xpose.msra.mxu1 %v11513_v10  ;;  %v12292_v10 = vld [vmem:[#allocation39_spill] sm:$0xff] }
 0x57f   : > { %8908 = vmatprep.subr.bf16.mxu1 %v11517_v36 }
 0x586   : > { %8910 = vmatpush3.bf16.xpose.msra.mxu1 %v11517_v36  ;;  %v12293_v36 = vld [vmem:[#allocation61_spill] sm:$0xff] }
 0x587   : > { %8912 = vmatprep.subr.bf16.mxu1 %v11521_v40 }
 0x58e   : > { %8914 = vmatpush3.bf16.xpose.msra.mxu1 %v11521_v40  ;;  %v12294_v40 = vsub.f32 %v12292_v10, %v12293_v36 }
 0x58f   : > { %8916 = vmatprep.subr.bf16.mxu1 %v11527_v2 }
 0x596   : > { %8918 = vmatpush3.bf16.xpose.msra.mxu1 %v11527_v2  ;;  %v12295_v2 = vld [vmem:[#allocation42_spill] sm:$0xff] }
 0x597   : > { %8920 = vmatprep.subr.bf16.mxu1 %v11495_v7  ;;  %v12297_v23 = vsub.f32 %v12295_v2, %v12296_v32 }
 0x59d   : > { %7928 = vmatmul.mubr.f32.vlgmr.msra.gmra.mrb[128].mxu1 %v12272_v19 }
 0x59e   : > { %7930 = vmatprep.mubr.f32.mxu1 %v12273_v25  ;;  %8922 = vmatpush3.bf16.xpose.msra.mxu1 %v11495_v7  ;;  %v12287_v7 = vld [vmem:[#allocation57_spill] sm:$0xff] }
 0x59f   : > { %8924 = vmatprep.subr.bf16.mxu1 %v11499_v16  ;;  %v12288_v8 = vsub.f32 %v12286_v43, %v12287_v7 }
 0x5a1   : > { %7931 = vmatmul.mubr.f32.gmra.mrb[130].mxu1 %v12276_v55 }
 0x5a2   : > { %7933 = vmatprep.mubr.f32.mxu1 %v12279_v52 }
 0x5a5   : > { %7934 = vmatmul.mubr.f32.gmra.mrb[132].mxu1 %v12282_v18 }
 0x5a6   : > { %7936 = vmatprep.mubr.f32.mxu1 %v12285_v21  ;;  %8926 = vmatpush3.bf16.xpose.msra.mxu1 %v11499_v16  ;;  %v12298_v16 = vld [vmem:[#allocation41_spill] sm:$0xff] }
 0x5a7   : > { %8928 = vmatprep.subr.bf16.mxu1 %v11503_v44  ;;  %v12300_v42 = vsub.f32 %v12298_v16, %v12299_v29 }
 0x5a9   : > { %7937 = vmatmul.mubr.f32.gmra.mrb[134].mxu1 %v12288_v8 }
 0x5aa   : > { %7939 = vmatprep.mubr.f32.mxu1 %v12291_v56 }
 0x5ad   : > { %7940 = vmatmul.mubr.f32.gmra.mrb[136].mxu1 %v12294_v40 }
 0x5ae   : > { %7942 = vmatprep.mubr.f32.mxu1 %v12297_v23  ;;  %8930 = vmatpush3.bf16.xpose.msra.mxu1 %v11503_v44  ;;  %v12310_v44 = vld [vmem:[#allocation45_spill] sm:$0xff] }
 0x5af   : > { %8932 = vmatprep.subr.bf16.mxu1 %v11507_v53  ;;  %v12312_v5 = vsub.f32 %v12310_v44, %v12311_v31 }
 0x5b1   : > { %7943 = vmatmul.mubr.f32.gmra.mrb[138].mxu1 %v12300_v42 }
 0x5b2   : > { %7945 = vmatprep.mubr.f32.mxu1 %v12303_v4 }
 0x5b5   : > { %7946 = vmatmul.mubr.f32.gmra.mrb[140].mxu1 %v12306_v37 }
 0x5b6   : > { %7948 = vmatprep.mubr.f32.mxu1 %v12309_v63  ;;  %8934 = vmatpush3.bf16.xpose.msra.mxu1 %v11507_v53  ;;  %v12314_v53 = vld [vmem:[#allocation47_spill] sm:$0xff] }
 0x5b7   : > { %8936 = vmatprep.subr.bf16.mxu1 %v11511_v9 }
 0x5b9   : > { %7949 = vmatmul.mubr.f32.gmra.mrb[142].mxu1 %v12312_v5 }
 0x5ba   : > { %7983 = vmatprep.mubr.f32.mxu1 %v12313_v12 }
 0x5be   : > { %8938 = vmatpush3.bf16.xpose.msra.mxu1 %v11511_v9  ;;  %v12318_v9 = vld [vmem:[#allocation52_spill] sm:$0xff] }
 0x5bf   : > { %8940 = vmatprep.subr.bf16.mxu1 %v11515_v22 }
 0x5c6   : > { %8942 = vmatpush3.bf16.xpose.msra.mxu1 %v11515_v22  ;;  %v12320_v22 = vld [vmem:[#allocation56_spill] sm:$0xff] }
 0x5c7   : > { %8944 = vmatprep.subr.bf16.mxu1 %v11519_v57 }
 0x5ce   : > { %8946 = vmatpush3.bf16.xpose.msra.mxu1 %v11519_v57  ;;  %v12322_v57 = vld [vmem:[#allocation60_spill] sm:$0xff] }
 0x5cf   : > { %8948 = vmatprep.subr.bf16.mxu1 %v11524_v1 }
 0x5d6   : > { %8950 = vmatpush3.bf16.xpose.msra.mxu1 %v11524_v1 }
 0x5dd   : > { %7984 = vmatmul.mubr.f32.vlgmr.msra.gmra.mrb[128].mxu1 %v12314_v53 }
 0x5de   : > { %7986 = vmatprep.mubr.f32.mxu1 %v12315_v47 }
 0x5e1   : > { %7987 = vmatmul.mubr.f32.gmra.mrb[130].mxu1 %v12316_v54 }
 0x5e2   : > { %7989 = vmatprep.mubr.f32.mxu1 %v12317_v17 }
 0x5e5   : > { %7990 = vmatmul.mubr.f32.gmra.mrb[132].mxu1 %v12318_v9 }
 0x5e6   : > { %7992 = vmatprep.mubr.f32.mxu1 %v12319_v13 }
 0x5e9   : > { %7993 = vmatmul.mubr.f32.gmra.mrb[134].mxu1 %v12320_v22 }
 0x5ea   : > { %7995 = vmatprep.mubr.f32.mxu1 %v12321_v41 }
 0x5ed   : > { %7996 = vmatmul.mubr.f32.gmra.mrb[136].mxu1 %v12322_v57 }
 0x5ee   : > { %7998 = vmatprep.mubr.f32.mxu1 %v12323_v61 }
 0x5ef   : > { %v7817_v1 = vpop.f32.mrb[128].mxu0 }
 0x5f0   : > { %v4184_v3 = vpop.f32.mrb[129].mxu0 }
 0x5f1   : > { %7999 = vmatmul.mubr.f32.gmra.mrb[138].mxu1 %v12324_v27 }
 0x5f2   : > { %8001 = vmatprep.mubr.f32.mxu1 %v12325_v62 }
 0x5f3   : > { %v7820_v46 = vpop.f32.mrb[130].mxu0 }
 0x5f4   : > { %v4194_v34 = vpop.f32.mrb[131].mxu0 }
 0x5f5   : > { %8002 = vmatmul.mubr.f32.gmra.mrb[140].mxu1 %v12326_v14 }
 0x5f6   : > { %8004 = vmatprep.mubr.f32.mxu1 %v12327_v39 }
 0x5f7   : > { %v7823_v6 = vpop.f32.mrb[132].mxu0 }
 0x5f8   : > { %v4204_v30 = vpop.f32.mrb[133].mxu0 }
 0x5f9   : > { %8005 = vmatmul.mubr.f32.gmra.mrb[142].mxu1 %v12328_v49 }
 0x5fb   : > { %v7826_v45 = vpop.f32.mrb[134].mxu0 }
 0x5fc   : > { %v4214_v19 = vpop.f32.mrb[135].mxu0 }
 0x5ff   : > { %v7829_v25 = vpop.f32.mrb[136].mxu0 }
 0x600   : > { %v4224_v58 = vpop.f32.mrb[137].mxu0 }
 0x603   : > { %v11728_v38 = vpop.f32.mrb[138].mxu0 }
 0x604   : > { %v11730_v55 = vpop.f32.mrb[139].mxu0 }
 0x607   : > { %v11732_v48 = vpop.f32.mrb[140].mxu0 }
 0x608   : > { %v11734_v59 = vpop.f32.mrb[141].mxu0 }
 0x60b   : > { %v11736_v52 = vpop.f32.mrb[142].mxu0 }
 0x60c   : > { %v11738_v24 = vpop.f32.mrb[143].mxu0 }
 0x62f   : > { %v7761_v60 = vpop.f32.mrb[112].mxu1  ;;  %v7873_v18 = vpop.f32.mrb[144].mxu0 }
 0x630   : > { %v4409_v26 = vsub.f32 %v7817_v1, %v7873_v18  ;;  %v4039_v0 = vpop.f32.mrb[113].mxu1  ;;  %v4329_v21 = vpop.f32.mrb[145].mxu0 }
 0x631   : > { %v8951_v43 = vpack.c.bf16 %v7761_v60, %v4039_v0  ;;  %v4408_v7 = vsub.f32 %v4184_v3, %v4329_v21  ;;  %v4714_v0 = vld [vmem:[%s682_s21] sm:$0x1] }
 0x632   : > { %v4715_v21 = vsub.f32 1.0, %v4714_v0 }
 0x633   : > { %v11740_v8 = vpack.c.bf16 %v4409_v26, %v4408_v7  ;;  %v7764_v20 = vpop.f32.mrb[114].mxu1  ;;  %v7876_v51 = vpop.f32.mrb[146].mxu0  ;;  %8952 = vmatprep.subr.bf16.mxu0 %v8951_v43 }
 0x634   : > { %v4411_v56 = vsub.f32 %v7820_v46, %v7876_v51  ;;  %v4049_v10 = vpop.f32.mrb[115].mxu1  ;;  %v4339_v36 = vpop.f32.mrb[147].mxu0  ;;  %8954 = vmatpush3.bf16.msra.mxu0 %v8951_v43  ;;  %v4716_v43 = vmul.f32 -100000.0, %v4715_v21 }
 0x635   : > { %v8955_v40 = vpack.c.bf16 %v7764_v20, %v4049_v10  ;;  %v4410_v2 = vsub.f32 %v4194_v34, %v4339_v36 }
 0x637   : > { %v11742_v32 = vpack.c.bf16 %v4411_v56, %v4410_v2  ;;  %v7767_v23 = vpop.f32.mrb[116].mxu1  ;;  %v7879_v16 = vpop.f32.mrb[148].mxu0  ;;  %8956 = vmatprep.subr.bf16.mxu0 %v8955_v40 }
 0x638   : > { %v4413_v29 = vsub.f32 %v7823_v6, %v7879_v16  ;;  %v4059_v42 = vpop.f32.mrb[117].mxu1  ;;  %v4349_v28 = vpop.f32.mrb[149].mxu0  ;;  %8958 = vmatpush3.bf16.msra.mxu0 %v8955_v40 }
 0x639   : > { %v8959_v35 = vpack.c.bf16 %v7767_v23, %v4059_v42  ;;  %v4412_v4 = vsub.f32 %v4204_v30, %v4349_v28 }
 0x63b   : > { %v11744_v33 = vpack.c.bf16 %v4413_v29, %v4412_v4  ;;  %v7770_v15 = vpop.f32.mrb[118].mxu1  ;;  %v7882_v37 = vpop.f32.mrb[150].mxu0  ;;  %8960 = vmatprep.subr.bf16.mxu0 %v8959_v35 }
 0x63c   : > { %v4415_v11 = vsub.f32 %v7826_v45, %v7882_v37  ;;  %v4069_v50 = vpop.f32.mrb[119].mxu1  ;;  %v4359_v63 = vpop.f32.mrb[151].mxu0  ;;  %8962 = vmatpush3.bf16.msra.mxu0 %v8959_v35 }
 0x63d   : > { %v8963_v44 = vpack.c.bf16 %v7770_v15, %v4069_v50  ;;  %v4414_v31 = vsub.f32 %v4214_v19, %v4359_v63 }
 0x63f   : > { %v11746_v5 = vpack.c.bf16 %v4415_v11, %v4414_v31  ;;  %v7773_v12 = vpop.f32.mrb[120].mxu1  ;;  %v7885_v53 = vpop.f32.mrb[152].mxu0  ;;  %8964 = vmatprep.subr.bf16.mxu0 %v8963_v44 }
 0x640   : > { %v4417_v47 = vsub.f32 %v7829_v25, %v7885_v53  ;;  %v4079_v54 = vpop.f32.mrb[121].mxu1  ;;  %v4369_v17 = vpop.f32.mrb[153].mxu0  ;;  %8966 = vmatpush3.bf16.msra.mxu0 %v8963_v44 }
 0x641   : > { %v8967_v9 = vpack.c.bf16 %v7773_v12, %v4079_v54  ;;  %v4416_v13 = vsub.f32 %v4224_v58, %v4369_v17 }
 0x643   : > { %v11748_v22 = vpack.c.bf16 %v4417_v47, %v4416_v13  ;;  %v7776_v41 = vpop.f32.mrb[122].mxu1  ;;  %v7888_v57 = vpop.f32.mrb[154].mxu0  ;;  %8968 = vmatprep.subr.bf16.mxu0 %v8967_v9 }
 0x644   : > { %v4419_v61 = vsub.f32 %v11728_v38, %v7888_v57  ;;  %v4089_v1 = vpop.f32.mrb[123].mxu1  ;;  %v4379_v3 = vpop.f32.mrb[155].mxu0  ;;  %8970 = vmatpush3.bf16.msra.mxu0 %v8967_v9 }
 0x645   : > { %v8971_v27 = vpack.c.bf16 %v7776_v41, %v4089_v1  ;;  %v4418_v62 = vsub.f32 %v11730_v55, %v4379_v3 }
 0x647   : > { %v11752_v46 = vpack.c.bf16 %v4419_v61, %v4418_v62  ;;  %v7779_v34 = vpop.f32.mrb[124].mxu1  ;;  %v7891_v14 = vpop.f32.mrb[156].mxu0  ;;  %8972 = vmatprep.subr.bf16.mxu0 %v8971_v27 }
 0x648   : > { %v4421_v39 = vsub.f32 %v11732_v48, %v7891_v14  ;;  %v4099_v6 = vpop.f32.mrb[125].mxu1  ;;  %v4389_v30 = vpop.f32.mrb[157].mxu0  ;;  %8974 = vmatpush3.bf16.msra.mxu0 %v8971_v27 }
 0x649   : > { %v8975_v49 = vpack.c.bf16 %v7779_v34, %v4099_v6  ;;  %v4420_v45 = vsub.f32 %v11734_v59, %v4389_v30  ;;  %v4718_v59 = vlaneseq }
 0x64b   : > { %v11756_v19 = vpack.c.bf16 %v4421_v39, %v4420_v45  ;;  %v7782_v25 = vpop.f32.mrb[126].mxu1  ;;  %v7894_v58 = vpop.f32.mrb[158].mxu0  ;;  %8976 = vmatprep.subr.bf16.mxu0 %v8975_v49 }
 0x64c   : > { %v4423_v38 = vsub.f32 %v11736_v52, %v7894_v58  ;;  %v4109_v55 = vpop.f32.mrb[127].mxu1  ;;  %v4399_v60 = vpop.f32.mrb[159].mxu0  ;;  %8978 = vmatpush3.bf16.msra.mxu0 %v8975_v49  ;;  %v4719_v52 = vshrl.u32 %v4718_v59, 7 }
 0x64d   : > { %v8979_v18 = vpack.c.bf16 %v7782_v25, %v4109_v55  ;;  %v4422_v48 = vsub.f32 %v11738_v24, %v4399_v60 }
 0x64e   : > { %v4720_v7 = vsub.s32 0, %v4719_v52 }
 0x64f   : > { %v11760_v26 = vpack.c.bf16 %v4423_v38, %v4422_v48  ;;  %8980 = vmatprep.subr.bf16.mxu0 %v8979_v18 }
 0x650   : > { %8982 = vmatpush3.bf16.msra.mxu0 %v8979_v18  ;;  %v4721_v20 = vrot.slane %v4716_v43, %v4720_v7 }
 0x651   : > { %8984 = vmatprep.subr.bf16.mxu0 %v11740_v8 }
 0x6b0   : > { %v7985_v51 = vpop.f32.mrb[128].mxu1 }
 0x6b1   : > { %v4724_v56 = vadd.f32 %v7985_v51, %v4721_v20  ;;  %v4635_v24 = vpop.f32.mrb[129].mxu1 }
 0x6b2   : > { %v4723_v10 = vadd.f32 %v4721_v20, %v4635_v24 }
 0x6b4   : > { %4739 = vmax.xlane.f32.xlu0 %v4723_v10  ;;  %v7988_v36 = vpop.f32.mrb[130].mxu1 }
 0x6b5   : > { %v4726_v40 = vadd.f32 %v7988_v36, %v4721_v20  ;;  %v4645_v2 = vpop.f32.mrb[131].mxu1 }
 0x6b6   : > { %v4725_v23 = vadd.f32 %v4721_v20, %v4645_v2 }
 0x6b8   : > { %4741 = vmax.xlane.f32.xlu0 %v4724_v56  ;;  %4743 = vmax.xlane.f32.xlu1 %v4725_v23  ;;  %v7991_v16 = vpop.f32.mrb[132].mxu1 }
 0x6b9   : > { %v4728_v29 = vadd.f32 %v7991_v16, %v4721_v20  ;;  %v4655_v42 = vpop.f32.mrb[133].mxu1 }
 0x6ba   : > { %v4727_v28 = vadd.f32 %v4721_v20, %v4655_v42 }
 0x6bc   : > { %4745 = vmax.xlane.f32.xlu1 %v4726_v40  ;;  %4747 = vmax.xlane.f32.xlu0 %v4727_v28  ;;  %v7994_v35 = vpop.f32.mrb[134].mxu1 }
 0x6bd   : > { %v11767_v4 = vadd.f32 %v7994_v35, %v4721_v20  ;;  %v4665_v15 = vpop.f32.mrb[135].mxu1 }
 0x6be   : > { %v4729_v37 = vadd.f32 %v4721_v20, %v4665_v15 }
 0x6c0   : > { %4749 = vmax.xlane.f32.xlu1 %v4728_v29  ;;  %4751 = vmax.xlane.f32.xlu0 %v4729_v37  ;;  %v7997_v11 = vpop.f32.mrb[136].mxu1 }
 0x6c1   : > { %v11769_v50 = vadd.f32 %v7997_v11, %v4721_v20  ;;  %v4675_v63 = vpop.f32.mrb[137].mxu1 }
 0x6c2   : > { %v4731_v44 = vadd.f32 %v4721_v20, %v4675_v63 }
 0x6c4   : > { %4753 = vmax.xlane.f32.xlu1 %v11767_v4  ;;  %4755 = vmax.xlane.f32.xlu0 %v4731_v44  ;;  %v8000_v31 = vpop.f32.mrb[138].mxu1 }
 0x6c5   : > { %v11772_v12 = vadd.f32 %v8000_v31, %v4721_v20  ;;  %v4685_v53 = vpop.f32.mrb[139].mxu1 }
 0x6c6   : > { %v11774_v47 = vadd.f32 %v4721_v20, %v4685_v53 }
 0x6c8   : > { %4757 = vmax.xlane.f32.xlu1 %v11769_v50  ;;  %4759 = vmax.xlane.f32.xlu0 %v11774_v47  ;;  %v8003_v54 = vpop.f32.mrb[140].mxu1 }
 0x6c9   : > { %v11778_v17 = vadd.f32 %v8003_v54, %v4721_v20  ;;  %v4695_v9 = vpop.f32.mrb[141].mxu1 }
 0x6ca   : > { %v11780_v13 = vadd.f32 %v4721_v20, %v4695_v9 }
 0x6cc   : > { %4761 = vmax.xlane.f32.xlu1 %v11772_v12  ;;  %4763 = vmax.xlane.f32.xlu0 %v11780_v13  ;;  %v8006_v41 = vpop.f32.mrb[142].mxu1 }
 0x6cd   : > { %v11784_v57 = vadd.f32 %v8006_v41, %v4721_v20  ;;  %v4705_v61 = vpop.f32.mrb[143].mxu1 }
 0x6ce   : > { %v11786_v1 = vadd.f32 %v4721_v20, %v4705_v61 }
 0x6d0   : > { %4765 = vmax.xlane.f32.xlu1 %v11778_v17  ;;  %4767 = vmax.xlane.f32.xlu0 %v11786_v1 }
 0x6d4   : > { %4769 = vmax.xlane.f32.xlu1 %v11784_v57 }
 0x741   : > { %v4740_v3 = vpop.xlane.xlu0 %4739 }
 0x742   : > { %v4771_v27 = vsub.f32 %v4723_v10, %v4740_v3 }
 0x744   : > { %v4787_v62 = vmul.f32 1.442695, %v4771_v27 }
 0x745   : > { %v4742_v34 = vpop.xlane.xlu0 %4741  ;;  %v4744_v14 = vpop.xlane.xlu1 %4743 }
 0x746   : > { %9256 = vpow2.f32 %v4787_v62  ;;  %v4772_v39 = vsub.f32 %v4724_v56, %v4742_v34  ;;  %v4773_v6 = vsub.f32 %v4725_v23, %v4744_v14 }
 0x748   : > { %v4789_v30 = vmul.f32 1.442695, %v4772_v39  ;;  %v4791_v49 = vmul.f32 1.442695, %v4773_v6 }
 0x749   : > { %v4746_v45 = vpop.xlane.xlu1 %4745  ;;  %v4748_v25 = vpop.xlane.xlu0 %4747 }
 0x74a   : > { %9258 = vpow2.f32 %v4789_v30  ;;  %v4774_v58 = vsub.f32 %v4726_v40, %v4746_v45  ;;  %v4775_v38 = vsub.f32 %v4727_v28, %v4748_v25  ;;  %v5174_v45 = vld [vmem:[%s11852_s11 + $0x8] sm:$0xff]  ;;  %v5173_v25 = vld [vmem:[%s11852_s11] sm:$0xff] }
 0x74b   : > { %9260 = vpow2.f32 %v4791_v49  ;;  %v9705_v49 = vmov 0  }
 0x74c   : > { %v4793_v55 = vmul.f32 1.442695, %v4774_v58  ;;  %v4795_v60 = vmul.f32 1.442695, %v4775_v38  ;;  %9255 = vset.pattern.permute.xlu1 %v9705_v49  ;;  %9254 = vset.pattern.permute.xlu0 %v9705_v49  ;;  %v5175_v58 = vld [vmem:[%s11852_s11 + $0x10] sm:$0xff]  ;;  %v5182_v38 = vld [vmem:[%s11852_s11 + $0x48] sm:$0xff] }
 0x74d   : > { %v4750_v18 = vpop.xlane.xlu1 %4749  ;;  %v4752_v48 = vpop.xlane.xlu0 %4751 }
 0x74e   : > { %9262 = vpow2.f32 %v4793_v55  ;;  %v4776_v59 = vsub.f32 %v4728_v29, %v4750_v18  ;;  %v4777_v0 = vsub.f32 %v4729_v37, %v4752_v48  ;;  %v5176_v55 = vld [vmem:[%s11852_s11 + $0x18] sm:$0xff]  ;;  %v5177_v18 = vld [vmem:[%s11852_s11 + $0x20] sm:$0xff]  ;;  %v5186_v48 = vld [vmem:[%s11852_s11 + $0x68] sm:$0xff] }
 0x74f   : > { %9264 = vpow2.f32 %v4795_v60  ;;  %v5184_v60 = vld [vmem:[%s11852_s11 + $0x58] sm:$0xff] }
 0x750   : > { %v11791_v21 = vpop.eup %9256  ;;  %v4797_v52 = vmul.f32 1.442695, %v4776_v59  ;;  %v4799_v43 = vmul.f32 1.442695, %v4777_v0  ;;  %v5178_v59 = vld [vmem:[%s11852_s11 + $0x28] sm:$0xff]  ;;  %v5188_v0 = vld [vmem:[%s11852_s11 + $0x78] sm:$0xff] }
 0x751   : > { %v4754_v7 = vpop.xlane.xlu1 %4753  ;;  %v4756_v20 = vpop.xlane.xlu0 %4755  ;;  %4819 = vadd.xlane.f32.xlu0 %v11791_v21 }
 0x752   : > { %9266 = vpow2.f32 %v4797_v52  ;;  %v4778_v51 = vsub.f32 %v11767_v4, %v4754_v7  ;;  %v4779_v56 = vsub.f32 %v4731_v44, %v4756_v20  ;;  %v5179_v52 = vld [vmem:[%s11852_s11 + $0x30] sm:$0xff]  ;;  %v5181_v7 = vld [vmem:[%s11852_s11 + $0x40] sm:$0xff] }
 0x753   : > { %9268 = vpow2.f32 %v4799_v43  ;;  %v5180_v43 = vld [vmem:[%s11852_s11 + $0x38] sm:$0xff]  ;;  %v5183_v20 = vld [vmem:[%s11852_s11 + $0x50] sm:$0xff] }
 0x754   : > { %v11795_v24 = vpop.eup %9258  ;;  %v4801_v10 = vmul.f32 1.442695, %v4778_v51  ;;  %v4803_v36 = vmul.f32 1.442695, %v4779_v56  ;;  %v5185_v51 = vld [vmem:[%s11852_s11 + $0x60] sm:$0xff]  ;;  %v5187_v56 = vld [vmem:[%s11852_s11 + $0x70] sm:$0xff] }
 0x755   : > { %v11797_v40 = vpop.eup %9260  ;;  %v4758_v2 = vpop.xlane.xlu1 %4757  ;;  %4821 = vadd.xlane.f32.xlu1 %v11795_v24 }
 0x756   : > { %v4760_v23 = vpop.xlane.xlu0 %4759  ;;  %9270 = vpow2.f32 %v4801_v10  ;;  %v4780_v16 = vsub.f32 %v11769_v50, %v4758_v2  ;;  %4823 = vadd.xlane.f32.xlu0 %v11797_v40 }
 0x757   : > { %v4781_v29 = vsub.f32 %v11774_v47, %v4760_v23  ;;  %9272 = vpow2.f32 %v4803_v36 }
 0x758   : > { %v11803_v42 = vpop.eup %9262  ;;  %v4805_v28 = vmul.f32 1.442695, %v4780_v16 }
 0x759   : > { %v4807_v35 = vmul.f32 1.442695, %v4781_v29  ;;  %v11805_v4 = vpop.eup %9264  ;;  %v4762_v15 = vpop.xlane.xlu1 %4761  ;;  %4825 = vadd.xlane.f32.xlu1 %v11803_v42 }
 0x75a   : > { %v4764_v37 = vpop.xlane.xlu0 %4763  ;;  %9274 = vpow2.f32 %v4805_v28  ;;  %v4782_v11 = vsub.f32 %v11772_v12, %v4762_v15  ;;  %4827 = vadd.xlane.f32.xlu0 %v11805_v4 }
 0x75b   : > { %v4783_v50 = vsub.f32 %v11780_v13, %v4764_v37  ;;  %9276 = vpow2.f32 %v4807_v35 }
 0x75c   : > { %v11811_v63 = vpop.eup %9266  ;;  %v4809_v44 = vmul.f32 1.442695, %v4782_v11 }
 0x75d   : > { %v4811_v31 = vmul.f32 1.442695, %v4783_v50  ;;  %v11813_v53 = vpop.eup %9268  ;;  %v4766_v47 = vpop.xlane.xlu1 %4765  ;;  %4829 = vadd.xlane.f32.xlu1 %v11811_v63 }
 0x75e   : > { %v4768_v54 = vpop.xlane.xlu0 %4767  ;;  %9278 = vpow2.f32 %v4809_v44  ;;  %v4784_v9 = vsub.f32 %v11778_v17, %v4766_v47  ;;  %4831 = vadd.xlane.f32.xlu0 %v11813_v53 }
 0x75f   : > { %v4785_v12 = vsub.f32 %v11786_v1, %v4768_v54  ;;  %9280 = vpow2.f32 %v4811_v31 }
 0x760   : > { %v11819_v13 = vpop.eup %9270  ;;  %v4813_v41 = vmul.f32 1.442695, %v4784_v9 }
 0x761   : > { %v4815_v61 = vmul.f32 1.442695, %v4785_v12  ;;  %v11821_v3 = vpop.eup %9272  ;;  %4833 = vadd.xlane.f32.xlu1 %v11819_v13  ;;  %v4770_v27 = vpop.xlane.xlu1 %4769 }
 0x762   : > { %9282 = vpow2.f32 %v4813_v41  ;;  %v4786_v62 = vsub.f32 %v11784_v57, %v4770_v27  ;;  %4835 = vadd.xlane.f32.xlu0 %v11821_v3 }
 0x763   : > { %9284 = vpow2.f32 %v4815_v61 }
 0x764   : > { %v11826_v17 = vpop.eup %9274  ;;  %v4817_v1 = vmul.f32 1.442695, %v4786_v62 }
 0x765   : > { %v11828_v34 = vpop.eup %9276  ;;  %4837 = vadd.xlane.f32.xlu1 %v11826_v17 }
 0x766   : > { %9286 = vpow2.f32 %v4817_v1  ;;  %4839 = vadd.xlane.f32.xlu0 %v11828_v34 }
 0x768   : > { %v11832_v14 = vpop.eup %9278 }
 0x769   : > { %v11834_v39 = vpop.eup %9280  ;;  %4841 = vadd.xlane.f32.xlu1 %v11832_v14 }
 0x76a   : > { %4843 = vadd.xlane.f32.xlu0 %v11834_v39 }
 0x76c   : > { %v11838_v57 = vpop.eup %9282 }
 0x76d   : > { %v11840_v6 = vpop.eup %9284  ;;  %4845 = vadd.xlane.f32.xlu1 %v11838_v57 }
 0x76e   : > { %4847 = vadd.xlane.f32.xlu0 %v11840_v6 }
 0x770   : > { %v11844_v30 = vpop.eup %9286 }
 0x771   : > { %4849 = vadd.xlane.f32.xlu1 %v11844_v30 }
 0x782   : > { %5196 = vperm.xlu1 %9255, %v5174_v45  }
 0x784   : > { %5191 = vperm.xlu0 %9254, %v5173_v25  }
 0x786   : > { %5201 = vperm.xlu1 %9255, %v5175_v58  }
 0x788   : > { %5236 = vperm.xlu0 %9254, %v5182_v38  }
 0x78a   : > { %5206 = vperm.xlu1 %9255, %v5176_v55  }
 0x78c   : > { %5246 = vperm.xlu0 %9254, %v5184_v60  }
 0x78e   : > { %5211 = vperm.xlu1 %9255, %v5177_v18  }
 0x790   : > { %5256 = vperm.xlu0 %9254, %v5186_v48  }
 0x792   : > { %5216 = vperm.xlu1 %9255, %v5178_v59  }
 0x794   : > { %5266 = vperm.xlu0 %9254, %v5188_v0  }
 0x796   : > { %5221 = vperm.xlu1 %9255, %v5179_v52  }
 0x79a   : > { %5226 = vperm.xlu1 %9255, %v5180_v43  }
 0x79e   : > { %5231 = vperm.xlu1 %9255, %v5181_v7  }
 0x7a2   : > { %5241 = vperm.xlu1 %9255, %v5183_v20  }
 0x7a6   : > { %5251 = vperm.xlu1 %9255, %v5185_v51  }
 0x7aa   : > { %5261 = vperm.xlu1 %9255, %v5187_v56  }
 0x7de   : > { %v4820_v10 = vpop.xlane.xlu0 %4819 }
 0x7df   : > { %9288 = vrcp.f32 %v4820_v10 }
 0x7e2   : > { %v4822_v36 = vpop.xlane.xlu1 %4821 }
 0x7e3   : > { %9290 = vrcp.f32 %v4822_v36  ;;  %v4824_v2 = vpop.xlane.xlu0 %4823 }
 0x7e4   : > { %9292 = vrcp.f32 %v4824_v2 }
 0x7e6   : > { %v4826_v23 = vpop.xlane.xlu1 %4825 }
 0x7e7   : > { %9294 = vrcp.f32 %v4826_v23  ;;  %v4828_v16 = vpop.xlane.xlu0 %4827 }
 0x7e8   : > { %9296 = vrcp.f32 %v4828_v16 }
 0x7e9   : > { %v9289_v29 = vpop.eup %9288 }
 0x7ea   : > { %v4830_v28 = vpop.xlane.xlu1 %4829  ;;  %v11871_v35 = vmul.f32 %v9289_v29, %v11791_v21 }
 0x7eb   : > { %9298 = vrcp.f32 %v4830_v28  ;;  %v4832_v15 = vpop.xlane.xlu0 %4831 }
 0x7ec   : > { %9300 = vrcp.f32 %v4832_v15  ;;  %8039 = vmatprep.mubr.f32.mxu0 %v11871_v35 }
 0x7ed   : > { %v9291_v37 = vpop.eup %9290 }
 0x7ee   : > { %v9293_v11 = vpop.eup %9292  ;;  %v11875_v50 = vmul.f32 %v9291_v37, %v11795_v24  ;;  %v4834_v44 = vpop.xlane.xlu1 %4833 }
 0x7ef   : > { %9302 = vrcp.f32 %v4834_v44  ;;  %v4836_v31 = vpop.xlane.xlu0 %4835  ;;  %v11878_v47 = vmul.f32 %v9293_v11, %v11797_v40 }
 0x7f0   : > { %9304 = vrcp.f32 %v4836_v31  ;;  %8040 = vmatmul.mubr.f32.vlgmr.msra.gmra.mrb[160].mxu0 %v11875_v50 }
 0x7f1   : > { %v9295_v21 = vpop.eup %9294  ;;  %8986 = vmatpush3.bf16.msra.mxu0 %v11740_v8  ;;  %8042 = vmatprep.mubr.f32.mxu0 %v11878_v47 }
 0x7f2   : > { %v9297_v54 = vpop.eup %9296  ;;  %8988 = vmatprep.subr.bf16.mxu0 %v11742_v32  ;;  %v4838_v9 = vpop.xlane.xlu1 %4837  ;;  %v11885_v24 = vmul.f32 %v9295_v21, %v11803_v42 }
 0x7f3   : > { %9306 = vrcp.f32 %v4838_v9  ;;  %v4840_v12 = vpop.xlane.xlu0 %4839  ;;  %v11888_v40 = vmul.f32 %v9297_v54, %v11805_v4 }
 0x7f4   : > { %9308 = vrcp.f32 %v4840_v12  ;;  %8043 = vmatmul.mubr.f32.gmra.mrb[162].mxu0 %v11885_v24 }
 0x7f5   : > { %v9299_v41 = vpop.eup %9298  ;;  %8990 = vmatpush3.bf16.msra.mxu0 %v11742_v32  ;;  %8045 = vmatprep.mubr.f32.mxu0 %v11888_v40 }
 0x7f6   : > { %v9301_v8 = vpop.eup %9300  ;;  %8992 = vmatprep.subr.bf16.mxu0 %v11744_v33  ;;  %v4842_v61 = vpop.xlane.xlu1 %4841  ;;  %v4862_v42 = vmul.f32 %v9299_v41, %v11811_v63 }
 0x7f7   : > { %9310 = vrcp.f32 %v4842_v61  ;;  %v4844_v27 = vpop.xlane.xlu0 %4843  ;;  %v4864_v62 = vmul.f32 %v9301_v8, %v11813_v53 }
 0x7f8   : > { %9312 = vrcp.f32 %v4844_v27  ;;  %8046 = vmatmul.mubr.f32.gmra.mrb[164].mxu0 %v4862_v42 }
 0x7f9   : > { %v9303_v4 = vpop.eup %9302  ;;  %8994 = vmatpush3.bf16.msra.mxu0 %v11744_v33  ;;  %8048 = vmatprep.mubr.f32.mxu0 %v4864_v62 }
 0x7fa   : > { %v9305_v1 = vpop.eup %9304  ;;  %8996 = vmatprep.subr.bf16.mxu0 %v11746_v5  ;;  %v4846_v32 = vpop.xlane.xlu1 %4845  ;;  %v4866_v49 = vmul.f32 %v9303_v4, %v11819_v13 }
 0x7fb   : > { %9314 = vrcp.f32 %v4846_v32  ;;  %v4848_v45 = vpop.xlane.xlu0 %4847  ;;  %v4868_v63 = vmul.f32 %v9305_v1, %v11821_v3 }
 0x7fc   : > { %9316 = vrcp.f32 %v4848_v45  ;;  %8049 = vmatmul.mubr.f32.gmra.mrb[166].mxu0 %v4866_v49 }
 0x7fd   : > { %v9307_v25 = vpop.eup %9306  ;;  %8998 = vmatpush3.bf16.msra.mxu0 %v11746_v5  ;;  %8051 = vmatprep.mubr.f32.mxu0 %v4868_v63 }
 0x7fe   : > { %v9309_v53 = vpop.eup %9308  ;;  %9000 = vmatprep.subr.bf16.mxu0 %v11748_v22  ;;  %v4850_v33 = vpop.xlane.xlu1 %4849  ;;  %v4870_v58 = vmul.f32 %v9307_v25, %v11826_v17 }
 0x7ff   : > { %9318 = vrcp.f32 %v4850_v33  ;;  %v4872_v38 = vmul.f32 %v9309_v53, %v11828_v34 }
 0x800   : > { %8052 = vmatmul.mubr.f32.gmra.mrb[168].mxu0 %v4870_v58 }
 0x801   : > { %v9311_v13 = vpop.eup %9310  ;;  %9002 = vmatpush3.bf16.msra.mxu0 %v11748_v22  ;;  %8054 = vmatprep.mubr.f32.mxu0 %v4872_v38 }
 0x802   : > { %v9313_v3 = vpop.eup %9312  ;;  %9004 = vmatprep.subr.bf16.mxu0 %v11752_v46  ;;  %v4874_v5 = vmul.f32 %v9311_v13, %v11832_v14 }
 0x803   : > { %v4876_v55 = vmul.f32 %v9313_v3, %v11834_v39 }
 0x804   : > { %8055 = vmatmul.mubr.f32.gmra.mrb[170].mxu0 %v4874_v5 }
 0x805   : > { %v9315_v60 = vpop.eup %9314  ;;  %9006 = vmatpush3.bf16.msra.mxu0 %v11752_v46  ;;  %8057 = vmatprep.mubr.f32.mxu0 %v4876_v55  ;;  %v11921_v46 = vpop.permute.xlu1 %5196 }
 0x806   : > { %v9317_v17 = vpop.eup %9316  ;;  %9008 = vmatprep.subr.bf16.mxu0 %v11756_v19  ;;  %v4878_v34 = vmul.f32 %v9315_v60, %v11838_v57 }
 0x807   : > { %v4880_v22 = vmul.f32 %v9317_v17, %v11840_v6  ;;  %v11931_v6 = vpop.permute.xlu0 %5191 }
 0x808   : > { %8058 = vmatmul.mubr.f32.gmra.mrb[172].mxu0 %v4878_v34 }
 0x809   : > { %v9319_v18 = vpop.eup %9318  ;;  %9010 = vmatpush3.bf16.msra.mxu0 %v11756_v19  ;;  %8060 = vmatprep.mubr.f32.mxu0 %v4880_v22  ;;  %v11923_v19 = vpop.permute.xlu1 %5201 }
 0x80a   : > { %9012 = vmatprep.subr.bf16.mxu0 %v11760_v26  ;;  %v4882_v14 = vmul.f32 %v9319_v18, %v11844_v30 }
 0x80b   : > { %v11948_v36 = vpop.permute.xlu0 %5236 }
 0x80c   : > { %8061 = vmatmul.mubr.f32.gmra.mrb[174].mxu0 %v4882_v14 }
 0x80d   : > { %9014 = vmatpush3.bf16.msra.mxu0 %v11760_v26  ;;  %8095 = vmatprep.mubr.f32.mxu0 %v11871_v35  ;;  %v11925_v26 = vpop.permute.xlu1 %5206 }
 0x80f   : > { %v11958_v11 = vpop.permute.xlu0 %5246 }
 0x810   : > { %8096 = vmatmul.mubr.f32.vlgmr.msra.gmra.mrb[176].mxu0 %v11875_v50 }
 0x811   : > { %8098 = vmatprep.mubr.f32.mxu0 %v11878_v47  ;;  %v11927_v39 = vpop.permute.xlu1 %5211 }
 0x813   : > { %v11968_v9 = vpop.permute.xlu0 %5256 }
 0x814   : > { %8099 = vmatmul.mubr.f32.gmra.mrb[178].mxu0 %v11885_v24 }
 0x815   : > { %8101 = vmatprep.mubr.f32.mxu0 %v11888_v40  ;;  %v11929_v57 = vpop.permute.xlu1 %5216 }
 0x818   : > { %8102 = vmatmul.mubr.f32.gmra.mrb[180].mxu0 %v4862_v42 }
 0x819   : > { %8104 = vmatprep.mubr.f32.mxu0 %v4864_v62  ;;  %v11933_v30 = vpop.permute.xlu1 %5221  ;;  %v11978_v62 = vpop.permute.xlu0 %5266 }
 0x81c   : > { %8105 = vmatmul.mubr.f32.gmra.mrb[182].mxu0 %v4866_v49 }
 0x81d   : > { %8107 = vmatprep.mubr.f32.mxu0 %v4868_v63  ;;  %v11943_v51 = vpop.permute.xlu1 %5226 }
 0x820   : > { %8108 = vmatmul.mubr.f32.gmra.mrb[184].mxu0 %v4870_v58 }
 0x821   : > { %8110 = vmatprep.mubr.f32.mxu0 %v4872_v38  ;;  %v11953_v29 = vpop.permute.xlu1 %5231 }
 0x824   : > { %8111 = vmatmul.mubr.f32.gmra.mrb[186].mxu0 %v4874_v5 }
 0x825   : > { %8113 = vmatprep.mubr.f32.mxu0 %v4876_v55  ;;  %v11962_v44 = vpop.permute.xlu1 %5241 }
 0x828   : > { %8114 = vmatmul.mubr.f32.gmra.mrb[188].mxu0 %v4878_v34 }
 0x829   : > { %8116 = vmatprep.mubr.f32.mxu0 %v4880_v22  ;;  %v11972_v41 = vpop.permute.xlu1 %5251 }
 0x82c   : > { %8117 = vmatmul.mubr.f32.gmra.mrb[190].mxu0 %v4882_v14 }
 0x82d   : > { %v11984_v1 = vpop.permute.xlu1 %5261 }
 0x8c3   : > { %v8041_v48 = vpop.f32.mrb[160].mxu0 }
 0x8c4   : > { %v5270_v59 = vmul.f32 %v8041_v48, %v11921_v46  ;;  %v4949_v0 = vpop.f32.mrb[161].mxu0 }
 0x8c5   : > { %v5269_v52 = vmul.f32 %v11931_v6, %v4949_v0 }
 0x8c6   : > { %5286 = vst [vmem:[%s11938_s2 + $0x8] sm:$0xff] %v5270_v59 }
 0x8c7   : > { %5285 = vst [vmem:[%s11938_s2] sm:$0xff] %v5269_v52  ;;  %v8044_v43 = vpop.f32.mrb[162].mxu0 }
 0x8c8   : > { %v5272_v7 = vmul.f32 %v8044_v43, %v11925_v26  ;;  %v4959_v20 = vpop.f32.mrb[163].mxu0 }
 0x8c9   : > { %v5271_v56 = vmul.f32 %v11923_v19, %v4959_v20 }
 0x8ca   : > { %5288 = vst [vmem:[%s11938_s2 + $0x18] sm:$0xff] %v5272_v7 }
 0x8cb   : > { %5287 = vst [vmem:[%s11938_s2 + $0x10] sm:$0xff] %v5271_v56  ;;  %v8047_v10 = vpop.f32.mrb[164].mxu0 }
 0x8cc   : > { %v5274_v2 = vmul.f32 %v8047_v10, %v11929_v57  ;;  %v4969_v23 = vpop.f32.mrb[165].mxu0 }
 0x8cd   : > { %v5273_v16 = vmul.f32 %v11927_v39, %v4969_v23 }
 0x8ce   : > { %5290 = vst [vmem:[%s11938_s2 + $0x28] sm:$0xff] %v5274_v2 }
 0x8cf   : > { %5289 = vst [vmem:[%s11938_s2 + $0x20] sm:$0xff] %v5273_v16  ;;  %v8050_v28 = vpop.f32.mrb[166].mxu0 }
 0x8d0   : > { %v5276_v35 = vmul.f32 %v8050_v28, %v11943_v51  ;;  %v4979_v15 = vpop.f32.mrb[167].mxu0 }
 0x8d1   : > { %v5275_v37 = vmul.f32 %v11933_v30, %v4979_v15 }
 0x8d2   : > { %5292 = vst [vmem:[%s11938_s2 + $0x38] sm:$0xff] %v5276_v35 }
 0x8d3   : > { %5291 = vst [vmem:[%s11938_s2 + $0x30] sm:$0xff] %v5275_v37  ;;  %v8053_v50 = vpop.f32.mrb[168].mxu0 }
 0x8d4   : > { %v5278_v31 = vmul.f32 %v8053_v50, %v11948_v36  ;;  %v4989_v47 = vpop.f32.mrb[169].mxu0 }
 0x8d5   : > { %v5277_v21 = vmul.f32 %v11953_v29, %v4989_v47 }
 0x8d6   : > { %5294 = vst [vmem:[%s11938_s2 + $0x48] sm:$0xff] %v5278_v31 }
 0x8d7   : > { %5293 = vst [vmem:[%s11938_s2 + $0x40] sm:$0xff] %v5277_v21  ;;  %v8056_v54 = vpop.f32.mrb[170].mxu0 }
 0x8d8   : > { %v5280_v24 = vmul.f32 %v8056_v54, %v11958_v11  ;;  %v4999_v12 = vpop.f32.mrb[171].mxu0 }
 0x8d9   : > { %v5279_v40 = vmul.f32 %v11962_v44, %v4999_v12 }
 0x8da   : > { %5296 = vst [vmem:[%s11938_s2 + $0x58] sm:$0xff] %v5280_v24 }
 0x8db   : > { %5295 = vst [vmem:[%s11938_s2 + $0x50] sm:$0xff] %v5279_v40  ;;  %v8059_v8 = vpop.f32.mrb[172].mxu0 }
 0x8dc   : > { %v5282_v61 = vmul.f32 %v8059_v8, %v11968_v9  ;;  %v5009_v42 = vpop.f32.mrb[173].mxu0 }
 0x8dd   : > { %v5281_v27 = vmul.f32 %v11972_v41, %v5009_v42 }
 0x8de   : > { %5298 = vst [vmem:[%s11938_s2 + $0x68] sm:$0xff] %v5282_v61 }
 0x8df   : > { %5297 = vst [vmem:[%s11938_s2 + $0x60] sm:$0xff] %v5281_v27  ;;  %v8062_v4 = vpop.f32.mrb[174].mxu0 }
 0x8e0   : > { %v5284_v32 = vmul.f32 %v8062_v4, %v11978_v62  ;;  %v5019_v49 = vpop.f32.mrb[175].mxu0 }
 0x8e1   : > { %v5283_v45 = vmul.f32 %v11984_v1, %v5019_v49 }
 0x8e2   : > { %5300 = vst [vmem:[%s11938_s2 + $0x78] sm:$0xff] %v5284_v32 }
 0x8e3   : > { %5299 = vst [vmem:[%s11938_s2 + $0x70] sm:$0xff] %v5283_v45  ;;  %v8097_v63 = vpop.f32.mrb[176].mxu0 }
 0x8e4   : > { %v5302_v25 = vmul.f32 %v8097_v63, %v11921_v46  ;;  %v5094_v53 = vpop.f32.mrb[177].mxu0 }
 0x8e5   : > { %9591 = shalt.err (!%p9588_p6)
}
 0x8e6   : > { %s9592_s12 = scalar_lea.hbm %s11992_s20, 2048  ;;  %s9596_s21 = scalar_lea.hbm %s12332_s18, 4096 }
 0x8e7   : > { %p9593_p13 = scmp.ne.s32.totalorder %s11992_s20, %s9592_s12  ;;  %p9597_p11 = scmp.lt.u32.totalorder %s11992_s20, %s12332_s18 }
 0x8e8   : > { %p9598_p3 = scmp.lt.u32.totalorder %s9596_s21, %s9592_s12  ;;  %p9600_p0 = scmp.lt.u32.totalorder %s9592_s12, %s11992_s20 }
 0x8e9   : > { %p9594_p5 = pnand %p9593_p13, %p12333_p8 }
 0x8ea   : > { %p9599_p1 = por %p9598_p3, %p9597_p11 }
 0x8eb   : > { %p9595_p9 = pneg %p9594_p5 }
 0x8ec   : > { %p9601_p4 = por %p9600_p0, %p9599_p1 }
 0x8ee   : > { %p9602_p7 = pnand %p9601_p4, %p9595_p9 }
 0x8f0   : > { %9605 = shalt.err (!%p9602_p7)
}
 0x8f1   : > { %s9707_s28 = smov 128   ;;  %s9708_s11 = smov 8   ;;  %v5301_v33 = vmul.f32 %v11931_v6, %v5094_v53  ;;  %v8100_v58 = vpop.f32.mrb[178].mxu0 }
 0x8f2   : > { %9157 = dma.vmem_to_hbm [thread:$0]  (%p12333_p8), %s11994_s22, 2048, %s11992_s20, %s5334_s29, %s9707_s28, %s9707_s28, %s9708_s11   ;;  %v5304_v38 = vmul.f32 %v8100_v58, %v11925_v26  ;;  %v5104_v13 = vpop.f32.mrb[179].mxu0 }
 0x8f3   : > { %s12029_s2 = scalar_lea.vmem [#allocation18], %s10136_s16  ;;  %v5303_v3 = vmul.f32 %v11923_v19, %v5104_v13  ;;  %v8103_v5 = vpop.f32.mrb[180].mxu0  ;;  %s12334_s24 = sld [smem:[#allocation84_spill]] }
 0x8f4   : > { %5318 = vst [vmem:[%s12029_s2 + $0x8] sm:$0xff] %v5302_v25  ;;  %5317 = vst [vmem:[%s12029_s2] sm:$0xff] %v5301_v33  ;;  %v5306_v55 = vmul.f32 %v8103_v5, %v11929_v57  ;;  %v5114_v60 = vpop.f32.mrb[181].mxu0  ;;  %s5368_s16 = sshll.u32 %s12029_s2, 4  ;;  %s5339_s29 = scalar_lea.sflag [#allocation19], %s10133_s8  ;;  %s12067_s16 = int_to_ptr.vmem [resolvable:$true] %s5368_s16 }
 0x8f5   : > { %5320 = vst [vmem:[%s12029_s2 + $0x18] sm:$0xff] %v5304_v38  ;;  %5319 = vst [vmem:[%s12029_s2 + $0x10] sm:$0xff] %v5303_v3  ;;  %v5305_v17 = vmul.f32 %v11927_v39, %v5114_v60  ;;  %v8106_v34 = vpop.f32.mrb[182].mxu0  ;;  %s9606_s19 = scalar_lea.vmem %s12067_s16, 2048  ;;  %s9709_s14 = smov [#allocation18]  }
 0x8f6   : > { %5322 = vst [vmem:[%s12029_s2 + $0x28] sm:$0xff] %v5306_v55  ;;  %v5308_v22 = vmul.f32 %v8106_v34, %v11943_v51  ;;  %v5124_v18 = vpop.f32.mrb[183].mxu0  ;;  %p9607_p12 = scmp.ne.s32.totalorder %s12067_s16, %s9606_s19  ;;  %s9610_s4 = sshll.u32 %s9709_s14, 4  ;;  %s9611_s4 = int_to_ptr.vmem [resolvable:$false] %s9610_s4 }
 0x8f7   : > { %5321 = vst [vmem:[%s12029_s2 + $0x20] sm:$0xff] %v5305_v17  ;;  %v5307_v14 = vmul.f32 %v11933_v30, %v5124_v18  ;;  %v8109_v46 = vpop.f32.mrb[184].mxu0  ;;  %s9612_s10 = scalar_lea.vmem %s9611_s4, 4096  ;;  %p9613_p6 = scmp.lt.s32.totalorder %s12067_s16, %s9611_s4 }
 0x8f8   : > { %5324 = vst [vmem:[%s12029_s2 + $0x38] sm:$0xff] %v5308_v22  ;;  %v5310_v19 = vmul.f32 %v8109_v46, %v11948_v36  ;;  %v5134_v26 = vpop.f32.mrb[185].mxu0  ;;  %p9608_p2 = pnand %p9607_p12, %p12333_p8  ;;  %p9614_p13 = scmp.lt.s32.totalorder %s9612_s10, %s9606_s19 }
 0x8f9   : > { %5323 = vst [vmem:[%s12029_s2 + $0x30] sm:$0xff] %v5307_v14  ;;  %v5309_v39 = vmul.f32 %v11953_v29, %v5134_v26  ;;  %v8112_v57 = vpop.f32.mrb[186].mxu0  ;;  %s12065_s20 = scalar_lea.hbm %s12334_s24, %s5653_s0 }
 0x8fa   : > { %5326 = vst [vmem:[%s12029_s2 + $0x48] sm:$0xff] %v5310_v19  ;;  %v5312_v6 = vmul.f32 %v8112_v57, %v11958_v11  ;;  %v5144_v48 = vpop.f32.mrb[187].mxu0  ;;  %p9609_p10 = pneg %p9608_p2  ;;  %p9615_p5 = por %p9614_p13, %p9613_p6 }
 0x8fb   : > { %5325 = vst [vmem:[%s12029_s2 + $0x40] sm:$0xff] %v5309_v39  ;;  %v5311_v30 = vmul.f32 %v11962_v44, %v5144_v48  ;;  %v8115_v59 = vpop.f32.mrb[188].mxu0 }
 0x8fc   : > { %5328 = vst [vmem:[%s12029_s2 + $0x58] sm:$0xff] %v5312_v6  ;;  %v5314_v0 = vmul.f32 %v8115_v59, %v11968_v9  ;;  %v5154_v52 = vpop.f32.mrb[189].mxu0  ;;  %p9616_p9 = pnand %p9615_p5, %p9609_p10 }
 0x8fd   : > { %5327 = vst [vmem:[%s12029_s2 + $0x50] sm:$0xff] %v5311_v30  ;;  %v5313_v43 = vmul.f32 %v11972_v41, %v5154_v52 }
 0x8fe   : > { %5330 = vst [vmem:[%s12029_s2 + $0x68] sm:$0xff] %v5314_v0 }
 0x8ff   : > { %5329 = vst [vmem:[%s12029_s2 + $0x60] sm:$0xff] %v5313_v43  ;;  %v8118_v7 = vpop.f32.mrb[190].mxu0 }
 0x900   : > { %v5316_v20 = vmul.f32 %v8118_v7, %v11978_v62  ;;  %v5164_v51 = vpop.f32.mrb[191].mxu0 }
 0x901   : > { %v5315_v56 = vmul.f32 %v11984_v1, %v5164_v51 }
 0x902   : > { %5332 = vst [vmem:[%s12029_s2 + $0x78] sm:$0xff] %v5316_v20 }
 0x903   : > { %5331 = vst [vmem:[%s12029_s2 + $0x70] sm:$0xff] %v5315_v56 }
 0x904   : > { %9619 = shalt.err (!%p9616_p9)
}
 0x905   : > { %s9620_s0 = scalar_lea.hbm %s12065_s20, 2048  ;;  %s9624_s25 = scalar_lea.hbm %s12334_s24, 4096 }
 0x906   : > { %p9621_p11 = scmp.ne.s32.totalorder %s12065_s20, %s9620_s0  ;;  %p9625_p0 = scmp.lt.u32.totalorder %s12065_s20, %s12334_s24 }
 0x907   : > { %p9626_p4 = scmp.lt.u32.totalorder %s9624_s25, %s9620_s0  ;;  %p9628_p12 = scmp.lt.u32.totalorder %s9620_s0, %s12065_s20 }
 0x908   : > { %p9622_p3 = pnand %p9621_p11, %p12333_p8 }
 0x909   : > { %p9627_p7 = por %p9626_p4, %p9625_p0 }
 0x90a   : > { %p9623_p1 = pneg %p9622_p3 }
 0x90b   : > { %p9629_p2 = por %p9628_p12, %p9627_p7 }
 0x90d   : > { %p9630_p10 = pnand %p9629_p2, %p9623_p1 }
 0x90f   : > { %9633 = shalt.err (!%p9630_p10)
}
 0x910   : > { %9158 = dma.vmem_to_hbm [thread:$0]  (%p12333_p8), %s12067_s16, 2048, %s12065_s20, %s5339_s29, %s9707_s28, %s9707_s28, %s9708_s11  }
 0x911 PF: > { %s12335_s30 = sld [smem:[#allocation27_spill]]  ;;  %s12336_s17 = sld [smem:[#allocation33_spill]] }
 0x912   : > { %s12337_s2 = sld [smem:[#allocation28_spill]] }
 0x917   : > { %s5383_s22 = sand.u32 1, %s12335_s30   ;;  %p12338_p6 = scmp.ne.s32.totalorder %s12336_s17, 0 }
 0x918   : > { %p12339_p13 = scmp.ge.s32.totalorder %s12337_s2, 2  ;;  %s5384_s6 = scalar_lea.sflag [#allocation4], %s5383_s22 }
 0x91a   : > { %p9191_p5 = pnand %p12339_p13, %p12338_p6 }
 0x91c   : > { %9671 = dma.done.wait (!%p9191_p5), %s5384_s6, 2048  }
 0x91d   : > { %9673 = vsyncadd (!%p9191_p5), %s5384_s6, 4294965248  ;;  %s5393_s15 = scalar_lea.sflag [#allocation19], %s5383_s22 }
 0x91e   : > { %9675 = dma.done.wait (!%p9191_p5), %s5393_s15, 2048  }
 0x91f   : > { %9677 = vsyncadd (!%p9191_p5), %s5393_s15, 4294965248  ;;  %s12340_s28 = sld [smem:[#allocation30_spill]]  ;;  %s12341_s8 = sld [smem:[#allocation31_spill]] }
 0x920   : > { %s12342_s25 = smov %s9684_s26  ;;  %s12343_s26 = smov %s9688_s27 }
 0x925   : > { %p36_p8 = scmp.ge.s32.totalorder %s12340_s28, 4   ;;  %s12344_s27 = smov %s12341_s8 }
 0x927   :  { %38 = sbr.rel (!%p36_p8) target bundleno = 22 (0x16), region = 187 }
 0x92e   :  { %5398 = vsyncpa [#allocation3], 1 }
 0x92f   :  { %5400 = vsyncpa [#allocation3 + $0x1], 1 }
 0x930   :  { %5401 = vsyncpa [#allocation6], 1 }
 0x931   :  { %5403 = vsyncpa [#allocation6 + $0x1], 1 }
 0x932   :  { %5404 = vsyncpa [#allocation9], 1 }
 0x933   :  { %5405 = vsyncpa [#allocation12], 1 }
 0x934   :  { %5406 = vsyncpa [#allocation15], 1 }
 0x935   :  { %5407 = vsyncpa [#allocation4], 1 }
 0x936   :  { %5409 = vsyncpa [#allocation4 + $0x1], 1 }
 0x937   :  { %5410 = vsyncpa [#allocation19], 1 }
 0x938   :  { %5412 = vsyncpa [#allocation19 + $0x1], 1 }

</bundles_post_ra>
